<compile_context>
chip_gen: v6e
topology: v6e:2x2x1
jax: 0.10.0
libtpu: 0.0.40
codegen_flags: <defaults>
</compile_context>

<pallas_src>
import numpy as np
import jax
import jax.numpy as jnp
from jax.experimental import pallas as pl
from jax.experimental.pallas import tpu as pltpu

# ----------------------------- model config (small, Swin-like) ---------------------
IMG = 16          # input spatial size
IN_CH = 3         # RGB
PATCH = 4         # patch_embed conv: kernel=stride=4
EMBED = 32        # embed dim of stage 0
WINDOW = 2        # window size
DEPTHS = (2, 2)   # blocks per stage (block 1 of stage 0 uses shifted windows)
HEADS = (2, 4)    # heads per stage
MLP_RATIO = 4
OUT_DIM = 28      # replaced head: Linear(C_final, 28), zero weight, zero bias
LANE = 128        # TPU lane width: every channel-like dim is zero-padded to this
NEG_INF = -1e9    # off-window attention logits (exp -> exactly 0 after row-max sub)


# ----------------------------- shared math helpers ----------------------------------
def _gelu(x):
    # exact erf GELU, matching nn.GELU() (kept exact for parity with the module)
    return 0.5 * x * (1.0 + jax.lax.erf(x * np.float32(1.0 / np.sqrt(2.0))))


def _ln_pad(x, g, b, inv_c):
    # LayerNorm over the first 1/inv_c lanes of a 128-lane-padded tensor.  Pad lanes of
    # x are exactly zero and g/b are zero-padded, so the output pad lanes stay zero.
    mean = jnp.sum(x, axis=-1, keepdims=True) * inv_c
    msq = jnp.sum(x * x, axis=-1, keepdims=True) * inv_c
    var = msq - mean * mean
    return (x - mean) * jax.lax.rsqrt(var + 1e-5) * g + b


# ----------------------------- static geometry (numpy, prepare-time only) -----------
def _relative_position_index(ws):
    coords = np.stack(np.meshgrid(np.arange(ws), np.arange(ws), indexing="ij"))
    cf = coords.reshape(2, -1)
    rel = (cf[:, :, None] - cf[:, None, :]).transpose(1, 2, 0).astype(np.int64)
    rel[:, :, 0] += ws - 1
    rel[:, :, 1] += ws - 1
    rel[:, :, 0] *= 2 * ws - 1
    return rel.sum(-1)                                       # [N, N]


def _shift_window_mask(res, ws, shift):
    # standard Swin region mask for shifted windows -> [nW, N, N] of {0, -100}
    img = np.zeros((res, res), np.float32)
    cnt = 0
    for hs in (slice(0, -ws), slice(-ws, -shift), slice(-shift, None)):
        for wsl in (slice(0, -ws), slice(-ws, -shift), slice(-shift, None)):
            img[hs, wsl] = cnt
            cnt += 1
    mw = img.reshape(res // ws, ws, res // ws, ws).transpose(0, 2, 1, 3)
    mw = mw.reshape(-1, ws * ws)
    return np.where(mw[:, None, :] != mw[:, :, None], -100.0, 0.0).astype(np.float32)


def _block_bias_tall(res, ws, shift, rel_tab, heads):
    """Additive bias in the head-stacked ("tall") layout: [H*L, L].

    Row h*L+m, col n = rel-pos bias + shift mask if tokens m,n share a window under
    this block's (possibly shifted) partition, else -1e9 (exp underflows to 0).
    """
    L = res * res
    N = ws * ws
    n_win = (res // ws) ** 2
    idx = np.arange(L, dtype=np.int64).reshape(res, res)
    if shift > 0:
        idx = np.roll(idx, (-shift, -shift), axis=(0, 1))
    win_tok = idx.reshape(res // ws, ws, res // ws, ws).transpose(0, 2, 1, 3)
    win_tok = win_tok.reshape(n_win, N)
    win_mask = (_shift_window_mask(res, ws, shift) if shift > 0
                else np.zeros((n_win, N, N), np.float32))
    rel_idx = _relative_position_index(ws)                   # [N, N]
    bias = np.full((heads, L, L), NEG_INF, np.float32)
    for w in range(n_win):
        t = win_tok[w]
        for h in range(heads):
            bias[h][np.ix_(t, t)] = rel_tab[rel_idx, h] + win_mask[w]
    return bias.reshape(heads * L, L)


def _head_mask(heads, L, C):
    dh = C // heads
    m = np.zeros((heads * L, LANE), np.float32)
    for h in range(heads):
        m[h * L:(h + 1) * L, h * dh:(h + 1) * dh] = 1.0
    return m


def _fold_matrix(heads, L):
    f = np.zeros((L, heads * L), np.float32)
    for h in range(heads):
        f[np.arange(L), h * L + np.arange(L)] = 1.0
    return f


def _merge_select(res0):
    # 4 row-selection matrices implementing x[:, 0::2, 0::2], [1::2,0::2], [0::2,1::2],
    # [1::2,1::2] (timm PatchMerging order) as matmuls.
    res1 = res0 // 2
    sel = np.zeros((4, res1 * res1, res0 * res0), np.float32)
    for k, (di, dj) in enumerate(((0, 0), (1, 0), (0, 1), (1, 1))):
        for i in range(res1):
            for j in range(res1):
                sel[k, i * res1 + j, (2 * i + di) * res0 + (2 * j + dj)] = 1.0
    return sel


# ----------------------------- parameter init (deterministic) -----------------------
def init_params(key):
    keys = iter(jax.random.split(key, 64))

    def dense(fan_in, fan_out, zero=False):
        if zero:
            w = jnp.zeros((fan_in, fan_out), jnp.float32)
        else:
            w = 0.02 * jax.random.normal(next(keys), (fan_in, fan_out), jnp.float32)
        return w, jnp.zeros((fan_out,), jnp.float32)

    def ln(d):
        return jnp.ones((d,), jnp.float32), jnp.zeros((d,), jnp.float32)

    p = {}
    pw, pb = dense(PATCH * PATCH * IN_CH, EMBED)
    ng, nb = ln(EMBED)
    p["patch_embed"] = dict(w=pw, b=pb, ng=ng, nb=nb)

    p["stages"] = []
    dim = EMBED
    res = IMG // PATCH
    for si, (depth, heads) in enumerate(zip(DEPTHS, HEADS)):
        ws = min(WINDOW, res)
        blocks = []
        for _ in range(depth):
            qkv_w, qkv_b = dense(dim, 3 * dim)
            proj_w, proj_b = dense(dim, dim)
            rel_tab = 0.02 * jax.random.normal(next(keys), ((2 * ws - 1) ** 2, heads),
                                               jnp.float32)
            n1g, n1b = ln(dim)
            n2g, n2b = ln(dim)
            fc1_w, fc1_b = dense(dim, MLP_RATIO * dim)
            fc2_w, fc2_b = dense(MLP_RATIO * dim, dim)
            blocks.append(dict(
                n1g=n1g, n1b=n1b, qkv_w=qkv_w, qkv_b=qkv_b, rel_tab=rel_tab,
                proj_w=proj_w, proj_b=proj_b, n2g=n2g, n2b=n2b,
                fc1_w=fc1_w, fc1_b=fc1_b, fc2_w=fc2_w, fc2_b=fc2_b))
        stage = dict(blocks=blocks)
        if si < len(DEPTHS) - 1:
            mg, mb = ln(4 * dim)
            red_w, _ = dense(4 * dim, 2 * dim)
            stage["merge"] = dict(ng=mg, nb=mb, w=red_w)
            dim *= 2
            res //= 2
        p["stages"].append(stage)

    fg, fb = ln(dim)
    hw, hb = dense(dim, OUT_DIM, zero=True)      # zero-init replacement head (bias = 0)
    p["norm"] = dict(g=fg, b=fb)
    p["head"] = dict(w=hw, b=hb)
    return p


# ----------------------------- prepare: pack weights + static plan ------------------
def prepare_forward(params):
    """Pack every weight into a few lane-dense (128-padded) slabs + a static plan.

    All geometry (window maps, shift masks, relative-position gathers, head-stacking
    masks, patch-merge selection) is baked here ONCE in numpy.
    """
    mats, vecs = [], []

    def add_mat(m):
        m = np.asarray(m, np.float32)
        out = np.zeros((LANE, LANE), np.float32)
        out[:m.shape[0], :m.shape[1]] = m
        mats.append(out)
        return len(mats) - 1

    def add_vec(v):
        v = np.asarray(v, np.float32).reshape(-1)
        out = np.zeros((LANE,), np.float32)
        out[:v.shape[0]] = v
        vecs.append(out)
        return len(vecs) - 1

    plan = {"merge_after": -1}
    pe = params["patch_embed"]
    plan["patch"] = dict(w=add_mat(pe["w"]), b=add_vec(pe["b"]),
                         g=add_vec(pe["ng"]), nb=add_vec(pe["nb"]),
                         inv_c=1.0 / EMBED)

    res = IMG // PATCH
    dim = EMBED
    blocks = []
    abias = {0: [], 1: []}
    for si, stage in enumerate(params["stages"]):
        heads = HEADS[si]
        ws = min(WINDOW, res)
        L = res * res
        dh = dim // heads
        scale = float(dh) ** -0.5
        for bi, bp in enumerate(stage["blocks"]):
            shift = 0 if (bi % 2 == 0 or res <= ws) else ws // 2
            qkv_w = np.asarray(bp["qkv_w"], np.float32)
            qkv_b = np.asarray(bp["qkv_b"], np.float32)
            fc1_w = np.asarray(bp["fc1_w"], np.float32)
            fc1_b = np.asarray(bp["fc1_b"], np.float32)
            fc2_w = np.asarray(bp["fc2_w"], np.float32)
            nparts = (MLP_RATIO * dim) // LANE          # 1 (stage 0) or 2 (stage 1)
            blk = dict(
                stage=si, H=heads, L=L, inv_c=1.0 / dim, slot=len(abias[si]),
                n1g=add_vec(bp["n1g"]), n1b=add_vec(bp["n1b"]),
                wq=add_mat(qkv_w[:, :dim] * scale), bq=add_vec(qkv_b[:dim] * scale),
                wk=add_mat(qkv_w[:, dim:2 * dim]), bk=add_vec(qkv_b[dim:2 * dim]),
                wv=add_mat(qkv_w[:, 2 * dim:]), bv=add_vec(qkv_b[2 * dim:]),
                wp=add_mat(bp["proj_w"]), bp=add_vec(bp["proj_b"]),
                n2g=add_vec(bp["n2g"]), n2b=add_vec(bp["n2b"]),
                fc1=[(add_mat(fc1_w[:, j * LANE:(j + 1) * LANE]),
                      add_vec(fc1_b[j * LANE:(j + 1) * LANE])) for j in range(nparts)],
                fc2_w=[add_mat(fc2_w[j * LANE:(j + 1) * LANE, :]) for j in range(nparts)],
                fc2_b=add_vec(bp["fc2_b"]))
            abias[si].append(_block_bias_tall(
                res, ws, shift, np.asarray(bp["rel_tab"], np.float32), heads))
            blocks.append(blk)
        if "merge" in stage:
            mg = stage["merge"]
            g = np.asarray(mg["ng"], np.float32)
            b = np.asarray(mg["nb"], np.float32)
            rw = np.asarray(mg["w"], np.float32)                 # [4*dim, 2*dim]
            plan["merge"] = dict(
                w=[add_mat(g[k * dim:(k + 1) * dim, None] * rw[k * dim:(k + 1) * dim, :])
                   for k in range(4)],                           # LN gamma folded in
                const=add_vec(b @ rw),                           # LN beta folded in
                inv4c=1.0 / (4.0 * dim))
            plan["merge_after"] = len(blocks) - 1
            res //= 2
            dim *= 2
    plan["blocks"] = blocks
    plan["head"] = dict(g=add_vec(params["norm"]["g"]), b=add_vec(params["norm"]["b"]),
                        w=add_mat(params["head"]["w"]), hb=add_vec(params["head"]["b"]),
                        inv_c=1.0 / dim)

    res0 = IMG // PATCH
    res1 = res0 // 2
    arrs = (
        jnp.asarray(np.stack(mats)).astype(jnp.bfloat16),        # [Nm, 128, 128] bf16
        jnp.asarray(np.stack(vecs)[:, None, :]),                 # [Nv, 1, 128] f32
        jnp.asarray(np.stack(abias[0])),                         # [2, H0*L0, L0]
        jnp.asarray(np.stack(abias[1])),                         # [2, H1*L1, L1]
        jnp.asarray(_head_mask(HEADS[0], res0 * res0, EMBED)),   # [H0*L0, 128]
        jnp.asarray(_head_mask(HEADS[1], res1 * res1, 2 * EMBED)),
        jnp.asarray(_fold_matrix(HEADS[0], res0 * res0)),        # [L0, H0*L0]
        jnp.asarray(_fold_matrix(HEADS[1], res1 * res1)),
        jnp.asarray(_merge_select(res0)),                        # [4, L1, L0]
    )
    return arrs, plan


# ----------------------------- the single fused Pallas kernel -----------------------
def _make_fused_kernel(plan):
    def kernel(x_ref, mats_ref, vecs_ref, ab0_ref, ab1_ref, hm0_ref, hm1_ref,
               fold0_ref, fold1_ref, sel_ref, feat_ref, logit_ref):
        def vec(i):                                   # [1, 128] f32
            return vecs_ref[i]

        def mm(a, i):                                 # bf16 operands, f32 accumulation
            return jnp.dot(a.astype(jnp.bfloat16), mats_ref[i],
                           preferred_element_type=jnp.float32)

        # ---- patch embed: unfolded patches -> linear -> LayerNorm -------------------
        pp = plan["patch"]
        x = x_ref[0]                                             # [L0, 128]
        x = mm(x, pp["w"]) + vec(pp["b"])
        x = _ln_pad(x, vec(pp["g"]), vec(pp["nb"]), pp["inv_c"])

        # ---- swin blocks (+ patch merging after stage 0) ----------------------------
        for bi, bp in enumerate(plan["blocks"]):
            H = bp["H"]
            inv_c = bp["inv_c"]
            if bp["stage"] == 0:
                hmask, fold, abias = hm0_ref[...], fold0_ref[...], ab0_ref[bp["slot"]]
            else:
                hmask, fold, abias = hm1_ref[...], fold1_ref[...], ab1_ref[bp["slot"]]

            # window attention, all heads stacked along the sublane axis
            xn = _ln_pad(x, vec(bp["n1g"]), vec(bp["n1b"]), inv_c)
            q = mm(xn, bp["wq"]) + vec(bp["bq"])                 # scale folded into wq/bq
            k = mm(xn, bp["wk"]) + vec(bp["bk"])
            v = mm(xn, bp["wv"]) + vec(bp["bv"])
            q_rep = jnp.concatenate([q] * H, axis=0) * hmask     # [H*L, 128]
            s = jax.lax.dot_general(                             # one score matmul
                q_rep.astype(jnp.bfloat16), k.astype(jnp.bfloat16),
                (((1,), (1,)), ((), ())), preferred_element_type=jnp.float32)
            s = s + abias                                        # rel-pos + shift + window
            s = s - jnp.max(s, axis=-1, keepdims=True)
            e = jnp.exp(s)
            p = e * pl.reciprocal(jnp.sum(e, axis=-1, keepdims=True), approx=True)
            o = jnp.dot(p.astype(jnp.bfloat16), v.astype(jnp.bfloat16),
                        preferred_element_type=jnp.float32)      # [H*L, 128]
            o = jnp.dot(fold, o * hmask,
                        preferred_element_type=jnp.float32)      # heads -> lanes, [L,128]
            x = x + mm(o, bp["wp"]) + vec(bp["bp"])

            # MLP (fc1 / fc2 split into 128-wide lane blocks)
            y = _ln_pad(x, vec(bp["n2g"]), vec(bp["n2b"]), inv_c)
            hidden = [_gelu(mm(y, wi) + vec(bi_)) for wi, bi_ in bp["fc1"]]
            z = mm(hidden[0], bp["fc2_w"][0])
            for hpart, wi in zip(hidden[1:], bp["fc2_w"][1:]):
                z = z + mm(hpart, wi)
            x = x + z + vec(bp["fc2_b"])

            # patch merging: LN(4C) + Linear(4C->2C) folded over the 4 corner pieces
            if bi == plan["merge_after"]:
                mg = plan["merge"]
                ps = [jnp.dot(sel_ref[kk], x, preferred_element_type=jnp.float32)
                      for kk in range(4)]                         # 4 x [L/4, 128]
                s1 = (jnp.sum(ps[0], -1, keepdims=True) + jnp.sum(ps[1], -1, keepdims=True)
                      + jnp.sum(ps[2], -1, keepdims=True)
                      + jnp.sum(ps[3], -1, keepdims=True)) * mg["inv4c"]
                s2 = (jnp.sum(ps[0] * ps[0], -1, keepdims=True)
                      + jnp.sum(ps[1] * ps[1], -1, keepdims=True)
                      + jnp.sum(ps[2] * ps[2], -1, keepdims=True)
                      + jnp.sum(ps[3] * ps[3], -1, keepdims=True)) * mg["inv4c"]
                inv_std = jax.lax.rsqrt(s2 - s1 * s1 + 1e-5)
                acc = mm(ps[0] - s1, mg["w"][0])
                acc = acc + mm(ps[1] - s1, mg["w"][1])
                acc = acc + mm(ps[2] - s1, mg["w"][2])
                acc = acc + mm(ps[3] - s1, mg["w"][3])
                x = acc * inv_std + vec(mg["const"])

        # ---- final LN + mean pool (VPU) + zero-init head ----------------------------
        hp = plan["head"]
        y = _ln_pad(x, vec(hp["g"]), vec(hp["b"]), hp["inv_c"])
        pooled = jnp.mean(y, axis=0, keepdims=True)               # [1, 128]
        feat_ref[0] = pooled
        logit_ref[0] = mm(pooled, hp["w"]) + vec(hp["hb"])
    return kernel


def make_forward_fn(plan):
    kernel = _make_fused_kernel(plan)
    n_tok0 = (IMG // PATCH) ** 2
    patch_feat = PATCH * PATCH * IN_CH

    def _bcast_spec(a):
        nd = a.ndim
        return pl.BlockSpec(a.shape, lambda b, _nd=nd: (0,) * _nd)

    def fwd(x_nchw, arrs):
        B = x_nchw.shape[0]
        Hp = IMG // PATCH
        # NCHW -> per-token (ph, pw, cin) patch vectors, zero-padded to 128 lanes.
        x = jnp.transpose(x_nchw, (0, 2, 3, 1)).astype(jnp.float32)
        x = x.reshape(B, Hp, PATCH, Hp, PATCH, IN_CH).transpose(0, 1, 3, 2, 4, 5)
        x = x.reshape(B, n_tok0, patch_feat)
        x = jnp.pad(x, ((0, 0), (0, 0), (0, LANE - patch_feat)))

        feats, logits = pl.pallas_call(
            kernel,
            grid=(B,),
            in_specs=[pl.BlockSpec((1, n_tok0, LANE), lambda b: (b, 0, 0))]
                     + [_bcast_spec(a) for a in arrs],
            out_specs=[pl.BlockSpec((1, 1, LANE), lambda b: (b, 0, 0)),
                       pl.BlockSpec((1, 1, LANE), lambda b: (b, 0, 0))],
            out_shape=(jax.ShapeDtypeStruct((B, 1, LANE), jnp.float32),
                       jax.ShapeDtypeStruct((B, 1, LANE), jnp.float32)),
            compiler_params=pltpu.CompilerParams(dimension_semantics=("parallel",)),
        )(x, *arrs)
        return logits[:, 0, :OUT_DIM], feats[:, 0, :]

    return jax.jit(fwd)


# ----------------------------- pure-JAX reference (for validation) ------------------
def _mm_ref(a, w):
    return jnp.dot(a.astype(jnp.bfloat16), w.astype(jnp.bfloat16),
                   preferred_element_type=jnp.float32)


def _ln_ref(x, g, b):
    m = jnp.mean(x, axis=-1, keepdims=True)
    v = jnp.mean(jnp.square(x - m), axis=-1, keepdims=True)
    return (x - m) * jax.lax.rsqrt(v + 1e-5) * g + b


def reference_forward(params, x_nchw):
    B = x_nchw.shape[0]
    Hp = IMG // PATCH
    x = jnp.transpose(x_nchw, (0, 2, 3, 1)).astype(jnp.float32)
    x = x.reshape(B, Hp, PATCH, Hp, PATCH, IN_CH).transpose(0, 1, 3, 2, 4, 5)
    x = x.reshape(B, Hp * Hp, PATCH * PATCH * IN_CH)
    pe = params["patch_embed"]
    x = _mm_ref(x, pe["w"]) + pe["b"]
    x = _ln_ref(x, pe["ng"], pe["nb"])

    res = Hp
    for si, stage in enumerate(params["stages"]):
        heads = HEADS[si]
        ws = min(WINDOW, res)
        C = x.shape[-1]
        dh = C // heads
        N = ws * ws
        nw = res // ws
        rel_idx = _relative_position_index(ws)
        for bi, bp in enumerate(stage["blocks"]):
            shift = 0 if (bi % 2 == 0 or res <= ws) else ws // 2
            shortcut = x
            xn = _ln_ref(x, bp["n1g"], bp["n1b"]).reshape(B, res, res, C)
            if shift:
                xn = jnp.roll(xn, (-shift, -shift), axis=(1, 2))
            win = xn.reshape(B, nw, ws, nw, ws, C).transpose(0, 1, 3, 2, 4, 5)
            win = win.reshape(B * nw * nw, N, C)
            qkv = _mm_ref(win, bp["qkv_w"]) + bp["qkv_b"]
            q, k, v = qkv[..., :C], qkv[..., C:2 * C], qkv[..., 2 * C:]
            q = q * (float(dh) ** -0.5)
            qh = q.reshape(-1, N, heads, dh).transpose(0, 2, 1, 3)
            kh = k.reshape(-1, N, heads, dh).transpose(0, 2, 1, 3)
            vh = v.reshape(-1, N, heads, dh).transpose(0, 2, 1, 3)
            att = jnp.einsum("whnd,whmd->whnm", qh.astype(jnp.bfloat16),
                             kh.astype(jnp.bfloat16), preferred_element_type=jnp.float32)
            rbias = bp["rel_tab"][rel_idx.reshape(-1)].reshape(N, N, heads)
            att = att + jnp.transpose(rbias, (2, 0, 1))[None]
            if shift:
                wmask = jnp.asarray(_shift_window_mask(res, ws, shift))
                att = att + jnp.tile(wmask, (B, 1, 1))[:, None]
            att = jax.nn.softmax(att, axis=-1)
            out = jnp.einsum("whnm,whmd->whnd", att.astype(jnp.bfloat16),
                             vh.astype(jnp.bfloat16), preferred_element_type=jnp.float32)
            out = out.transpose(0, 2, 1, 3).reshape(B * nw * nw, N, C)
            out = _mm_ref(out, bp["proj_w"]) + bp["proj_b"]
            out = out.reshape(B, nw, nw, ws, ws, C).transpose(0, 1, 3, 2, 4, 5)
            out = out.reshape(B, res, res, C)
            if shift:
                out = jnp.roll(out, (shift, shift), axis=(1, 2))
            x = shortcut + out.reshape(B, res * res, C)
            y = _ln_ref(x, bp["n2g"], bp["n2b"])
            y = _gelu(_mm_ref(y, bp["fc1_w"]) + bp["fc1_b"])
            x = x + _mm_ref(y, bp["fc2_w"]) + bp["fc2_b"]
        if "merge" in stage:
            mg = stage["merge"]
            xs = x.reshape(B, res, res, C)
            cat = jnp.concatenate([xs[:, 0::2, 0::2], xs[:, 1::2, 0::2],
                                   xs[:, 0::2, 1::2], xs[:, 1::2, 1::2]], axis=-1)
            res //= 2
            cat = cat.reshape(B, res * res, 4 * C)
            x = _mm_ref(_ln_ref(cat, mg["ng"], mg["nb"]), mg["w"])

    y = _ln_ref(x, params["norm"]["g"], params["norm"]["b"])
    pooled = jnp.mean(y, axis=1)
    logits = _mm_ref(pooled, params["head"]["w"]) + params["head"]["b"]
    return logits, pooled


# ----------------------------- main --------------------------------------------------
if __name__ == "__main__":
    key = jax.random.PRNGKey(0)
    pkey, xkey = jax.random.split(key)
    params = init_params(pkey)

    B = 2
    x = jax.random.normal(xkey, (B, IN_CH, IMG, IMG), jnp.float32)   # NCHW, like PyTorch

    arrs, plan = prepare_forward(params)
    fwd = make_forward_fn(plan)
    logits, feats = jax.block_until_ready(fwd(x, arrs))

    ref_logits, ref_pooled = jax.block_until_ready(jax.jit(reference_forward)(params, x))

    assert logits.shape == (B, OUT_DIM), logits.shape
    assert bool(jnp.all(jnp.isfinite(logits)))
    c_final = 2 * EMBED
    # fused-kernel features must match the straightforward windowed-attention reference
    np.testing.assert_allclose(np.asarray(feats[:, :c_final]), np.asarray(ref_pooled),
                               rtol=5e-2, atol=5e-2)
    # lane padding must stay exactly zero (catches any head/lane mis-indexing)
    np.testing.assert_allclose(np.asarray(feats[:, c_final:]),
                               np.zeros((B, LANE - c_final), np.float32), atol=1e-6)
    # zero-init head -> logits identical (and identically zero) in both paths
    np.testing.assert_allclose(np.asarray(logits), np.asarray(ref_logits), atol=1e-6)
    print("KERNEL_OK")
</pallas_src>

<mosaic_0001>
module attributes {stable_mosaic.version = 11 : i64} {
  func.func @kernel(%arg0: i32, %arg1: memref<1x16x128xf32, #tpu.memory_space<vmem>>, %arg2: memref<34x128x128xbf16, #tpu.memory_space<vmem>>, %arg3: memref<49x1x128xf32, #tpu.memory_space<vmem>>, %arg4: memref<2x32x16xf32, #tpu.memory_space<vmem>>, %arg5: memref<2x16x4xf32, #tpu.memory_space<vmem>>, %arg6: memref<32x128xf32, #tpu.memory_space<vmem>>, %arg7: memref<16x128xf32, #tpu.memory_space<vmem>>, %arg8: memref<16x32xf32, #tpu.memory_space<vmem>>, %arg9: memref<4x16xf32, #tpu.memory_space<vmem>>, %arg10: memref<4x4x16xf32, #tpu.memory_space<vmem>>, %arg11: memref<1x1x128xf32, #tpu.memory_space<vmem>>, %arg12: memref<1x1x128xf32, #tpu.memory_space<vmem>>) attributes {dimension_semantics = [#tpu.dimension_semantics<parallel>], iteration_bounds = array<i64: 2>, scalar_prefetch = 0 : i64, scratch_operands = 0 : i64, tpu.core_type = #tpu.core_type<tc>, window_params = [{transform_indices = @transform_0, window_bounds = array<i64: 1, 16, 128>}, {pipeline_mode = #tpu.pipeline_mode<synchronous>, transform_indices = @transform_1, window_bounds = array<i64: 34, 128, 128>}, {pipeline_mode = #tpu.pipeline_mode<synchronous>, transform_indices = @transform_2, window_bounds = array<i64: 49, 1, 128>}, {pipeline_mode = #tpu.pipeline_mode<synchronous>, transform_indices = @transform_3, window_bounds = array<i64: 2, 32, 16>}, {pipeline_mode = #tpu.pipeline_mode<synchronous>, transform_indices = @transform_4, window_bounds = array<i64: 2, 16, 4>}, {pipeline_mode = #tpu.pipeline_mode<synchronous>, transform_indices = @transform_5, window_bounds = array<i64: 32, 128>}, {pipeline_mode = #tpu.pipeline_mode<synchronous>, transform_indices = @transform_6, window_bounds = array<i64: 16, 128>}, {pipeline_mode = #tpu.pipeline_mode<synchronous>, transform_indices = @transform_7, window_bounds = array<i64: 16, 32>}, {pipeline_mode = #tpu.pipeline_mode<synchronous>, transform_indices = @transform_8, window_bounds = array<i64: 4, 16>}, {pipeline_mode = #tpu.pipeline_mode<synchronous>, transform_indices = @transform_9, window_bounds = array<i64: 4, 4, 16>}, {transform_indices = @transform_10, window_bounds = array<i64: 1, 1, 128>}, {transform_indices = @transform_11, window_bounds = array<i64: 1, 1, 128>}]} {
    %c0 = arith.constant 0 : index
    %c0_0 = arith.constant 0 : index
    %c0_1 = arith.constant 0 : index
    %0 = vector.load %arg1[%c0, %c0_0, %c0_1] : memref<1x16x128xf32, #tpu.memory_space<vmem>>, vector<1x16x128xf32>
    %1 = vector.shape_cast %0 : vector<1x16x128xf32> to vector<16x128xf32>
    %2 = arith.truncf %1 : vector<16x128xf32> to vector<16x128xbf16>
    %c0_2 = arith.constant 0 : index
    %c0_3 = arith.constant 0 : index
    %c0_4 = arith.constant 0 : index
    %3 = vector.load %arg2[%c0_2, %c0_3, %c0_4] : memref<34x128x128xbf16, #tpu.memory_space<vmem>>, vector<1x128x128xbf16>
    %4 = vector.shape_cast %3 : vector<1x128x128xbf16> to vector<128x128xbf16>
    %cst = arith.constant dense<0.000000e+00> : vector<16x128xf32>
    %5 = tpu.matmul %2, %4, %cst {dimension_numbers = #tpu.dot_dimension_numbers<[1], [0], [0], [1], [0, 0, 1, 1], [], []>} : vector<16x128xbf16>, vector<128x128xbf16>, vector<16x128xf32> -> vector<16x128xf32>
    %c0_5 = arith.constant 0 : index
    %c0_6 = arith.constant 0 : index
    %c0_7 = arith.constant 0 : index
    %6 = vector.load %arg3[%c0_5, %c0_6, %c0_7] : memref<49x1x128xf32, #tpu.memory_space<vmem>>, vector<1x1x128xf32>
    %7 = vector.shape_cast %6 : vector<1x1x128xf32> to vector<1x128xf32>
    %8 = vector.broadcast %7 : vector<1x128xf32> to vector<16x128xf32>
    %9 = arith.addf %5, %8 : vector<16x128xf32>
    %c1 = arith.constant 1 : index
    %c0_8 = arith.constant 0 : index
    %c0_9 = arith.constant 0 : index
    %10 = vector.load %arg3[%c1, %c0_8, %c0_9] : memref<49x1x128xf32, #tpu.memory_space<vmem>>, vector<1x1x128xf32>
    %11 = vector.shape_cast %10 : vector<1x1x128xf32> to vector<1x128xf32>
    %c2 = arith.constant 2 : index
    %c0_10 = arith.constant 0 : index
    %c0_11 = arith.constant 0 : index
    %12 = vector.load %arg3[%c2, %c0_10, %c0_11] : memref<49x1x128xf32, #tpu.memory_space<vmem>>, vector<1x1x128xf32>
    %13 = vector.shape_cast %12 : vector<1x1x128xf32> to vector<1x128xf32>
    %cst_12 = arith.constant dense<0.000000e+00> : vector<16xf32>
    %14 = vector.multi_reduction <add>, %9, %cst_12 [1] : vector<16x128xf32> to vector<16xf32>
    %15 = vector.shape_cast %14 : vector<16xf32> to vector<16x1xf32>
    %cst_13 = arith.constant 3.125000e-02 : f32
    %16 = vector.broadcast %cst_13 : f32 to vector<16x1xf32>
    %17 = arith.mulf %15, %16 : vector<16x1xf32>
    %18 = arith.mulf %9, %9 : vector<16x128xf32>
    %cst_14 = arith.constant dense<0.000000e+00> : vector<16xf32>
    %19 = vector.multi_reduction <add>, %18, %cst_14 [1] : vector<16x128xf32> to vector<16xf32>
    %20 = vector.shape_cast %19 : vector<16xf32> to vector<16x1xf32>
    %cst_15 = arith.constant 3.125000e-02 : f32
    %21 = vector.broadcast %cst_15 : f32 to vector<16x1xf32>
    %22 = arith.mulf %20, %21 : vector<16x1xf32>
    %23 = arith.mulf %17, %17 : vector<16x1xf32>
    %24 = arith.subf %22, %23 : vector<16x1xf32>
    %25 = vector.broadcast %17 : vector<16x1xf32> to vector<16x128xf32>
    %26 = arith.subf %9, %25 : vector<16x128xf32>
    %cst_16 = arith.constant 9.99999974E-6 : f32
    %27 = vector.broadcast %cst_16 : f32 to vector<16x1xf32>
    %28 = arith.addf %24, %27 : vector<16x1xf32>
    %29 = math.rsqrt %28 : vector<16x1xf32>
    %30 = vector.broadcast %29 : vector<16x1xf32> to vector<16x128xf32>
    %31 = arith.mulf %26, %30 : vector<16x128xf32>
    %32 = vector.broadcast %11 : vector<1x128xf32> to vector<16x128xf32>
    %33 = arith.mulf %31, %32 : vector<16x128xf32>
    %34 = vector.broadcast %13 : vector<1x128xf32> to vector<16x128xf32>
    %35 = arith.addf %33, %34 : vector<16x128xf32>
    %c0_17 = arith.constant 0 : index
    %c0_18 = arith.constant 0 : index
    %36 = vector.load %arg6[%c0_17, %c0_18] : memref<32x128xf32, #tpu.memory_space<vmem>>, vector<32x128xf32>
    %c0_19 = arith.constant 0 : index
    %c0_20 = arith.constant 0 : index
    %37 = vector.load %arg8[%c0_19, %c0_20] : memref<16x32xf32, #tpu.memory_space<vmem>>, vector<16x32xf32>
    %c0_21 = arith.constant 0 : index
    %c0_22 = arith.constant 0 : index
    %c0_23 = arith.constant 0 : index
    %38 = vector.load %arg4[%c0_21, %c0_22, %c0_23] : memref<2x32x16xf32, #tpu.memory_space<vmem>>, vector<1x32x16xf32>
    %39 = vector.shape_cast %38 : vector<1x32x16xf32> to vector<32x16xf32>
    %c3 = arith.constant 3 : index
    %c0_24 = arith.constant 0 : index
    %c0_25 = arith.constant 0 : index
    %40 = vector.load %arg3[%c3, %c0_24, %c0_25] : memref<49x1x128xf32, #tpu.memory_space<vmem>>, vector<1x1x128xf32>
    %41 = vector.shape_cast %40 : vector<1x1x128xf32> to vector<1x128xf32>
    %c4 = arith.constant 4 : index
    %c0_26 = arith.constant 0 : index
    %c0_27 = arith.constant 0 : index
    %42 = vector.load %arg3[%c4, %c0_26, %c0_27] : memref<49x1x128xf32, #tpu.memory_space<vmem>>, vector<1x1x128xf32>
    %43 = vector.shape_cast %42 : vector<1x1x128xf32> to vector<1x128xf32>
    %cst_28 = arith.constant dense<0.000000e+00> : vector<16xf32>
    %44 = vector.multi_reduction <add>, %35, %cst_28 [1] : vector<16x128xf32> to vector<16xf32>
    %45 = vector.shape_cast %44 : vector<16xf32> to vector<16x1xf32>
    %cst_29 = arith.constant 3.125000e-02 : f32
    %46 = vector.broadcast %cst_29 : f32 to vector<16x1xf32>
    %47 = arith.mulf %45, %46 : vector<16x1xf32>
    %48 = arith.mulf %35, %35 : vector<16x128xf32>
    %cst_30 = arith.constant dense<0.000000e+00> : vector<16xf32>
    %49 = vector.multi_reduction <add>, %48, %cst_30 [1] : vector<16x128xf32> to vector<16xf32>
    %50 = vector.shape_cast %49 : vector<16xf32> to vector<16x1xf32>
    %cst_31 = arith.constant 3.125000e-02 : f32
    %51 = vector.broadcast %cst_31 : f32 to vector<16x1xf32>
    %52 = arith.mulf %50, %51 : vector<16x1xf32>
    %53 = arith.mulf %47, %47 : vector<16x1xf32>
    %54 = arith.subf %52, %53 : vector<16x1xf32>
    %55 = vector.broadcast %47 : vector<16x1xf32> to vector<16x128xf32>
    %56 = arith.subf %35, %55 : vector<16x128xf32>
    %cst_32 = arith.constant 9.99999974E-6 : f32
    %57 = vector.broadcast %cst_32 : f32 to vector<16x1xf32>
    %58 = arith.addf %54, %57 : vector<16x1xf32>
    %59 = math.rsqrt %58 : vector<16x1xf32>
    %60 = vector.broadcast %59 : vector<16x1xf32> to vector<16x128xf32>
    %61 = arith.mulf %56, %60 : vector<16x128xf32>
    %62 = vector.broadcast %41 : vector<1x128xf32> to vector<16x128xf32>
    %63 = arith.mulf %61, %62 : vector<16x128xf32>
    %64 = vector.broadcast %43 : vector<1x128xf32> to vector<16x128xf32>
    %65 = arith.addf %63, %64 : vector<16x128xf32>
    %66 = arith.truncf %65 : vector<16x128xf32> to vector<16x128xbf16>
    %c1_33 = arith.constant 1 : index
    %c0_34 = arith.constant 0 : index
    %c0_35 = arith.constant 0 : index
    %67 = vector.load %arg2[%c1_33, %c0_34, %c0_35] : memref<34x128x128xbf16, #tpu.memory_space<vmem>>, vector<1x128x128xbf16>
    %68 = vector.shape_cast %67 : vector<1x128x128xbf16> to vector<128x128xbf16>
    %cst_36 = arith.constant dense<0.000000e+00> : vector<16x128xf32>
    %69 = tpu.matmul %66, %68, %cst_36 {dimension_numbers = #tpu.dot_dimension_numbers<[1], [0], [0], [1], [0, 0, 1, 1], [], []>} : vector<16x128xbf16>, vector<128x128xbf16>, vector<16x128xf32> -> vector<16x128xf32>
    %c5 = arith.constant 5 : index
    %c0_37 = arith.constant 0 : index
    %c0_38 = arith.constant 0 : index
    %70 = vector.load %arg3[%c5, %c0_37, %c0_38] : memref<49x1x128xf32, #tpu.memory_space<vmem>>, vector<1x1x128xf32>
    %71 = vector.shape_cast %70 : vector<1x1x128xf32> to vector<1x128xf32>
    %72 = vector.broadcast %71 : vector<1x128xf32> to vector<16x128xf32>
    %73 = arith.addf %69, %72 : vector<16x128xf32>
    %74 = arith.truncf %65 : vector<16x128xf32> to vector<16x128xbf16>
    %c2_39 = arith.constant 2 : index
    %c0_40 = arith.constant 0 : index
    %c0_41 = arith.constant 0 : index
    %75 = vector.load %arg2[%c2_39, %c0_40, %c0_41] : memref<34x128x128xbf16, #tpu.memory_space<vmem>>, vector<1x128x128xbf16>
    %76 = vector.shape_cast %75 : vector<1x128x128xbf16> to vector<128x128xbf16>
    %cst_42 = arith.constant dense<0.000000e+00> : vector<16x128xf32>
    %77 = tpu.matmul %74, %76, %cst_42 {dimension_numbers = #tpu.dot_dimension_numbers<[1], [0], [0], [1], [0, 0, 1, 1], [], []>} : vector<16x128xbf16>, vector<128x128xbf16>, vector<16x128xf32> -> vector<16x128xf32>
    %c6 = arith.constant 6 : index
    %c0_43 = arith.constant 0 : index
    %c0_44 = arith.constant 0 : index
    %78 = vector.load %arg3[%c6, %c0_43, %c0_44] : memref<49x1x128xf32, #tpu.memory_space<vmem>>, vector<1x1x128xf32>
    %79 = vector.shape_cast %78 : vector<1x1x128xf32> to vector<1x128xf32>
    %80 = vector.broadcast %79 : vector<1x128xf32> to vector<16x128xf32>
    %81 = arith.addf %77, %80 : vector<16x128xf32>
    %82 = arith.truncf %65 : vector<16x128xf32> to vector<16x128xbf16>
    %c3_45 = arith.constant 3 : index
    %c0_46 = arith.constant 0 : index
    %c0_47 = arith.constant 0 : index
    %83 = vector.load %arg2[%c3_45, %c0_46, %c0_47] : memref<34x128x128xbf16, #tpu.memory_space<vmem>>, vector<1x128x128xbf16>
    %84 = vector.shape_cast %83 : vector<1x128x128xbf16> to vector<128x128xbf16>
    %cst_48 = arith.constant dense<0.000000e+00> : vector<16x128xf32>
    %85 = tpu.matmul %82, %84, %cst_48 {dimension_numbers = #tpu.dot_dimension_numbers<[1], [0], [0], [1], [0, 0, 1, 1], [], []>} : vector<16x128xbf16>, vector<128x128xbf16>, vector<16x128xf32> -> vector<16x128xf32>
    %c7 = arith.constant 7 : index
    %c0_49 = arith.constant 0 : index
    %c0_50 = arith.constant 0 : index
    %86 = vector.load %arg3[%c7, %c0_49, %c0_50] : memref<49x1x128xf32, #tpu.memory_space<vmem>>, vector<1x1x128xf32>
    %87 = vector.shape_cast %86 : vector<1x1x128xf32> to vector<1x128xf32>
    %88 = vector.broadcast %87 : vector<1x128xf32> to vector<16x128xf32>
    %89 = arith.addf %85, %88 : vector<16x128xf32>
    %90 = tpu.concatenate %73, %73 in 0 : vector<16x128xf32>, vector<16x128xf32> -> vector<32x128xf32>
    %91 = arith.mulf %90, %36 : vector<32x128xf32>
    %92 = arith.truncf %91 : vector<32x128xf32> to vector<32x128xbf16>
    %93 = arith.truncf %81 : vector<16x128xf32> to vector<16x128xbf16>
    %cst_51 = arith.constant dense<0.000000e+00> : vector<32x16xf32>
    %94 = tpu.matmul %92, %93, %cst_51 {dimension_numbers = #tpu.dot_dimension_numbers<[1], [1], [0], [0], [0, 0, 1, 0], [], []>} : vector<32x128xbf16>, vector<16x128xbf16>, vector<32x16xf32> -> vector<32x16xf32>
    %95 = arith.addf %94, %39 : vector<32x16xf32>
    %cst_52 = arith.constant dense<0xFF800000> : vector<32xf32>
    %96 = vector.multi_reduction <maximumf>, %95, %cst_52 [1] : vector<32x16xf32> to vector<32xf32>
    %97 = vector.shape_cast %96 : vector<32xf32> to vector<32x1xf32>
    %98 = vector.broadcast %97 : vector<32x1xf32> to vector<32x16xf32>
    %99 = arith.subf %95, %98 : vector<32x16xf32>
    %100 = math.exp %99 : vector<32x16xf32>
    %cst_53 = arith.constant dense<0.000000e+00> : vector<32xf32>
    %101 = vector.multi_reduction <add>, %100, %cst_53 [1] : vector<32x16xf32> to vector<32xf32>
    %102 = vector.shape_cast %101 : vector<32xf32> to vector<32x1xf32>
    %103 = tpu.reciprocal %102 {approx = true} : vector<32x1xf32> -> vector<32x1xf32>
    %104 = vector.broadcast %103 : vector<32x1xf32> to vector<32x16xf32>
    %105 = arith.mulf %100, %104 : vector<32x16xf32>
    %106 = arith.truncf %105 : vector<32x16xf32> to vector<32x16xbf16>
    %107 = arith.truncf %89 : vector<16x128xf32> to vector<16x128xbf16>
    %cst_54 = arith.constant dense<0.000000e+00> : vector<32x128xf32>
    %108 = tpu.matmul %106, %107, %cst_54 {dimension_numbers = #tpu.dot_dimension_numbers<[1], [0], [0], [1], [0, 0, 1, 1], [], []>} : vector<32x16xbf16>, vector<16x128xbf16>, vector<32x128xf32> -> vector<32x128xf32>
    %109 = arith.mulf %108, %36 : vector<32x128xf32>
    %cst_55 = arith.constant dense<0.000000e+00> : vector<16x128xf32>
    %110 = tpu.matmul %37, %109, %cst_55 {dimension_numbers = #tpu.dot_dimension_numbers<[1], [0], [0], [1], [0, 0, 1, 1], [], []>} : vector<16x32xf32>, vector<32x128xf32>, vector<16x128xf32> -> vector<16x128xf32>
    %111 = arith.truncf %110 : vector<16x128xf32> to vector<16x128xbf16>
    %c4_56 = arith.constant 4 : index
    %c0_57 = arith.constant 0 : index
    %c0_58 = arith.constant 0 : index
    %112 = vector.load %arg2[%c4_56, %c0_57, %c0_58] : memref<34x128x128xbf16, #tpu.memory_space<vmem>>, vector<1x128x128xbf16>
    %113 = vector.shape_cast %112 : vector<1x128x128xbf16> to vector<128x128xbf16>
    %cst_59 = arith.constant dense<0.000000e+00> : vector<16x128xf32>
    %114 = tpu.matmul %111, %113, %cst_59 {dimension_numbers = #tpu.dot_dimension_numbers<[1], [0], [0], [1], [0, 0, 1, 1], [], []>} : vector<16x128xbf16>, vector<128x128xbf16>, vector<16x128xf32> -> vector<16x128xf32>
    %115 = arith.addf %35, %114 : vector<16x128xf32>
    %c8 = arith.constant 8 : index
    %c0_60 = arith.constant 0 : index
    %c0_61 = arith.constant 0 : index
    %116 = vector.load %arg3[%c8, %c0_60, %c0_61] : memref<49x1x128xf32, #tpu.memory_space<vmem>>, vector<1x1x128xf32>
    %117 = vector.shape_cast %116 : vector<1x1x128xf32> to vector<1x128xf32>
    %118 = vector.broadcast %117 : vector<1x128xf32> to vector<16x128xf32>
    %119 = arith.addf %115, %118 : vector<16x128xf32>
    %c9 = arith.constant 9 : index
    %c0_62 = arith.constant 0 : index
    %c0_63 = arith.constant 0 : index
    %120 = vector.load %arg3[%c9, %c0_62, %c0_63] : memref<49x1x128xf32, #tpu.memory_space<vmem>>, vector<1x1x128xf32>
    %121 = vector.shape_cast %120 : vector<1x1x128xf32> to vector<1x128xf32>
    %c10 = arith.constant 10 : index
    %c0_64 = arith.constant 0 : index
    %c0_65 = arith.constant 0 : index
    %122 = vector.load %arg3[%c10, %c0_64, %c0_65] : memref<49x1x128xf32, #tpu.memory_space<vmem>>, vector<1x1x128xf32>
    %123 = vector.shape_cast %122 : vector<1x1x128xf32> to vector<1x128xf32>
    %cst_66 = arith.constant dense<0.000000e+00> : vector<16xf32>
    %124 = vector.multi_reduction <add>, %119, %cst_66 [1] : vector<16x128xf32> to vector<16xf32>
    %125 = vector.shape_cast %124 : vector<16xf32> to vector<16x1xf32>
    %cst_67 = arith.constant 3.125000e-02 : f32
    %126 = vector.broadcast %cst_67 : f32 to vector<16x1xf32>
    %127 = arith.mulf %125, %126 : vector<16x1xf32>
    %128 = arith.mulf %119, %119 : vector<16x128xf32>
    %cst_68 = arith.constant dense<0.000000e+00> : vector<16xf32>
    %129 = vector.multi_reduction <add>, %128, %cst_68 [1] : vector<16x128xf32> to vector<16xf32>
    %130 = vector.shape_cast %129 : vector<16xf32> to vector<16x1xf32>
    %cst_69 = arith.constant 3.125000e-02 : f32
    %131 = vector.broadcast %cst_69 : f32 to vector<16x1xf32>
    %132 = arith.mulf %130, %131 : vector<16x1xf32>
    %133 = arith.mulf %127, %127 : vector<16x1xf32>
    %134 = arith.subf %132, %133 : vector<16x1xf32>
    %135 = vector.broadcast %127 : vector<16x1xf32> to vector<16x128xf32>
    %136 = arith.subf %119, %135 : vector<16x128xf32>
    %cst_70 = arith.constant 9.99999974E-6 : f32
    %137 = vector.broadcast %cst_70 : f32 to vector<16x1xf32>
    %138 = arith.addf %134, %137 : vector<16x1xf32>
    %139 = math.rsqrt %138 : vector<16x1xf32>
    %140 = vector.broadcast %139 : vector<16x1xf32> to vector<16x128xf32>
    %141 = arith.mulf %136, %140 : vector<16x128xf32>
    %142 = vector.broadcast %121 : vector<1x128xf32> to vector<16x128xf32>
    %143 = arith.mulf %141, %142 : vector<16x128xf32>
    %144 = vector.broadcast %123 : vector<1x128xf32> to vector<16x128xf32>
    %145 = arith.addf %143, %144 : vector<16x128xf32>
    %146 = arith.truncf %145 : vector<16x128xf32> to vector<16x128xbf16>
    %c5_71 = arith.constant 5 : index
    %c0_72 = arith.constant 0 : index
    %c0_73 = arith.constant 0 : index
    %147 = vector.load %arg2[%c5_71, %c0_72, %c0_73] : memref<34x128x128xbf16, #tpu.memory_space<vmem>>, vector<1x128x128xbf16>
    %148 = vector.shape_cast %147 : vector<1x128x128xbf16> to vector<128x128xbf16>
    %cst_74 = arith.constant dense<0.000000e+00> : vector<16x128xf32>
    %149 = tpu.matmul %146, %148, %cst_74 {dimension_numbers = #tpu.dot_dimension_numbers<[1], [0], [0], [1], [0, 0, 1, 1], [], []>} : vector<16x128xbf16>, vector<128x128xbf16>, vector<16x128xf32> -> vector<16x128xf32>
    %c11 = arith.constant 11 : index
    %c0_75 = arith.constant 0 : index
    %c0_76 = arith.constant 0 : index
    %150 = vector.load %arg3[%c11, %c0_75, %c0_76] : memref<49x1x128xf32, #tpu.memory_space<vmem>>, vector<1x1x128xf32>
    %151 = vector.shape_cast %150 : vector<1x1x128xf32> to vector<1x128xf32>
    %152 = vector.broadcast %151 : vector<1x128xf32> to vector<16x128xf32>
    %153 = arith.addf %149, %152 : vector<16x128xf32>
    %cst_77 = arith.constant 5.000000e-01 : f32
    %154 = vector.broadcast %cst_77 : f32 to vector<16x128xf32>
    %155 = arith.mulf %154, %153 : vector<16x128xf32>
    %cst_78 = arith.constant 0.707106769 : f32
    %156 = vector.broadcast %cst_78 : f32 to vector<16x128xf32>
    %157 = arith.mulf %153, %156 : vector<16x128xf32>
    %158 = math.erf %157 : vector<16x128xf32>
    %cst_79 = arith.constant 1.000000e+00 : f32
    %159 = vector.broadcast %cst_79 : f32 to vector<16x128xf32>
    %160 = arith.addf %159, %158 : vector<16x128xf32>
    %161 = arith.mulf %155, %160 : vector<16x128xf32>
    %162 = arith.truncf %161 : vector<16x128xf32> to vector<16x128xbf16>
    %c6_80 = arith.constant 6 : index
    %c0_81 = arith.constant 0 : index
    %c0_82 = arith.constant 0 : index
    %163 = vector.load %arg2[%c6_80, %c0_81, %c0_82] : memref<34x128x128xbf16, #tpu.memory_space<vmem>>, vector<1x128x128xbf16>
    %164 = vector.shape_cast %163 : vector<1x128x128xbf16> to vector<128x128xbf16>
    %cst_83 = arith.constant dense<0.000000e+00> : vector<16x128xf32>
    %165 = tpu.matmul %162, %164, %cst_83 {dimension_numbers = #tpu.dot_dimension_numbers<[1], [0], [0], [1], [0, 0, 1, 1], [], []>} : vector<16x128xbf16>, vector<128x128xbf16>, vector<16x128xf32> -> vector<16x128xf32>
    %166 = arith.addf %119, %165 : vector<16x128xf32>
    %c12 = arith.constant 12 : index
    %c0_84 = arith.constant 0 : index
    %c0_85 = arith.constant 0 : index
    %167 = vector.load %arg3[%c12, %c0_84, %c0_85] : memref<49x1x128xf32, #tpu.memory_space<vmem>>, vector<1x1x128xf32>
    %168 = vector.shape_cast %167 : vector<1x1x128xf32> to vector<1x128xf32>
    %169 = vector.broadcast %168 : vector<1x128xf32> to vector<16x128xf32>
    %170 = arith.addf %166, %169 : vector<16x128xf32>
    %c0_86 = arith.constant 0 : index
    %c0_87 = arith.constant 0 : index
    %171 = vector.load %arg6[%c0_86, %c0_87] : memref<32x128xf32, #tpu.memory_space<vmem>>, vector<32x128xf32>
    %c0_88 = arith.constant 0 : index
    %c0_89 = arith.constant 0 : index
    %172 = vector.load %arg8[%c0_88, %c0_89] : memref<16x32xf32, #tpu.memory_space<vmem>>, vector<16x32xf32>
    %c1_90 = arith.constant 1 : index
    %c0_91 = arith.constant 0 : index
    %c0_92 = arith.constant 0 : index
    %173 = vector.load %arg4[%c1_90, %c0_91, %c0_92] : memref<2x32x16xf32, #tpu.memory_space<vmem>>, vector<1x32x16xf32>
    %174 = vector.shape_cast %173 : vector<1x32x16xf32> to vector<32x16xf32>
    %c13 = arith.constant 13 : index
    %c0_93 = arith.constant 0 : index
    %c0_94 = arith.constant 0 : index
    %175 = vector.load %arg3[%c13, %c0_93, %c0_94] : memref<49x1x128xf32, #tpu.memory_space<vmem>>, vector<1x1x128xf32>
    %176 = vector.shape_cast %175 : vector<1x1x128xf32> to vector<1x128xf32>
    %c14 = arith.constant 14 : index
    %c0_95 = arith.constant 0 : index
    %c0_96 = arith.constant 0 : index
    %177 = vector.load %arg3[%c14, %c0_95, %c0_96] : memref<49x1x128xf32, #tpu.memory_space<vmem>>, vector<1x1x128xf32>
    %178 = vector.shape_cast %177 : vector<1x1x128xf32> to vector<1x128xf32>
    %cst_97 = arith.constant dense<0.000000e+00> : vector<16xf32>
    %179 = vector.multi_reduction <add>, %170, %cst_97 [1] : vector<16x128xf32> to vector<16xf32>
    %180 = vector.shape_cast %179 : vector<16xf32> to vector<16x1xf32>
    %cst_98 = arith.constant 3.125000e-02 : f32
    %181 = vector.broadcast %cst_98 : f32 to vector<16x1xf32>
    %182 = arith.mulf %180, %181 : vector<16x1xf32>
    %183 = arith.mulf %170, %170 : vector<16x128xf32>
    %cst_99 = arith.constant dense<0.000000e+00> : vector<16xf32>
    %184 = vector.multi_reduction <add>, %183, %cst_99 [1] : vector<16x128xf32> to vector<16xf32>
    %185 = vector.shape_cast %184 : vector<16xf32> to vector<16x1xf32>
    %cst_100 = arith.constant 3.125000e-02 : f32
    %186 = vector.broadcast %cst_100 : f32 to vector<16x1xf32>
    %187 = arith.mulf %185, %186 : vector<16x1xf32>
    %188 = arith.mulf %182, %182 : vector<16x1xf32>
    %189 = arith.subf %187, %188 : vector<16x1xf32>
    %190 = vector.broadcast %182 : vector<16x1xf32> to vector<16x128xf32>
    %191 = arith.subf %170, %190 : vector<16x128xf32>
    %cst_101 = arith.constant 9.99999974E-6 : f32
    %192 = vector.broadcast %cst_101 : f32 to vector<16x1xf32>
    %193 = arith.addf %189, %192 : vector<16x1xf32>
    %194 = math.rsqrt %193 : vector<16x1xf32>
    %195 = vector.broadcast %194 : vector<16x1xf32> to vector<16x128xf32>
    %196 = arith.mulf %191, %195 : vector<16x128xf32>
    %197 = vector.broadcast %176 : vector<1x128xf32> to vector<16x128xf32>
    %198 = arith.mulf %196, %197 : vector<16x128xf32>
    %199 = vector.broadcast %178 : vector<1x128xf32> to vector<16x128xf32>
    %200 = arith.addf %198, %199 : vector<16x128xf32>
    %201 = arith.truncf %200 : vector<16x128xf32> to vector<16x128xbf16>
    %c7_102 = arith.constant 7 : index
    %c0_103 = arith.constant 0 : index
    %c0_104 = arith.constant 0 : index
    %202 = vector.load %arg2[%c7_102, %c0_103, %c0_104] : memref<34x128x128xbf16, #tpu.memory_space<vmem>>, vector<1x128x128xbf16>
    %203 = vector.shape_cast %202 : vector<1x128x128xbf16> to vector<128x128xbf16>
    %cst_105 = arith.constant dense<0.000000e+00> : vector<16x128xf32>
    %204 = tpu.matmul %201, %203, %cst_105 {dimension_numbers = #tpu.dot_dimension_numbers<[1], [0], [0], [1], [0, 0, 1, 1], [], []>} : vector<16x128xbf16>, vector<128x128xbf16>, vector<16x128xf32> -> vector<16x128xf32>
    %c15 = arith.constant 15 : index
    %c0_106 = arith.constant 0 : index
    %c0_107 = arith.constant 0 : index
    %205 = vector.load %arg3[%c15, %c0_106, %c0_107] : memref<49x1x128xf32, #tpu.memory_space<vmem>>, vector<1x1x128xf32>
    %206 = vector.shape_cast %205 : vector<1x1x128xf32> to vector<1x128xf32>
    %207 = vector.broadcast %206 : vector<1x128xf32> to vector<16x128xf32>
    %208 = arith.addf %204, %207 : vector<16x128xf32>
    %209 = arith.truncf %200 : vector<16x128xf32> to vector<16x128xbf16>
    %c8_108 = arith.constant 8 : index
    %c0_109 = arith.constant 0 : index
    %c0_110 = arith.constant 0 : index
    %210 = vector.load %arg2[%c8_108, %c0_109, %c0_110] : memref<34x128x128xbf16, #tpu.memory_space<vmem>>, vector<1x128x128xbf16>
    %211 = vector.shape_cast %210 : vector<1x128x128xbf16> to vector<128x128xbf16>
    %cst_111 = arith.constant dense<0.000000e+00> : vector<16x128xf32>
    %212 = tpu.matmul %209, %211, %cst_111 {dimension_numbers = #tpu.dot_dimension_numbers<[1], [0], [0], [1], [0, 0, 1, 1], [], []>} : vector<16x128xbf16>, vector<128x128xbf16>, vector<16x128xf32> -> vector<16x128xf32>
    %c16 = arith.constant 16 : index
    %c0_112 = arith.constant 0 : index
    %c0_113 = arith.constant 0 : index
    %213 = vector.load %arg3[%c16, %c0_112, %c0_113] : memref<49x1x128xf32, #tpu.memory_space<vmem>>, vector<1x1x128xf32>
    %214 = vector.shape_cast %213 : vector<1x1x128xf32> to vector<1x128xf32>
    %215 = vector.broadcast %214 : vector<1x128xf32> to vector<16x128xf32>
    %216 = arith.addf %212, %215 : vector<16x128xf32>
    %217 = arith.truncf %200 : vector<16x128xf32> to vector<16x128xbf16>
    %c9_114 = arith.constant 9 : index
    %c0_115 = arith.constant 0 : index
    %c0_116 = arith.constant 0 : index
    %218 = vector.load %arg2[%c9_114, %c0_115, %c0_116] : memref<34x128x128xbf16, #tpu.memory_space<vmem>>, vector<1x128x128xbf16>
    %219 = vector.shape_cast %218 : vector<1x128x128xbf16> to vector<128x128xbf16>
    %cst_117 = arith.constant dense<0.000000e+00> : vector<16x128xf32>
    %220 = tpu.matmul %217, %219, %cst_117 {dimension_numbers = #tpu.dot_dimension_numbers<[1], [0], [0], [1], [0, 0, 1, 1], [], []>} : vector<16x128xbf16>, vector<128x128xbf16>, vector<16x128xf32> -> vector<16x128xf32>
    %c17 = arith.constant 17 : index
    %c0_118 = arith.constant 0 : index
    %c0_119 = arith.constant 0 : index
    %221 = vector.load %arg3[%c17, %c0_118, %c0_119] : memref<49x1x128xf32, #tpu.memory_space<vmem>>, vector<1x1x128xf32>
    %222 = vector.shape_cast %221 : vector<1x1x128xf32> to vector<1x128xf32>
    %223 = vector.broadcast %222 : vector<1x128xf32> to vector<16x128xf32>
    %224 = arith.addf %220, %223 : vector<16x128xf32>
    %225 = tpu.concatenate %208, %208 in 0 : vector<16x128xf32>, vector<16x128xf32> -> vector<32x128xf32>
    %226 = arith.mulf %225, %171 : vector<32x128xf32>
    %227 = arith.truncf %226 : vector<32x128xf32> to vector<32x128xbf16>
    %228 = arith.truncf %216 : vector<16x128xf32> to vector<16x128xbf16>
    %cst_120 = arith.constant dense<0.000000e+00> : vector<32x16xf32>
    %229 = tpu.matmul %227, %228, %cst_120 {dimension_numbers = #tpu.dot_dimension_numbers<[1], [1], [0], [0], [0, 0, 1, 0], [], []>} : vector<32x128xbf16>, vector<16x128xbf16>, vector<32x16xf32> -> vector<32x16xf32>
    %230 = arith.addf %229, %174 : vector<32x16xf32>
    %cst_121 = arith.constant dense<0xFF800000> : vector<32xf32>
    %231 = vector.multi_reduction <maximumf>, %230, %cst_121 [1] : vector<32x16xf32> to vector<32xf32>
    %232 = vector.shape_cast %231 : vector<32xf32> to vector<32x1xf32>
    %233 = vector.broadcast %232 : vector<32x1xf32> to vector<32x16xf32>
    %234 = arith.subf %230, %233 : vector<32x16xf32>
    %235 = math.exp %234 : vector<32x16xf32>
    %cst_122 = arith.constant dense<0.000000e+00> : vector<32xf32>
    %236 = vector.multi_reduction <add>, %235, %cst_122 [1] : vector<32x16xf32> to vector<32xf32>
    %237 = vector.shape_cast %236 : vector<32xf32> to vector<32x1xf32>
    %238 = tpu.reciprocal %237 {approx = true} : vector<32x1xf32> -> vector<32x1xf32>
    %239 = vector.broadcast %238 : vector<32x1xf32> to vector<32x16xf32>
    %240 = arith.mulf %235, %239 : vector<32x16xf32>
    %241 = arith.truncf %240 : vector<32x16xf32> to vector<32x16xbf16>
    %242 = arith.truncf %224 : vector<16x128xf32> to vector<16x128xbf16>
    %cst_123 = arith.constant dense<0.000000e+00> : vector<32x128xf32>
    %243 = tpu.matmul %241, %242, %cst_123 {dimension_numbers = #tpu.dot_dimension_numbers<[1], [0], [0], [1], [0, 0, 1, 1], [], []>} : vector<32x16xbf16>, vector<16x128xbf16>, vector<32x128xf32> -> vector<32x128xf32>
    %244 = arith.mulf %243, %171 : vector<32x128xf32>
    %cst_124 = arith.constant dense<0.000000e+00> : vector<16x128xf32>
    %245 = tpu.matmul %172, %244, %cst_124 {dimension_numbers = #tpu.dot_dimension_numbers<[1], [0], [0], [1], [0, 0, 1, 1], [], []>} : vector<16x32xf32>, vector<32x128xf32>, vector<16x128xf32> -> vector<16x128xf32>
    %246 = arith.truncf %245 : vector<16x128xf32> to vector<16x128xbf16>
    %c10_125 = arith.constant 10 : index
    %c0_126 = arith.constant 0 : index
    %c0_127 = arith.constant 0 : index
    %247 = vector.load %arg2[%c10_125, %c0_126, %c0_127] : memref<34x128x128xbf16, #tpu.memory_space<vmem>>, vector<1x128x128xbf16>
    %248 = vector.shape_cast %247 : vector<1x128x128xbf16> to vector<128x128xbf16>
    %cst_128 = arith.constant dense<0.000000e+00> : vector<16x128xf32>
    %249 = tpu.matmul %246, %248, %cst_128 {dimension_numbers = #tpu.dot_dimension_numbers<[1], [0], [0], [1], [0, 0, 1, 1], [], []>} : vector<16x128xbf16>, vector<128x128xbf16>, vector<16x128xf32> -> vector<16x128xf32>
    %250 = arith.addf %170, %249 : vector<16x128xf32>
    %c18 = arith.constant 18 : index
    %c0_129 = arith.constant 0 : index
    %c0_130 = arith.constant 0 : index
    %251 = vector.load %arg3[%c18, %c0_129, %c0_130] : memref<49x1x128xf32, #tpu.memory_space<vmem>>, vector<1x1x128xf32>
    %252 = vector.shape_cast %251 : vector<1x1x128xf32> to vector<1x128xf32>
    %253 = vector.broadcast %252 : vector<1x128xf32> to vector<16x128xf32>
    %254 = arith.addf %250, %253 : vector<16x128xf32>
    %c19 = arith.constant 19 : index
    %c0_131 = arith.constant 0 : index
    %c0_132 = arith.constant 0 : index
    %255 = vector.load %arg3[%c19, %c0_131, %c0_132] : memref<49x1x128xf32, #tpu.memory_space<vmem>>, vector<1x1x128xf32>
    %256 = vector.shape_cast %255 : vector<1x1x128xf32> to vector<1x128xf32>
    %c20 = arith.constant 20 : index
    %c0_133 = arith.constant 0 : index
    %c0_134 = arith.constant 0 : index
    %257 = vector.load %arg3[%c20, %c0_133, %c0_134] : memref<49x1x128xf32, #tpu.memory_space<vmem>>, vector<1x1x128xf32>
    %258 = vector.shape_cast %257 : vector<1x1x128xf32> to vector<1x128xf32>
    %cst_135 = arith.constant dense<0.000000e+00> : vector<16xf32>
    %259 = vector.multi_reduction <add>, %254, %cst_135 [1] : vector<16x128xf32> to vector<16xf32>
    %260 = vector.shape_cast %259 : vector<16xf32> to vector<16x1xf32>
    %cst_136 = arith.constant 3.125000e-02 : f32
    %261 = vector.broadcast %cst_136 : f32 to vector<16x1xf32>
    %262 = arith.mulf %260, %261 : vector<16x1xf32>
    %263 = arith.mulf %254, %254 : vector<16x128xf32>
    %cst_137 = arith.constant dense<0.000000e+00> : vector<16xf32>
    %264 = vector.multi_reduction <add>, %263, %cst_137 [1] : vector<16x128xf32> to vector<16xf32>
    %265 = vector.shape_cast %264 : vector<16xf32> to vector<16x1xf32>
    %cst_138 = arith.constant 3.125000e-02 : f32
    %266 = vector.broadcast %cst_138 : f32 to vector<16x1xf32>
    %267 = arith.mulf %265, %266 : vector<16x1xf32>
    %268 = arith.mulf %262, %262 : vector<16x1xf32>
    %269 = arith.subf %267, %268 : vector<16x1xf32>
    %270 = vector.broadcast %262 : vector<16x1xf32> to vector<16x128xf32>
    %271 = arith.subf %254, %270 : vector<16x128xf32>
    %cst_139 = arith.constant 9.99999974E-6 : f32
    %272 = vector.broadcast %cst_139 : f32 to vector<16x1xf32>
    %273 = arith.addf %269, %272 : vector<16x1xf32>
    %274 = math.rsqrt %273 : vector<16x1xf32>
    %275 = vector.broadcast %274 : vector<16x1xf32> to vector<16x128xf32>
    %276 = arith.mulf %271, %275 : vector<16x128xf32>
    %277 = vector.broadcast %256 : vector<1x128xf32> to vector<16x128xf32>
    %278 = arith.mulf %276, %277 : vector<16x128xf32>
    %279 = vector.broadcast %258 : vector<1x128xf32> to vector<16x128xf32>
    %280 = arith.addf %278, %279 : vector<16x128xf32>
    %281 = arith.truncf %280 : vector<16x128xf32> to vector<16x128xbf16>
    %c11_140 = arith.constant 11 : index
    %c0_141 = arith.constant 0 : index
    %c0_142 = arith.constant 0 : index
    %282 = vector.load %arg2[%c11_140, %c0_141, %c0_142] : memref<34x128x128xbf16, #tpu.memory_space<vmem>>, vector<1x128x128xbf16>
    %283 = vector.shape_cast %282 : vector<1x128x128xbf16> to vector<128x128xbf16>
    %cst_143 = arith.constant dense<0.000000e+00> : vector<16x128xf32>
    %284 = tpu.matmul %281, %283, %cst_143 {dimension_numbers = #tpu.dot_dimension_numbers<[1], [0], [0], [1], [0, 0, 1, 1], [], []>} : vector<16x128xbf16>, vector<128x128xbf16>, vector<16x128xf32> -> vector<16x128xf32>
    %c21 = arith.constant 21 : index
    %c0_144 = arith.constant 0 : index
    %c0_145 = arith.constant 0 : index
    %285 = vector.load %arg3[%c21, %c0_144, %c0_145] : memref<49x1x128xf32, #tpu.memory_space<vmem>>, vector<1x1x128xf32>
    %286 = vector.shape_cast %285 : vector<1x1x128xf32> to vector<1x128xf32>
    %287 = vector.broadcast %286 : vector<1x128xf32> to vector<16x128xf32>
    %288 = arith.addf %284, %287 : vector<16x128xf32>
    %cst_146 = arith.constant 5.000000e-01 : f32
    %289 = vector.broadcast %cst_146 : f32 to vector<16x128xf32>
    %290 = arith.mulf %289, %288 : vector<16x128xf32>
    %cst_147 = arith.constant 0.707106769 : f32
    %291 = vector.broadcast %cst_147 : f32 to vector<16x128xf32>
    %292 = arith.mulf %288, %291 : vector<16x128xf32>
    %293 = math.erf %292 : vector<16x128xf32>
    %cst_148 = arith.constant 1.000000e+00 : f32
    %294 = vector.broadcast %cst_148 : f32 to vector<16x128xf32>
    %295 = arith.addf %294, %293 : vector<16x128xf32>
    %296 = arith.mulf %290, %295 : vector<16x128xf32>
    %297 = arith.truncf %296 : vector<16x128xf32> to vector<16x128xbf16>
    %c12_149 = arith.constant 12 : index
    %c0_150 = arith.constant 0 : index
    %c0_151 = arith.constant 0 : index
    %298 = vector.load %arg2[%c12_149, %c0_150, %c0_151] : memref<34x128x128xbf16, #tpu.memory_space<vmem>>, vector<1x128x128xbf16>
    %299 = vector.shape_cast %298 : vector<1x128x128xbf16> to vector<128x128xbf16>
    %cst_152 = arith.constant dense<0.000000e+00> : vector<16x128xf32>
    %300 = tpu.matmul %297, %299, %cst_152 {dimension_numbers = #tpu.dot_dimension_numbers<[1], [0], [0], [1], [0, 0, 1, 1], [], []>} : vector<16x128xbf16>, vector<128x128xbf16>, vector<16x128xf32> -> vector<16x128xf32>
    %301 = arith.addf %254, %300 : vector<16x128xf32>
    %c22 = arith.constant 22 : index
    %c0_153 = arith.constant 0 : index
    %c0_154 = arith.constant 0 : index
    %302 = vector.load %arg3[%c22, %c0_153, %c0_154] : memref<49x1x128xf32, #tpu.memory_space<vmem>>, vector<1x1x128xf32>
    %303 = vector.shape_cast %302 : vector<1x1x128xf32> to vector<1x128xf32>
    %304 = vector.broadcast %303 : vector<1x128xf32> to vector<16x128xf32>
    %305 = arith.addf %301, %304 : vector<16x128xf32>
    %c0_155 = arith.constant 0 : index
    %c0_156 = arith.constant 0 : index
    %c0_157 = arith.constant 0 : index
    %306 = vector.load %arg10[%c0_155, %c0_156, %c0_157] : memref<4x4x16xf32, #tpu.memory_space<vmem>>, vector<1x4x16xf32>
    %307 = vector.shape_cast %306 : vector<1x4x16xf32> to vector<4x16xf32>
    %cst_158 = arith.constant dense<0.000000e+00> : vector<4x128xf32>
    %308 = tpu.matmul %307, %305, %cst_158 {dimension_numbers = #tpu.dot_dimension_numbers<[1], [0], [0], [1], [0, 0, 1, 1], [], []>} : vector<4x16xf32>, vector<16x128xf32>, vector<4x128xf32> -> vector<4x128xf32>
    %c1_159 = arith.constant 1 : index
    %c0_160 = arith.constant 0 : index
    %c0_161 = arith.constant 0 : index
    %309 = vector.load %arg10[%c1_159, %c0_160, %c0_161] : memref<4x4x16xf32, #tpu.memory_space<vmem>>, vector<1x4x16xf32>
    %310 = vector.shape_cast %309 : vector<1x4x16xf32> to vector<4x16xf32>
    %cst_162 = arith.constant dense<0.000000e+00> : vector<4x128xf32>
    %311 = tpu.matmul %310, %305, %cst_162 {dimension_numbers = #tpu.dot_dimension_numbers<[1], [0], [0], [1], [0, 0, 1, 1], [], []>} : vector<4x16xf32>, vector<16x128xf32>, vector<4x128xf32> -> vector<4x128xf32>
    %c2_163 = arith.constant 2 : index
    %c0_164 = arith.constant 0 : index
    %c0_165 = arith.constant 0 : index
    %312 = vector.load %arg10[%c2_163, %c0_164, %c0_165] : memref<4x4x16xf32, #tpu.memory_space<vmem>>, vector<1x4x16xf32>
    %313 = vector.shape_cast %312 : vector<1x4x16xf32> to vector<4x16xf32>
    %cst_166 = arith.constant dense<0.000000e+00> : vector<4x128xf32>
    %314 = tpu.matmul %313, %305, %cst_166 {dimension_numbers = #tpu.dot_dimension_numbers<[1], [0], [0], [1], [0, 0, 1, 1], [], []>} : vector<4x16xf32>, vector<16x128xf32>, vector<4x128xf32> -> vector<4x128xf32>
    %c3_167 = arith.constant 3 : index
    %c0_168 = arith.constant 0 : index
    %c0_169 = arith.constant 0 : index
    %315 = vector.load %arg10[%c3_167, %c0_168, %c0_169] : memref<4x4x16xf32, #tpu.memory_space<vmem>>, vector<1x4x16xf32>
    %316 = vector.shape_cast %315 : vector<1x4x16xf32> to vector<4x16xf32>
    %cst_170 = arith.constant dense<0.000000e+00> : vector<4x128xf32>
    %317 = tpu.matmul %316, %305, %cst_170 {dimension_numbers = #tpu.dot_dimension_numbers<[1], [0], [0], [1], [0, 0, 1, 1], [], []>} : vector<4x16xf32>, vector<16x128xf32>, vector<4x128xf32> -> vector<4x128xf32>
    %cst_171 = arith.constant dense<0.000000e+00> : vector<4xf32>
    %318 = vector.multi_reduction <add>, %308, %cst_171 [1] : vector<4x128xf32> to vector<4xf32>
    %319 = vector.shape_cast %318 : vector<4xf32> to vector<4x1xf32>
    %cst_172 = arith.constant dense<0.000000e+00> : vector<4xf32>
    %320 = vector.multi_reduction <add>, %311, %cst_172 [1] : vector<4x128xf32> to vector<4xf32>
    %321 = vector.shape_cast %320 : vector<4xf32> to vector<4x1xf32>
    %322 = arith.addf %319, %321 : vector<4x1xf32>
    %cst_173 = arith.constant dense<0.000000e+00> : vector<4xf32>
    %323 = vector.multi_reduction <add>, %314, %cst_173 [1] : vector<4x128xf32> to vector<4xf32>
    %324 = vector.shape_cast %323 : vector<4xf32> to vector<4x1xf32>
    %325 = arith.addf %322, %324 : vector<4x1xf32>
    %cst_174 = arith.constant dense<0.000000e+00> : vector<4xf32>
    %326 = vector.multi_reduction <add>, %317, %cst_174 [1] : vector<4x128xf32> to vector<4xf32>
    %327 = vector.shape_cast %326 : vector<4xf32> to vector<4x1xf32>
    %328 = arith.addf %325, %327 : vector<4x1xf32>
    %cst_175 = arith.constant 7.812500e-03 : f32
    %329 = vector.broadcast %cst_175 : f32 to vector<4x1xf32>
    %330 = arith.mulf %328, %329 : vector<4x1xf32>
    %331 = arith.mulf %308, %308 : vector<4x128xf32>
    %cst_176 = arith.constant dense<0.000000e+00> : vector<4xf32>
    %332 = vector.multi_reduction <add>, %331, %cst_176 [1] : vector<4x128xf32> to vector<4xf32>
    %333 = vector.shape_cast %332 : vector<4xf32> to vector<4x1xf32>
    %334 = arith.mulf %311, %311 : vector<4x128xf32>
    %cst_177 = arith.constant dense<0.000000e+00> : vector<4xf32>
    %335 = vector.multi_reduction <add>, %334, %cst_177 [1] : vector<4x128xf32> to vector<4xf32>
    %336 = vector.shape_cast %335 : vector<4xf32> to vector<4x1xf32>
    %337 = arith.addf %333, %336 : vector<4x1xf32>
    %338 = arith.mulf %314, %314 : vector<4x128xf32>
    %cst_178 = arith.constant dense<0.000000e+00> : vector<4xf32>
    %339 = vector.multi_reduction <add>, %338, %cst_178 [1] : vector<4x128xf32> to vector<4xf32>
    %340 = vector.shape_cast %339 : vector<4xf32> to vector<4x1xf32>
    %341 = arith.addf %337, %340 : vector<4x1xf32>
    %342 = arith.mulf %317, %317 : vector<4x128xf32>
    %cst_179 = arith.constant dense<0.000000e+00> : vector<4xf32>
    %343 = vector.multi_reduction <add>, %342, %cst_179 [1] : vector<4x128xf32> to vector<4xf32>
    %344 = vector.shape_cast %343 : vector<4xf32> to vector<4x1xf32>
    %345 = arith.addf %341, %344 : vector<4x1xf32>
    %cst_180 = arith.constant 7.812500e-03 : f32
    %346 = vector.broadcast %cst_180 : f32 to vector<4x1xf32>
    %347 = arith.mulf %345, %346 : vector<4x1xf32>
    %348 = arith.mulf %330, %330 : vector<4x1xf32>
    %349 = arith.subf %347, %348 : vector<4x1xf32>
    %cst_181 = arith.constant 9.99999974E-6 : f32
    %350 = vector.broadcast %cst_181 : f32 to vector<4x1xf32>
    %351 = arith.addf %349, %350 : vector<4x1xf32>
    %352 = math.rsqrt %351 : vector<4x1xf32>
    %353 = vector.broadcast %330 : vector<4x1xf32> to vector<4x128xf32>
    %354 = arith.subf %308, %353 : vector<4x128xf32>
    %355 = arith.truncf %354 : vector<4x128xf32> to vector<4x128xbf16>
    %c13_182 = arith.constant 13 : index
    %c0_183 = arith.constant 0 : index
    %c0_184 = arith.constant 0 : index
    %356 = vector.load %arg2[%c13_182, %c0_183, %c0_184] : memref<34x128x128xbf16, #tpu.memory_space<vmem>>, vector<1x128x128xbf16>
    %357 = vector.shape_cast %356 : vector<1x128x128xbf16> to vector<128x128xbf16>
    %cst_185 = arith.constant dense<0.000000e+00> : vector<4x128xf32>
    %358 = tpu.matmul %355, %357, %cst_185 {dimension_numbers = #tpu.dot_dimension_numbers<[1], [0], [0], [1], [0, 0, 1, 1], [], []>} : vector<4x128xbf16>, vector<128x128xbf16>, vector<4x128xf32> -> vector<4x128xf32>
    %359 = vector.broadcast %330 : vector<4x1xf32> to vector<4x128xf32>
    %360 = arith.subf %311, %359 : vector<4x128xf32>
    %361 = arith.truncf %360 : vector<4x128xf32> to vector<4x128xbf16>
    %c14_186 = arith.constant 14 : index
    %c0_187 = arith.constant 0 : index
    %c0_188 = arith.constant 0 : index
    %362 = vector.load %arg2[%c14_186, %c0_187, %c0_188] : memref<34x128x128xbf16, #tpu.memory_space<vmem>>, vector<1x128x128xbf16>
    %363 = vector.shape_cast %362 : vector<1x128x128xbf16> to vector<128x128xbf16>
    %cst_189 = arith.constant dense<0.000000e+00> : vector<4x128xf32>
    %364 = tpu.matmul %361, %363, %cst_189 {dimension_numbers = #tpu.dot_dimension_numbers<[1], [0], [0], [1], [0, 0, 1, 1], [], []>} : vector<4x128xbf16>, vector<128x128xbf16>, vector<4x128xf32> -> vector<4x128xf32>
    %365 = arith.addf %358, %364 : vector<4x128xf32>
    %366 = vector.broadcast %330 : vector<4x1xf32> to vector<4x128xf32>
    %367 = arith.subf %314, %366 : vector<4x128xf32>
    %368 = arith.truncf %367 : vector<4x128xf32> to vector<4x128xbf16>
    %c15_190 = arith.constant 15 : index
    %c0_191 = arith.constant 0 : index
    %c0_192 = arith.constant 0 : index
    %369 = vector.load %arg2[%c15_190, %c0_191, %c0_192] : memref<34x128x128xbf16, #tpu.memory_space<vmem>>, vector<1x128x128xbf16>
    %370 = vector.shape_cast %369 : vector<1x128x128xbf16> to vector<128x128xbf16>
    %cst_193 = arith.constant dense<0.000000e+00> : vector<4x128xf32>
    %371 = tpu.matmul %368, %370, %cst_193 {dimension_numbers = #tpu.dot_dimension_numbers<[1], [0], [0], [1], [0, 0, 1, 1], [], []>} : vector<4x128xbf16>, vector<128x128xbf16>, vector<4x128xf32> -> vector<4x128xf32>
    %372 = arith.addf %365, %371 : vector<4x128xf32>
    %373 = vector.broadcast %330 : vector<4x1xf32> to vector<4x128xf32>
    %374 = arith.subf %317, %373 : vector<4x128xf32>
    %375 = arith.truncf %374 : vector<4x128xf32> to vector<4x128xbf16>
    %c16_194 = arith.constant 16 : index
    %c0_195 = arith.constant 0 : index
    %c0_196 = arith.constant 0 : index
    %376 = vector.load %arg2[%c16_194, %c0_195, %c0_196] : memref<34x128x128xbf16, #tpu.memory_space<vmem>>, vector<1x128x128xbf16>
    %377 = vector.shape_cast %376 : vector<1x128x128xbf16> to vector<128x128xbf16>
    %cst_197 = arith.constant dense<0.000000e+00> : vector<4x128xf32>
    %378 = tpu.matmul %375, %377, %cst_197 {dimension_numbers = #tpu.dot_dimension_numbers<[1], [0], [0], [1], [0, 0, 1, 1], [], []>} : vector<4x128xbf16>, vector<128x128xbf16>, vector<4x128xf32> -> vector<4x128xf32>
    %379 = arith.addf %372, %378 : vector<4x128xf32>
    %380 = vector.broadcast %352 : vector<4x1xf32> to vector<4x128xf32>
    %381 = arith.mulf %379, %380 : vector<4x128xf32>
    %c23 = arith.constant 23 : index
    %c0_198 = arith.constant 0 : index
    %c0_199 = arith.constant 0 : index
    %382 = vector.load %arg3[%c23, %c0_198, %c0_199] : memref<49x1x128xf32, #tpu.memory_space<vmem>>, vector<1x1x128xf32>
    %383 = vector.shape_cast %382 : vector<1x1x128xf32> to vector<1x128xf32>
    %384 = vector.broadcast %383 : vector<1x128xf32> to vector<4x128xf32>
    %385 = arith.addf %381, %384 : vector<4x128xf32>
    %c0_200 = arith.constant 0 : index
    %c0_201 = arith.constant 0 : index
    %386 = vector.load %arg7[%c0_200, %c0_201] : memref<16x128xf32, #tpu.memory_space<vmem>>, vector<16x128xf32>
    %c0_202 = arith.constant 0 : index
    %c0_203 = arith.constant 0 : index
    %387 = vector.load %arg9[%c0_202, %c0_203] : memref<4x16xf32, #tpu.memory_space<vmem>>, vector<4x16xf32>
    %c0_204 = arith.constant 0 : index
    %c0_205 = arith.constant 0 : index
    %c0_206 = arith.constant 0 : index
    %388 = vector.load %arg5[%c0_204, %c0_205, %c0_206] : memref<2x16x4xf32, #tpu.memory_space<vmem>>, vector<1x16x4xf32>
    %389 = vector.shape_cast %388 : vector<1x16x4xf32> to vector<16x4xf32>
    %c24 = arith.constant 24 : index
    %c0_207 = arith.constant 0 : index
    %c0_208 = arith.constant 0 : index
    %390 = vector.load %arg3[%c24, %c0_207, %c0_208] : memref<49x1x128xf32, #tpu.memory_space<vmem>>, vector<1x1x128xf32>
    %391 = vector.shape_cast %390 : vector<1x1x128xf32> to vector<1x128xf32>
    %c25 = arith.constant 25 : index
    %c0_209 = arith.constant 0 : index
    %c0_210 = arith.constant 0 : index
    %392 = vector.load %arg3[%c25, %c0_209, %c0_210] : memref<49x1x128xf32, #tpu.memory_space<vmem>>, vector<1x1x128xf32>
    %393 = vector.shape_cast %392 : vector<1x1x128xf32> to vector<1x128xf32>
    %cst_211 = arith.constant dense<0.000000e+00> : vector<4xf32>
    %394 = vector.multi_reduction <add>, %385, %cst_211 [1] : vector<4x128xf32> to vector<4xf32>
    %395 = vector.shape_cast %394 : vector<4xf32> to vector<4x1xf32>
    %cst_212 = arith.constant 1.562500e-02 : f32
    %396 = vector.broadcast %cst_212 : f32 to vector<4x1xf32>
    %397 = arith.mulf %395, %396 : vector<4x1xf32>
    %398 = arith.mulf %385, %385 : vector<4x128xf32>
    %cst_213 = arith.constant dense<0.000000e+00> : vector<4xf32>
    %399 = vector.multi_reduction <add>, %398, %cst_213 [1] : vector<4x128xf32> to vector<4xf32>
    %400 = vector.shape_cast %399 : vector<4xf32> to vector<4x1xf32>
    %cst_214 = arith.constant 1.562500e-02 : f32
    %401 = vector.broadcast %cst_214 : f32 to vector<4x1xf32>
    %402 = arith.mulf %400, %401 : vector<4x1xf32>
    %403 = arith.mulf %397, %397 : vector<4x1xf32>
    %404 = arith.subf %402, %403 : vector<4x1xf32>
    %405 = vector.broadcast %397 : vector<4x1xf32> to vector<4x128xf32>
    %406 = arith.subf %385, %405 : vector<4x128xf32>
    %cst_215 = arith.constant 9.99999974E-6 : f32
    %407 = vector.broadcast %cst_215 : f32 to vector<4x1xf32>
    %408 = arith.addf %404, %407 : vector<4x1xf32>
    %409 = math.rsqrt %408 : vector<4x1xf32>
    %410 = vector.broadcast %409 : vector<4x1xf32> to vector<4x128xf32>
    %411 = arith.mulf %406, %410 : vector<4x128xf32>
    %412 = vector.broadcast %391 : vector<1x128xf32> to vector<4x128xf32>
    %413 = arith.mulf %411, %412 : vector<4x128xf32>
    %414 = vector.broadcast %393 : vector<1x128xf32> to vector<4x128xf32>
    %415 = arith.addf %413, %414 : vector<4x128xf32>
    %416 = arith.truncf %415 : vector<4x128xf32> to vector<4x128xbf16>
    %c17_216 = arith.constant 17 : index
    %c0_217 = arith.constant 0 : index
    %c0_218 = arith.constant 0 : index
    %417 = vector.load %arg2[%c17_216, %c0_217, %c0_218] : memref<34x128x128xbf16, #tpu.memory_space<vmem>>, vector<1x128x128xbf16>
    %418 = vector.shape_cast %417 : vector<1x128x128xbf16> to vector<128x128xbf16>
    %cst_219 = arith.constant dense<0.000000e+00> : vector<4x128xf32>
    %419 = tpu.matmul %416, %418, %cst_219 {dimension_numbers = #tpu.dot_dimension_numbers<[1], [0], [0], [1], [0, 0, 1, 1], [], []>} : vector<4x128xbf16>, vector<128x128xbf16>, vector<4x128xf32> -> vector<4x128xf32>
    %c26 = arith.constant 26 : index
    %c0_220 = arith.constant 0 : index
    %c0_221 = arith.constant 0 : index
    %420 = vector.load %arg3[%c26, %c0_220, %c0_221] : memref<49x1x128xf32, #tpu.memory_space<vmem>>, vector<1x1x128xf32>
    %421 = vector.shape_cast %420 : vector<1x1x128xf32> to vector<1x128xf32>
    %422 = vector.broadcast %421 : vector<1x128xf32> to vector<4x128xf32>
    %423 = arith.addf %419, %422 : vector<4x128xf32>
    %424 = arith.truncf %415 : vector<4x128xf32> to vector<4x128xbf16>
    %c18_222 = arith.constant 18 : index
    %c0_223 = arith.constant 0 : index
    %c0_224 = arith.constant 0 : index
    %425 = vector.load %arg2[%c18_222, %c0_223, %c0_224] : memref<34x128x128xbf16, #tpu.memory_space<vmem>>, vector<1x128x128xbf16>
    %426 = vector.shape_cast %425 : vector<1x128x128xbf16> to vector<128x128xbf16>
    %cst_225 = arith.constant dense<0.000000e+00> : vector<4x128xf32>
    %427 = tpu.matmul %424, %426, %cst_225 {dimension_numbers = #tpu.dot_dimension_numbers<[1], [0], [0], [1], [0, 0, 1, 1], [], []>} : vector<4x128xbf16>, vector<128x128xbf16>, vector<4x128xf32> -> vector<4x128xf32>
    %c27 = arith.constant 27 : index
    %c0_226 = arith.constant 0 : index
    %c0_227 = arith.constant 0 : index
    %428 = vector.load %arg3[%c27, %c0_226, %c0_227] : memref<49x1x128xf32, #tpu.memory_space<vmem>>, vector<1x1x128xf32>
    %429 = vector.shape_cast %428 : vector<1x1x128xf32> to vector<1x128xf32>
    %430 = vector.broadcast %429 : vector<1x128xf32> to vector<4x128xf32>
    %431 = arith.addf %427, %430 : vector<4x128xf32>
    %432 = arith.truncf %415 : vector<4x128xf32> to vector<4x128xbf16>
    %c19_228 = arith.constant 19 : index
    %c0_229 = arith.constant 0 : index
    %c0_230 = arith.constant 0 : index
    %433 = vector.load %arg2[%c19_228, %c0_229, %c0_230] : memref<34x128x128xbf16, #tpu.memory_space<vmem>>, vector<1x128x128xbf16>
    %434 = vector.shape_cast %433 : vector<1x128x128xbf16> to vector<128x128xbf16>
    %cst_231 = arith.constant dense<0.000000e+00> : vector<4x128xf32>
    %435 = tpu.matmul %432, %434, %cst_231 {dimension_numbers = #tpu.dot_dimension_numbers<[1], [0], [0], [1], [0, 0, 1, 1], [], []>} : vector<4x128xbf16>, vector<128x128xbf16>, vector<4x128xf32> -> vector<4x128xf32>
    %c28 = arith.constant 28 : index
    %c0_232 = arith.constant 0 : index
    %c0_233 = arith.constant 0 : index
    %436 = vector.load %arg3[%c28, %c0_232, %c0_233] : memref<49x1x128xf32, #tpu.memory_space<vmem>>, vector<1x1x128xf32>
    %437 = vector.shape_cast %436 : vector<1x1x128xf32> to vector<1x128xf32>
    %438 = vector.broadcast %437 : vector<1x128xf32> to vector<4x128xf32>
    %439 = arith.addf %435, %438 : vector<4x128xf32>
    %440 = tpu.concatenate %423, %423, %423, %423 in 0 : vector<4x128xf32>, vector<4x128xf32>, vector<4x128xf32>, vector<4x128xf32> -> vector<16x128xf32>
    %441 = arith.mulf %440, %386 : vector<16x128xf32>
    %442 = arith.truncf %441 : vector<16x128xf32> to vector<16x128xbf16>
    %443 = arith.truncf %431 : vector<4x128xf32> to vector<4x128xbf16>
    %cst_234 = arith.constant dense<0.000000e+00> : vector<16x4xf32>
    %444 = tpu.matmul %442, %443, %cst_234 {dimension_numbers = #tpu.dot_dimension_numbers<[1], [1], [0], [0], [0, 0, 1, 0], [], []>} : vector<16x128xbf16>, vector<4x128xbf16>, vector<16x4xf32> -> vector<16x4xf32>
    %445 = arith.addf %444, %389 : vector<16x4xf32>
    %cst_235 = arith.constant dense<0xFF800000> : vector<16xf32>
    %446 = vector.multi_reduction <maximumf>, %445, %cst_235 [1] : vector<16x4xf32> to vector<16xf32>
    %447 = vector.shape_cast %446 : vector<16xf32> to vector<16x1xf32>
    %448 = vector.broadcast %447 : vector<16x1xf32> to vector<16x4xf32>
    %449 = arith.subf %445, %448 : vector<16x4xf32>
    %450 = math.exp %449 : vector<16x4xf32>
    %cst_236 = arith.constant dense<0.000000e+00> : vector<16xf32>
    %451 = vector.multi_reduction <add>, %450, %cst_236 [1] : vector<16x4xf32> to vector<16xf32>
    %452 = vector.shape_cast %451 : vector<16xf32> to vector<16x1xf32>
    %453 = tpu.reciprocal %452 {approx = true} : vector<16x1xf32> -> vector<16x1xf32>
    %454 = vector.broadcast %453 : vector<16x1xf32> to vector<16x4xf32>
    %455 = arith.mulf %450, %454 : vector<16x4xf32>
    %456 = arith.truncf %455 : vector<16x4xf32> to vector<16x4xbf16>
    %457 = arith.truncf %439 : vector<4x128xf32> to vector<4x128xbf16>
    %cst_237 = arith.constant dense<0.000000e+00> : vector<16x128xf32>
    %458 = tpu.matmul %456, %457, %cst_237 {dimension_numbers = #tpu.dot_dimension_numbers<[1], [0], [0], [1], [0, 0, 1, 1], [], []>} : vector<16x4xbf16>, vector<4x128xbf16>, vector<16x128xf32> -> vector<16x128xf32>
    %459 = arith.mulf %458, %386 : vector<16x128xf32>
    %cst_238 = arith.constant dense<0.000000e+00> : vector<4x128xf32>
    %460 = tpu.matmul %387, %459, %cst_238 {dimension_numbers = #tpu.dot_dimension_numbers<[1], [0], [0], [1], [0, 0, 1, 1], [], []>} : vector<4x16xf32>, vector<16x128xf32>, vector<4x128xf32> -> vector<4x128xf32>
    %461 = arith.truncf %460 : vector<4x128xf32> to vector<4x128xbf16>
    %c20_239 = arith.constant 20 : index
    %c0_240 = arith.constant 0 : index
    %c0_241 = arith.constant 0 : index
    %462 = vector.load %arg2[%c20_239, %c0_240, %c0_241] : memref<34x128x128xbf16, #tpu.memory_space<vmem>>, vector<1x128x128xbf16>
    %463 = vector.shape_cast %462 : vector<1x128x128xbf16> to vector<128x128xbf16>
    %cst_242 = arith.constant dense<0.000000e+00> : vector<4x128xf32>
    %464 = tpu.matmul %461, %463, %cst_242 {dimension_numbers = #tpu.dot_dimension_numbers<[1], [0], [0], [1], [0, 0, 1, 1], [], []>} : vector<4x128xbf16>, vector<128x128xbf16>, vector<4x128xf32> -> vector<4x128xf32>
    %465 = arith.addf %385, %464 : vector<4x128xf32>
    %c29 = arith.constant 29 : index
    %c0_243 = arith.constant 0 : index
    %c0_244 = arith.constant 0 : index
    %466 = vector.load %arg3[%c29, %c0_243, %c0_244] : memref<49x1x128xf32, #tpu.memory_space<vmem>>, vector<1x1x128xf32>
    %467 = vector.shape_cast %466 : vector<1x1x128xf32> to vector<1x128xf32>
    %468 = vector.broadcast %467 : vector<1x128xf32> to vector<4x128xf32>
    %469 = arith.addf %465, %468 : vector<4x128xf32>
    %c30 = arith.constant 30 : index
    %c0_245 = arith.constant 0 : index
    %c0_246 = arith.constant 0 : index
    %470 = vector.load %arg3[%c30, %c0_245, %c0_246] : memref<49x1x128xf32, #tpu.memory_space<vmem>>, vector<1x1x128xf32>
    %471 = vector.shape_cast %470 : vector<1x1x128xf32> to vector<1x128xf32>
    %c31 = arith.constant 31 : index
    %c0_247 = arith.constant 0 : index
    %c0_248 = arith.constant 0 : index
    %472 = vector.load %arg3[%c31, %c0_247, %c0_248] : memref<49x1x128xf32, #tpu.memory_space<vmem>>, vector<1x1x128xf32>
    %473 = vector.shape_cast %472 : vector<1x1x128xf32> to vector<1x128xf32>
    %cst_249 = arith.constant dense<0.000000e+00> : vector<4xf32>
    %474 = vector.multi_reduction <add>, %469, %cst_249 [1] : vector<4x128xf32> to vector<4xf32>
    %475 = vector.shape_cast %474 : vector<4xf32> to vector<4x1xf32>
    %cst_250 = arith.constant 1.562500e-02 : f32
    %476 = vector.broadcast %cst_250 : f32 to vector<4x1xf32>
    %477 = arith.mulf %475, %476 : vector<4x1xf32>
    %478 = arith.mulf %469, %469 : vector<4x128xf32>
    %cst_251 = arith.constant dense<0.000000e+00> : vector<4xf32>
    %479 = vector.multi_reduction <add>, %478, %cst_251 [1] : vector<4x128xf32> to vector<4xf32>
    %480 = vector.shape_cast %479 : vector<4xf32> to vector<4x1xf32>
    %cst_252 = arith.constant 1.562500e-02 : f32
    %481 = vector.broadcast %cst_252 : f32 to vector<4x1xf32>
    %482 = arith.mulf %480, %481 : vector<4x1xf32>
    %483 = arith.mulf %477, %477 : vector<4x1xf32>
    %484 = arith.subf %482, %483 : vector<4x1xf32>
    %485 = vector.broadcast %477 : vector<4x1xf32> to vector<4x128xf32>
    %486 = arith.subf %469, %485 : vector<4x128xf32>
    %cst_253 = arith.constant 9.99999974E-6 : f32
    %487 = vector.broadcast %cst_253 : f32 to vector<4x1xf32>
    %488 = arith.addf %484, %487 : vector<4x1xf32>
    %489 = math.rsqrt %488 : vector<4x1xf32>
    %490 = vector.broadcast %489 : vector<4x1xf32> to vector<4x128xf32>
    %491 = arith.mulf %486, %490 : vector<4x128xf32>
    %492 = vector.broadcast %471 : vector<1x128xf32> to vector<4x128xf32>
    %493 = arith.mulf %491, %492 : vector<4x128xf32>
    %494 = vector.broadcast %473 : vector<1x128xf32> to vector<4x128xf32>
    %495 = arith.addf %493, %494 : vector<4x128xf32>
    %496 = arith.truncf %495 : vector<4x128xf32> to vector<4x128xbf16>
    %c21_254 = arith.constant 21 : index
    %c0_255 = arith.constant 0 : index
    %c0_256 = arith.constant 0 : index
    %497 = vector.load %arg2[%c21_254, %c0_255, %c0_256] : memref<34x128x128xbf16, #tpu.memory_space<vmem>>, vector<1x128x128xbf16>
    %498 = vector.shape_cast %497 : vector<1x128x128xbf16> to vector<128x128xbf16>
    %cst_257 = arith.constant dense<0.000000e+00> : vector<4x128xf32>
    %499 = tpu.matmul %496, %498, %cst_257 {dimension_numbers = #tpu.dot_dimension_numbers<[1], [0], [0], [1], [0, 0, 1, 1], [], []>} : vector<4x128xbf16>, vector<128x128xbf16>, vector<4x128xf32> -> vector<4x128xf32>
    %c32 = arith.constant 32 : index
    %c0_258 = arith.constant 0 : index
    %c0_259 = arith.constant 0 : index
    %500 = vector.load %arg3[%c32, %c0_258, %c0_259] : memref<49x1x128xf32, #tpu.memory_space<vmem>>, vector<1x1x128xf32>
    %501 = vector.shape_cast %500 : vector<1x1x128xf32> to vector<1x128xf32>
    %502 = vector.broadcast %501 : vector<1x128xf32> to vector<4x128xf32>
    %503 = arith.addf %499, %502 : vector<4x128xf32>
    %cst_260 = arith.constant 5.000000e-01 : f32
    %504 = vector.broadcast %cst_260 : f32 to vector<4x128xf32>
    %505 = arith.mulf %504, %503 : vector<4x128xf32>
    %cst_261 = arith.constant 0.707106769 : f32
    %506 = vector.broadcast %cst_261 : f32 to vector<4x128xf32>
    %507 = arith.mulf %503, %506 : vector<4x128xf32>
    %508 = math.erf %507 : vector<4x128xf32>
    %cst_262 = arith.constant 1.000000e+00 : f32
    %509 = vector.broadcast %cst_262 : f32 to vector<4x128xf32>
    %510 = arith.addf %509, %508 : vector<4x128xf32>
    %511 = arith.mulf %505, %510 : vector<4x128xf32>
    %512 = arith.truncf %495 : vector<4x128xf32> to vector<4x128xbf16>
    %c22_263 = arith.constant 22 : index
    %c0_264 = arith.constant 0 : index
    %c0_265 = arith.constant 0 : index
    %513 = vector.load %arg2[%c22_263, %c0_264, %c0_265] : memref<34x128x128xbf16, #tpu.memory_space<vmem>>, vector<1x128x128xbf16>
    %514 = vector.shape_cast %513 : vector<1x128x128xbf16> to vector<128x128xbf16>
    %cst_266 = arith.constant dense<0.000000e+00> : vector<4x128xf32>
    %515 = tpu.matmul %512, %514, %cst_266 {dimension_numbers = #tpu.dot_dimension_numbers<[1], [0], [0], [1], [0, 0, 1, 1], [], []>} : vector<4x128xbf16>, vector<128x128xbf16>, vector<4x128xf32> -> vector<4x128xf32>
    %c33 = arith.constant 33 : index
    %c0_267 = arith.constant 0 : index
    %c0_268 = arith.constant 0 : index
    %516 = vector.load %arg3[%c33, %c0_267, %c0_268] : memref<49x1x128xf32, #tpu.memory_space<vmem>>, vector<1x1x128xf32>
    %517 = vector.shape_cast %516 : vector<1x1x128xf32> to vector<1x128xf32>
    %518 = vector.broadcast %517 : vector<1x128xf32> to vector<4x128xf32>
    %519 = arith.addf %515, %518 : vector<4x128xf32>
    %cst_269 = arith.constant 5.000000e-01 : f32
    %520 = vector.broadcast %cst_269 : f32 to vector<4x128xf32>
    %521 = arith.mulf %520, %519 : vector<4x128xf32>
    %cst_270 = arith.constant 0.707106769 : f32
    %522 = vector.broadcast %cst_270 : f32 to vector<4x128xf32>
    %523 = arith.mulf %519, %522 : vector<4x128xf32>
    %524 = math.erf %523 : vector<4x128xf32>
    %cst_271 = arith.constant 1.000000e+00 : f32
    %525 = vector.broadcast %cst_271 : f32 to vector<4x128xf32>
    %526 = arith.addf %525, %524 : vector<4x128xf32>
    %527 = arith.mulf %521, %526 : vector<4x128xf32>
    %528 = arith.truncf %511 : vector<4x128xf32> to vector<4x128xbf16>
    %c23_272 = arith.constant 23 : index
    %c0_273 = arith.constant 0 : index
    %c0_274 = arith.constant 0 : index
    %529 = vector.load %arg2[%c23_272, %c0_273, %c0_274] : memref<34x128x128xbf16, #tpu.memory_space<vmem>>, vector<1x128x128xbf16>
    %530 = vector.shape_cast %529 : vector<1x128x128xbf16> to vector<128x128xbf16>
    %cst_275 = arith.constant dense<0.000000e+00> : vector<4x128xf32>
    %531 = tpu.matmul %528, %530, %cst_275 {dimension_numbers = #tpu.dot_dimension_numbers<[1], [0], [0], [1], [0, 0, 1, 1], [], []>} : vector<4x128xbf16>, vector<128x128xbf16>, vector<4x128xf32> -> vector<4x128xf32>
    %532 = arith.truncf %527 : vector<4x128xf32> to vector<4x128xbf16>
    %c24_276 = arith.constant 24 : index
    %c0_277 = arith.constant 0 : index
    %c0_278 = arith.constant 0 : index
    %533 = vector.load %arg2[%c24_276, %c0_277, %c0_278] : memref<34x128x128xbf16, #tpu.memory_space<vmem>>, vector<1x128x128xbf16>
    %534 = vector.shape_cast %533 : vector<1x128x128xbf16> to vector<128x128xbf16>
    %cst_279 = arith.constant dense<0.000000e+00> : vector<4x128xf32>
    %535 = tpu.matmul %532, %534, %cst_279 {dimension_numbers = #tpu.dot_dimension_numbers<[1], [0], [0], [1], [0, 0, 1, 1], [], []>} : vector<4x128xbf16>, vector<128x128xbf16>, vector<4x128xf32> -> vector<4x128xf32>
    %536 = arith.addf %531, %535 : vector<4x128xf32>
    %537 = arith.addf %469, %536 : vector<4x128xf32>
    %c34 = arith.constant 34 : index
    %c0_280 = arith.constant 0 : index
    %c0_281 = arith.constant 0 : index
    %538 = vector.load %arg3[%c34, %c0_280, %c0_281] : memref<49x1x128xf32, #tpu.memory_space<vmem>>, vector<1x1x128xf32>
    %539 = vector.shape_cast %538 : vector<1x1x128xf32> to vector<1x128xf32>
    %540 = vector.broadcast %539 : vector<1x128xf32> to vector<4x128xf32>
    %541 = arith.addf %537, %540 : vector<4x128xf32>
    %c0_282 = arith.constant 0 : index
    %c0_283 = arith.constant 0 : index
    %542 = vector.load %arg7[%c0_282, %c0_283] : memref<16x128xf32, #tpu.memory_space<vmem>>, vector<16x128xf32>
    %c0_284 = arith.constant 0 : index
    %c0_285 = arith.constant 0 : index
    %543 = vector.load %arg9[%c0_284, %c0_285] : memref<4x16xf32, #tpu.memory_space<vmem>>, vector<4x16xf32>
    %c1_286 = arith.constant 1 : index
    %c0_287 = arith.constant 0 : index
    %c0_288 = arith.constant 0 : index
    %544 = vector.load %arg5[%c1_286, %c0_287, %c0_288] : memref<2x16x4xf32, #tpu.memory_space<vmem>>, vector<1x16x4xf32>
    %545 = vector.shape_cast %544 : vector<1x16x4xf32> to vector<16x4xf32>
    %c35 = arith.constant 35 : index
    %c0_289 = arith.constant 0 : index
    %c0_290 = arith.constant 0 : index
    %546 = vector.load %arg3[%c35, %c0_289, %c0_290] : memref<49x1x128xf32, #tpu.memory_space<vmem>>, vector<1x1x128xf32>
    %547 = vector.shape_cast %546 : vector<1x1x128xf32> to vector<1x128xf32>
    %c36 = arith.constant 36 : index
    %c0_291 = arith.constant 0 : index
    %c0_292 = arith.constant 0 : index
    %548 = vector.load %arg3[%c36, %c0_291, %c0_292] : memref<49x1x128xf32, #tpu.memory_space<vmem>>, vector<1x1x128xf32>
    %549 = vector.shape_cast %548 : vector<1x1x128xf32> to vector<1x128xf32>
    %cst_293 = arith.constant dense<0.000000e+00> : vector<4xf32>
    %550 = vector.multi_reduction <add>, %541, %cst_293 [1] : vector<4x128xf32> to vector<4xf32>
    %551 = vector.shape_cast %550 : vector<4xf32> to vector<4x1xf32>
    %cst_294 = arith.constant 1.562500e-02 : f32
    %552 = vector.broadcast %cst_294 : f32 to vector<4x1xf32>
    %553 = arith.mulf %551, %552 : vector<4x1xf32>
    %554 = arith.mulf %541, %541 : vector<4x128xf32>
    %cst_295 = arith.constant dense<0.000000e+00> : vector<4xf32>
    %555 = vector.multi_reduction <add>, %554, %cst_295 [1] : vector<4x128xf32> to vector<4xf32>
    %556 = vector.shape_cast %555 : vector<4xf32> to vector<4x1xf32>
    %cst_296 = arith.constant 1.562500e-02 : f32
    %557 = vector.broadcast %cst_296 : f32 to vector<4x1xf32>
    %558 = arith.mulf %556, %557 : vector<4x1xf32>
    %559 = arith.mulf %553, %553 : vector<4x1xf32>
    %560 = arith.subf %558, %559 : vector<4x1xf32>
    %561 = vector.broadcast %553 : vector<4x1xf32> to vector<4x128xf32>
    %562 = arith.subf %541, %561 : vector<4x128xf32>
    %cst_297 = arith.constant 9.99999974E-6 : f32
    %563 = vector.broadcast %cst_297 : f32 to vector<4x1xf32>
    %564 = arith.addf %560, %563 : vector<4x1xf32>
    %565 = math.rsqrt %564 : vector<4x1xf32>
    %566 = vector.broadcast %565 : vector<4x1xf32> to vector<4x128xf32>
    %567 = arith.mulf %562, %566 : vector<4x128xf32>
    %568 = vector.broadcast %547 : vector<1x128xf32> to vector<4x128xf32>
    %569 = arith.mulf %567, %568 : vector<4x128xf32>
    %570 = vector.broadcast %549 : vector<1x128xf32> to vector<4x128xf32>
    %571 = arith.addf %569, %570 : vector<4x128xf32>
    %572 = arith.truncf %571 : vector<4x128xf32> to vector<4x128xbf16>
    %c25_298 = arith.constant 25 : index
    %c0_299 = arith.constant 0 : index
    %c0_300 = arith.constant 0 : index
    %573 = vector.load %arg2[%c25_298, %c0_299, %c0_300] : memref<34x128x128xbf16, #tpu.memory_space<vmem>>, vector<1x128x128xbf16>
    %574 = vector.shape_cast %573 : vector<1x128x128xbf16> to vector<128x128xbf16>
    %cst_301 = arith.constant dense<0.000000e+00> : vector<4x128xf32>
    %575 = tpu.matmul %572, %574, %cst_301 {dimension_numbers = #tpu.dot_dimension_numbers<[1], [0], [0], [1], [0, 0, 1, 1], [], []>} : vector<4x128xbf16>, vector<128x128xbf16>, vector<4x128xf32> -> vector<4x128xf32>
    %c37 = arith.constant 37 : index
    %c0_302 = arith.constant 0 : index
    %c0_303 = arith.constant 0 : index
    %576 = vector.load %arg3[%c37, %c0_302, %c0_303] : memref<49x1x128xf32, #tpu.memory_space<vmem>>, vector<1x1x128xf32>
    %577 = vector.shape_cast %576 : vector<1x1x128xf32> to vector<1x128xf32>
    %578 = vector.broadcast %577 : vector<1x128xf32> to vector<4x128xf32>
    %579 = arith.addf %575, %578 : vector<4x128xf32>
    %580 = arith.truncf %571 : vector<4x128xf32> to vector<4x128xbf16>
    %c26_304 = arith.constant 26 : index
    %c0_305 = arith.constant 0 : index
    %c0_306 = arith.constant 0 : index
    %581 = vector.load %arg2[%c26_304, %c0_305, %c0_306] : memref<34x128x128xbf16, #tpu.memory_space<vmem>>, vector<1x128x128xbf16>
    %582 = vector.shape_cast %581 : vector<1x128x128xbf16> to vector<128x128xbf16>
    %cst_307 = arith.constant dense<0.000000e+00> : vector<4x128xf32>
    %583 = tpu.matmul %580, %582, %cst_307 {dimension_numbers = #tpu.dot_dimension_numbers<[1], [0], [0], [1], [0, 0, 1, 1], [], []>} : vector<4x128xbf16>, vector<128x128xbf16>, vector<4x128xf32> -> vector<4x128xf32>
    %c38 = arith.constant 38 : index
    %c0_308 = arith.constant 0 : index
    %c0_309 = arith.constant 0 : index
    %584 = vector.load %arg3[%c38, %c0_308, %c0_309] : memref<49x1x128xf32, #tpu.memory_space<vmem>>, vector<1x1x128xf32>
    %585 = vector.shape_cast %584 : vector<1x1x128xf32> to vector<1x128xf32>
    %586 = vector.broadcast %585 : vector<1x128xf32> to vector<4x128xf32>
    %587 = arith.addf %583, %586 : vector<4x128xf32>
    %588 = arith.truncf %571 : vector<4x128xf32> to vector<4x128xbf16>
    %c27_310 = arith.constant 27 : index
    %c0_311 = arith.constant 0 : index
    %c0_312 = arith.constant 0 : index
    %589 = vector.load %arg2[%c27_310, %c0_311, %c0_312] : memref<34x128x128xbf16, #tpu.memory_space<vmem>>, vector<1x128x128xbf16>
    %590 = vector.shape_cast %589 : vector<1x128x128xbf16> to vector<128x128xbf16>
    %cst_313 = arith.constant dense<0.000000e+00> : vector<4x128xf32>
    %591 = tpu.matmul %588, %590, %cst_313 {dimension_numbers = #tpu.dot_dimension_numbers<[1], [0], [0], [1], [0, 0, 1, 1], [], []>} : vector<4x128xbf16>, vector<128x128xbf16>, vector<4x128xf32> -> vector<4x128xf32>
    %c39 = arith.constant 39 : index
    %c0_314 = arith.constant 0 : index
    %c0_315 = arith.constant 0 : index
    %592 = vector.load %arg3[%c39, %c0_314, %c0_315] : memref<49x1x128xf32, #tpu.memory_space<vmem>>, vector<1x1x128xf32>
    %593 = vector.shape_cast %592 : vector<1x1x128xf32> to vector<1x128xf32>
    %594 = vector.broadcast %593 : vector<1x128xf32> to vector<4x128xf32>
    %595 = arith.addf %591, %594 : vector<4x128xf32>
    %596 = tpu.concatenate %579, %579, %579, %579 in 0 : vector<4x128xf32>, vector<4x128xf32>, vector<4x128xf32>, vector<4x128xf32> -> vector<16x128xf32>
    %597 = arith.mulf %596, %542 : vector<16x128xf32>
    %598 = arith.truncf %597 : vector<16x128xf32> to vector<16x128xbf16>
    %599 = arith.truncf %587 : vector<4x128xf32> to vector<4x128xbf16>
    %cst_316 = arith.constant dense<0.000000e+00> : vector<16x4xf32>
    %600 = tpu.matmul %598, %599, %cst_316 {dimension_numbers = #tpu.dot_dimension_numbers<[1], [1], [0], [0], [0, 0, 1, 0], [], []>} : vector<16x128xbf16>, vector<4x128xbf16>, vector<16x4xf32> -> vector<16x4xf32>
    %601 = arith.addf %600, %545 : vector<16x4xf32>
    %cst_317 = arith.constant dense<0xFF800000> : vector<16xf32>
    %602 = vector.multi_reduction <maximumf>, %601, %cst_317 [1] : vector<16x4xf32> to vector<16xf32>
    %603 = vector.shape_cast %602 : vector<16xf32> to vector<16x1xf32>
    %604 = vector.broadcast %603 : vector<16x1xf32> to vector<16x4xf32>
    %605 = arith.subf %601, %604 : vector<16x4xf32>
    %606 = math.exp %605 : vector<16x4xf32>
    %cst_318 = arith.constant dense<0.000000e+00> : vector<16xf32>
    %607 = vector.multi_reduction <add>, %606, %cst_318 [1] : vector<16x4xf32> to vector<16xf32>
    %608 = vector.shape_cast %607 : vector<16xf32> to vector<16x1xf32>
    %609 = tpu.reciprocal %608 {approx = true} : vector<16x1xf32> -> vector<16x1xf32>
    %610 = vector.broadcast %609 : vector<16x1xf32> to vector<16x4xf32>
    %611 = arith.mulf %606, %610 : vector<16x4xf32>
    %612 = arith.truncf %611 : vector<16x4xf32> to vector<16x4xbf16>
    %613 = arith.truncf %595 : vector<4x128xf32> to vector<4x128xbf16>
    %cst_319 = arith.constant dense<0.000000e+00> : vector<16x128xf32>
    %614 = tpu.matmul %612, %613, %cst_319 {dimension_numbers = #tpu.dot_dimension_numbers<[1], [0], [0], [1], [0, 0, 1, 1], [], []>} : vector<16x4xbf16>, vector<4x128xbf16>, vector<16x128xf32> -> vector<16x128xf32>
    %615 = arith.mulf %614, %542 : vector<16x128xf32>
    %cst_320 = arith.constant dense<0.000000e+00> : vector<4x128xf32>
    %616 = tpu.matmul %543, %615, %cst_320 {dimension_numbers = #tpu.dot_dimension_numbers<[1], [0], [0], [1], [0, 0, 1, 1], [], []>} : vector<4x16xf32>, vector<16x128xf32>, vector<4x128xf32> -> vector<4x128xf32>
    %617 = arith.truncf %616 : vector<4x128xf32> to vector<4x128xbf16>
    %c28_321 = arith.constant 28 : index
    %c0_322 = arith.constant 0 : index
    %c0_323 = arith.constant 0 : index
    %618 = vector.load %arg2[%c28_321, %c0_322, %c0_323] : memref<34x128x128xbf16, #tpu.memory_space<vmem>>, vector<1x128x128xbf16>
    %619 = vector.shape_cast %618 : vector<1x128x128xbf16> to vector<128x128xbf16>
    %cst_324 = arith.constant dense<0.000000e+00> : vector<4x128xf32>
    %620 = tpu.matmul %617, %619, %cst_324 {dimension_numbers = #tpu.dot_dimension_numbers<[1], [0], [0], [1], [0, 0, 1, 1], [], []>} : vector<4x128xbf16>, vector<128x128xbf16>, vector<4x128xf32> -> vector<4x128xf32>
    %621 = arith.addf %541, %620 : vector<4x128xf32>
    %c40 = arith.constant 40 : index
    %c0_325 = arith.constant 0 : index
    %c0_326 = arith.constant 0 : index
    %622 = vector.load %arg3[%c40, %c0_325, %c0_326] : memref<49x1x128xf32, #tpu.memory_space<vmem>>, vector<1x1x128xf32>
    %623 = vector.shape_cast %622 : vector<1x1x128xf32> to vector<1x128xf32>
    %624 = vector.broadcast %623 : vector<1x128xf32> to vector<4x128xf32>
    %625 = arith.addf %621, %624 : vector<4x128xf32>
    %c41 = arith.constant 41 : index
    %c0_327 = arith.constant 0 : index
    %c0_328 = arith.constant 0 : index
    %626 = vector.load %arg3[%c41, %c0_327, %c0_328] : memref<49x1x128xf32, #tpu.memory_space<vmem>>, vector<1x1x128xf32>
    %627 = vector.shape_cast %626 : vector<1x1x128xf32> to vector<1x128xf32>
    %c42 = arith.constant 42 : index
    %c0_329 = arith.constant 0 : index
    %c0_330 = arith.constant 0 : index
    %628 = vector.load %arg3[%c42, %c0_329, %c0_330] : memref<49x1x128xf32, #tpu.memory_space<vmem>>, vector<1x1x128xf32>
    %629 = vector.shape_cast %628 : vector<1x1x128xf32> to vector<1x128xf32>
    %cst_331 = arith.constant dense<0.000000e+00> : vector<4xf32>
    %630 = vector.multi_reduction <add>, %625, %cst_331 [1] : vector<4x128xf32> to vector<4xf32>
    %631 = vector.shape_cast %630 : vector<4xf32> to vector<4x1xf32>
    %cst_332 = arith.constant 1.562500e-02 : f32
    %632 = vector.broadcast %cst_332 : f32 to vector<4x1xf32>
    %633 = arith.mulf %631, %632 : vector<4x1xf32>
    %634 = arith.mulf %625, %625 : vector<4x128xf32>
    %cst_333 = arith.constant dense<0.000000e+00> : vector<4xf32>
    %635 = vector.multi_reduction <add>, %634, %cst_333 [1] : vector<4x128xf32> to vector<4xf32>
    %636 = vector.shape_cast %635 : vector<4xf32> to vector<4x1xf32>
    %cst_334 = arith.constant 1.562500e-02 : f32
    %637 = vector.broadcast %cst_334 : f32 to vector<4x1xf32>
    %638 = arith.mulf %636, %637 : vector<4x1xf32>
    %639 = arith.mulf %633, %633 : vector<4x1xf32>
    %640 = arith.subf %638, %639 : vector<4x1xf32>
    %641 = vector.broadcast %633 : vector<4x1xf32> to vector<4x128xf32>
    %642 = arith.subf %625, %641 : vector<4x128xf32>
    %cst_335 = arith.constant 9.99999974E-6 : f32
    %643 = vector.broadcast %cst_335 : f32 to vector<4x1xf32>
    %644 = arith.addf %640, %643 : vector<4x1xf32>
    %645 = math.rsqrt %644 : vector<4x1xf32>
    %646 = vector.broadcast %645 : vector<4x1xf32> to vector<4x128xf32>
    %647 = arith.mulf %642, %646 : vector<4x128xf32>
    %648 = vector.broadcast %627 : vector<1x128xf32> to vector<4x128xf32>
    %649 = arith.mulf %647, %648 : vector<4x128xf32>
    %650 = vector.broadcast %629 : vector<1x128xf32> to vector<4x128xf32>
    %651 = arith.addf %649, %650 : vector<4x128xf32>
    %652 = arith.truncf %651 : vector<4x128xf32> to vector<4x128xbf16>
    %c29_336 = arith.constant 29 : index
    %c0_337 = arith.constant 0 : index
    %c0_338 = arith.constant 0 : index
    %653 = vector.load %arg2[%c29_336, %c0_337, %c0_338] : memref<34x128x128xbf16, #tpu.memory_space<vmem>>, vector<1x128x128xbf16>
    %654 = vector.shape_cast %653 : vector<1x128x128xbf16> to vector<128x128xbf16>
    %cst_339 = arith.constant dense<0.000000e+00> : vector<4x128xf32>
    %655 = tpu.matmul %652, %654, %cst_339 {dimension_numbers = #tpu.dot_dimension_numbers<[1], [0], [0], [1], [0, 0, 1, 1], [], []>} : vector<4x128xbf16>, vector<128x128xbf16>, vector<4x128xf32> -> vector<4x128xf32>
    %c43 = arith.constant 43 : index
    %c0_340 = arith.constant 0 : index
    %c0_341 = arith.constant 0 : index
    %656 = vector.load %arg3[%c43, %c0_340, %c0_341] : memref<49x1x128xf32, #tpu.memory_space<vmem>>, vector<1x1x128xf32>
    %657 = vector.shape_cast %656 : vector<1x1x128xf32> to vector<1x128xf32>
    %658 = vector.broadcast %657 : vector<1x128xf32> to vector<4x128xf32>
    %659 = arith.addf %655, %658 : vector<4x128xf32>
    %cst_342 = arith.constant 5.000000e-01 : f32
    %660 = vector.broadcast %cst_342 : f32 to vector<4x128xf32>
    %661 = arith.mulf %660, %659 : vector<4x128xf32>
    %cst_343 = arith.constant 0.707106769 : f32
    %662 = vector.broadcast %cst_343 : f32 to vector<4x128xf32>
    %663 = arith.mulf %659, %662 : vector<4x128xf32>
    %664 = math.erf %663 : vector<4x128xf32>
    %cst_344 = arith.constant 1.000000e+00 : f32
    %665 = vector.broadcast %cst_344 : f32 to vector<4x128xf32>
    %666 = arith.addf %665, %664 : vector<4x128xf32>
    %667 = arith.mulf %661, %666 : vector<4x128xf32>
    %668 = arith.truncf %651 : vector<4x128xf32> to vector<4x128xbf16>
    %c30_345 = arith.constant 30 : index
    %c0_346 = arith.constant 0 : index
    %c0_347 = arith.constant 0 : index
    %669 = vector.load %arg2[%c30_345, %c0_346, %c0_347] : memref<34x128x128xbf16, #tpu.memory_space<vmem>>, vector<1x128x128xbf16>
    %670 = vector.shape_cast %669 : vector<1x128x128xbf16> to vector<128x128xbf16>
    %cst_348 = arith.constant dense<0.000000e+00> : vector<4x128xf32>
    %671 = tpu.matmul %668, %670, %cst_348 {dimension_numbers = #tpu.dot_dimension_numbers<[1], [0], [0], [1], [0, 0, 1, 1], [], []>} : vector<4x128xbf16>, vector<128x128xbf16>, vector<4x128xf32> -> vector<4x128xf32>
    %c44 = arith.constant 44 : index
    %c0_349 = arith.constant 0 : index
    %c0_350 = arith.constant 0 : index
    %672 = vector.load %arg3[%c44, %c0_349, %c0_350] : memref<49x1x128xf32, #tpu.memory_space<vmem>>, vector<1x1x128xf32>
    %673 = vector.shape_cast %672 : vector<1x1x128xf32> to vector<1x128xf32>
    %674 = vector.broadcast %673 : vector<1x128xf32> to vector<4x128xf32>
    %675 = arith.addf %671, %674 : vector<4x128xf32>
    %cst_351 = arith.constant 5.000000e-01 : f32
    %676 = vector.broadcast %cst_351 : f32 to vector<4x128xf32>
    %677 = arith.mulf %676, %675 : vector<4x128xf32>
    %cst_352 = arith.constant 0.707106769 : f32
    %678 = vector.broadcast %cst_352 : f32 to vector<4x128xf32>
    %679 = arith.mulf %675, %678 : vector<4x128xf32>
    %680 = math.erf %679 : vector<4x128xf32>
    %cst_353 = arith.constant 1.000000e+00 : f32
    %681 = vector.broadcast %cst_353 : f32 to vector<4x128xf32>
    %682 = arith.addf %681, %680 : vector<4x128xf32>
    %683 = arith.mulf %677, %682 : vector<4x128xf32>
    %684 = arith.truncf %667 : vector<4x128xf32> to vector<4x128xbf16>
    %c31_354 = arith.constant 31 : index
    %c0_355 = arith.constant 0 : index
    %c0_356 = arith.constant 0 : index
    %685 = vector.load %arg2[%c31_354, %c0_355, %c0_356] : memref<34x128x128xbf16, #tpu.memory_space<vmem>>, vector<1x128x128xbf16>
    %686 = vector.shape_cast %685 : vector<1x128x128xbf16> to vector<128x128xbf16>
    %cst_357 = arith.constant dense<0.000000e+00> : vector<4x128xf32>
    %687 = tpu.matmul %684, %686, %cst_357 {dimension_numbers = #tpu.dot_dimension_numbers<[1], [0], [0], [1], [0, 0, 1, 1], [], []>} : vector<4x128xbf16>, vector<128x128xbf16>, vector<4x128xf32> -> vector<4x128xf32>
    %688 = arith.truncf %683 : vector<4x128xf32> to vector<4x128xbf16>
    %c32_358 = arith.constant 32 : index
    %c0_359 = arith.constant 0 : index
    %c0_360 = arith.constant 0 : index
    %689 = vector.load %arg2[%c32_358, %c0_359, %c0_360] : memref<34x128x128xbf16, #tpu.memory_space<vmem>>, vector<1x128x128xbf16>
    %690 = vector.shape_cast %689 : vector<1x128x128xbf16> to vector<128x128xbf16>
    %cst_361 = arith.constant dense<0.000000e+00> : vector<4x128xf32>
    %691 = tpu.matmul %688, %690, %cst_361 {dimension_numbers = #tpu.dot_dimension_numbers<[1], [0], [0], [1], [0, 0, 1, 1], [], []>} : vector<4x128xbf16>, vector<128x128xbf16>, vector<4x128xf32> -> vector<4x128xf32>
    %692 = arith.addf %687, %691 : vector<4x128xf32>
    %693 = arith.addf %625, %692 : vector<4x128xf32>
    %c45 = arith.constant 45 : index
    %c0_362 = arith.constant 0 : index
    %c0_363 = arith.constant 0 : index
    %694 = vector.load %arg3[%c45, %c0_362, %c0_363] : memref<49x1x128xf32, #tpu.memory_space<vmem>>, vector<1x1x128xf32>
    %695 = vector.shape_cast %694 : vector<1x1x128xf32> to vector<1x128xf32>
    %696 = vector.broadcast %695 : vector<1x128xf32> to vector<4x128xf32>
    %697 = arith.addf %693, %696 : vector<4x128xf32>
    %c46 = arith.constant 46 : index
    %c0_364 = arith.constant 0 : index
    %c0_365 = arith.constant 0 : index
    %698 = vector.load %arg3[%c46, %c0_364, %c0_365] : memref<49x1x128xf32, #tpu.memory_space<vmem>>, vector<1x1x128xf32>
    %699 = vector.shape_cast %698 : vector<1x1x128xf32> to vector<1x128xf32>
    %c47 = arith.constant 47 : index
    %c0_366 = arith.constant 0 : index
    %c0_367 = arith.constant 0 : index
    %700 = vector.load %arg3[%c47, %c0_366, %c0_367] : memref<49x1x128xf32, #tpu.memory_space<vmem>>, vector<1x1x128xf32>
    %701 = vector.shape_cast %700 : vector<1x1x128xf32> to vector<1x128xf32>
    %cst_368 = arith.constant dense<0.000000e+00> : vector<4xf32>
    %702 = vector.multi_reduction <add>, %697, %cst_368 [1] : vector<4x128xf32> to vector<4xf32>
    %703 = vector.shape_cast %702 : vector<4xf32> to vector<4x1xf32>
    %cst_369 = arith.constant 1.562500e-02 : f32
    %704 = vector.broadcast %cst_369 : f32 to vector<4x1xf32>
    %705 = arith.mulf %703, %704 : vector<4x1xf32>
    %706 = arith.mulf %697, %697 : vector<4x128xf32>
    %cst_370 = arith.constant dense<0.000000e+00> : vector<4xf32>
    %707 = vector.multi_reduction <add>, %706, %cst_370 [1] : vector<4x128xf32> to vector<4xf32>
    %708 = vector.shape_cast %707 : vector<4xf32> to vector<4x1xf32>
    %cst_371 = arith.constant 1.562500e-02 : f32
    %709 = vector.broadcast %cst_371 : f32 to vector<4x1xf32>
    %710 = arith.mulf %708, %709 : vector<4x1xf32>
    %711 = arith.mulf %705, %705 : vector<4x1xf32>
    %712 = arith.subf %710, %711 : vector<4x1xf32>
    %713 = vector.broadcast %705 : vector<4x1xf32> to vector<4x128xf32>
    %714 = arith.subf %697, %713 : vector<4x128xf32>
    %cst_372 = arith.constant 9.99999974E-6 : f32
    %715 = vector.broadcast %cst_372 : f32 to vector<4x1xf32>
    %716 = arith.addf %712, %715 : vector<4x1xf32>
    %717 = math.rsqrt %716 : vector<4x1xf32>
    %718 = vector.broadcast %717 : vector<4x1xf32> to vector<4x128xf32>
    %719 = arith.mulf %714, %718 : vector<4x128xf32>
    %720 = vector.broadcast %699 : vector<1x128xf32> to vector<4x128xf32>
    %721 = arith.mulf %719, %720 : vector<4x128xf32>
    %722 = vector.broadcast %701 : vector<1x128xf32> to vector<4x128xf32>
    %723 = arith.addf %721, %722 : vector<4x128xf32>
    %cst_373 = arith.constant dense<0.000000e+00> : vector<128xf32>
    %724 = vector.multi_reduction <add>, %723, %cst_373 [0] : vector<4x128xf32> to vector<128xf32>
    %725 = vector.shape_cast %724 : vector<128xf32> to vector<1x128xf32>
    %cst_374 = arith.constant 4.000000e+00 : f32
    %726 = vector.broadcast %cst_374 : f32 to vector<1x128xf32>
    %727 = arith.divf %725, %726 : vector<1x128xf32>
    %c0_375 = arith.constant 0 : index
    %c0_376 = arith.constant 0 : index
    %c0_377 = arith.constant 0 : index
    %728 = vector.load %arg11[%c0_375, %c0_376, %c0_377] : memref<1x1x128xf32, #tpu.memory_space<vmem>>, vector<1x1x128xf32>
    %729 = vector.shape_cast %728 : vector<1x1x128xf32> to vector<1x128xf32>
    %730 = vector.shape_cast %727 : vector<1x128xf32> to vector<1x1x128xf32>
    tpu.vector_store %arg11[%c0_375, %c0_376, %c0_377], %730 {strides = array<i32>} : memref<1x1x128xf32, #tpu.memory_space<vmem>>, vector<1x1x128xf32>,
    %731 = arith.truncf %727 : vector<1x128xf32> to vector<1x128xbf16>
    %c33_378 = arith.constant 33 : index
    %c0_379 = arith.constant 0 : index
    %c0_380 = arith.constant 0 : index
    %732 = vector.load %arg2[%c33_378, %c0_379, %c0_380] : memref<34x128x128xbf16, #tpu.memory_space<vmem>>, vector<1x128x128xbf16>
    %733 = vector.shape_cast %732 : vector<1x128x128xbf16> to vector<128x128xbf16>
    %cst_381 = arith.constant dense<0.000000e+00> : vector<1x128xf32>
    %734 = tpu.matmul %731, %733, %cst_381 {dimension_numbers = #tpu.dot_dimension_numbers<[1], [0], [0], [1], [0, 0, 1, 1], [], []>} : vector<1x128xbf16>, vector<128x128xbf16>, vector<1x128xf32> -> vector<1x128xf32>
    %c48 = arith.constant 48 : index
    %c0_382 = arith.constant 0 : index
    %c0_383 = arith.constant 0 : index
    %735 = vector.load %arg3[%c48, %c0_382, %c0_383] : memref<49x1x128xf32, #tpu.memory_space<vmem>>, vector<1x1x128xf32>
    %736 = vector.shape_cast %735 : vector<1x1x128xf32> to vector<1x128xf32>
    %737 = arith.addf %734, %736 : vector<1x128xf32>
    %c0_384 = arith.constant 0 : index
    %c0_385 = arith.constant 0 : index
    %c0_386 = arith.constant 0 : index
    %738 = vector.load %arg12[%c0_384, %c0_385, %c0_386] : memref<1x1x128xf32, #tpu.memory_space<vmem>>, vector<1x1x128xf32>
    %739 = vector.shape_cast %738 : vector<1x1x128xf32> to vector<1x128xf32>
    %740 = vector.shape_cast %737 : vector<1x128xf32> to vector<1x1x128xf32>
    tpu.vector_store %arg12[%c0_384, %c0_385, %c0_386], %740 {strides = array<i32>} : memref<1x1x128xf32, #tpu.memory_space<vmem>>, vector<1x1x128xf32>,
    return
  }
  func.func @transform_0(%arg0: i32) -> (i32, i32, i32) {
    %c0_i32 = arith.constant 0 : i32
    %c0_i32_0 = arith.constant 0 : i32
    %c0_i32_1 = arith.constant 0 : i32
    return %arg0, %c0_i32, %c0_i32_0 : i32, i32, i32
  }
  func.func @transform_1(%arg0: i32) -> (i32, i32, i32) {
    %c0_i32 = arith.constant 0 : i32
    %c0_i32_0 = arith.constant 0 : i32
    %c0_i32_1 = arith.constant 0 : i32
    %c0_i32_2 = arith.constant 0 : i32
    return %c0_i32, %c0_i32_0, %c0_i32_1 : i32, i32, i32
  }
  func.func @transform_2(%arg0: i32) -> (i32, i32, i32) {
    %c0_i32 = arith.constant 0 : i32
    %c0_i32_0 = arith.constant 0 : i32
    %c0_i32_1 = arith.constant 0 : i32
    %c0_i32_2 = arith.constant 0 : i32
    return %c0_i32, %c0_i32_0, %c0_i32_1 : i32, i32, i32
  }
  func.func @transform_3(%arg0: i32) -> (i32, i32, i32) {
    %c0_i32 = arith.constant 0 : i32
    %c0_i32_0 = arith.constant 0 : i32
    %c0_i32_1 = arith.constant 0 : i32
    %c0_i32_2 = arith.constant 0 : i32
    return %c0_i32, %c0_i32_0, %c0_i32_1 : i32, i32, i32
  }
  func.func @transform_4(%arg0: i32) -> (i32, i32, i32) {
    %c0_i32 = arith.constant 0 : i32
    %c0_i32_0 = arith.constant 0 : i32
    %c0_i32_1 = arith.constant 0 : i32
    %c0_i32_2 = arith.constant 0 : i32
    return %c0_i32, %c0_i32_0, %c0_i32_1 : i32, i32, i32
  }
  func.func @transform_5(%arg0: i32) -> (i32, i32) {
    %c0_i32 = arith.constant 0 : i32
    %c0_i32_0 = arith.constant 0 : i32
    %c0_i32_1 = arith.constant 0 : i32
    return %c0_i32, %c0_i32_0 : i32, i32
  }
  func.func @transform_6(%arg0: i32) -> (i32, i32) {
    %c0_i32 = arith.constant 0 : i32
    %c0_i32_0 = arith.constant 0 : i32
    %c0_i32_1 = arith.constant 0 : i32
    return %c0_i32, %c0_i32_0 : i32, i32
  }
  func.func @transform_7(%arg0: i32) -> (i32, i32) {
    %c0_i32 = arith.constant 0 : i32
    %c0_i32_0 = arith.constant 0 : i32
    %c0_i32_1 = arith.constant 0 : i32
    return %c0_i32, %c0_i32_0 : i32, i32
  }
  func.func @transform_8(%arg0: i32) -> (i32, i32) {
    %c0_i32 = arith.constant 0 : i32
    %c0_i32_0 = arith.constant 0 : i32
    %c0_i32_1 = arith.constant 0 : i32
    return %c0_i32, %c0_i32_0 : i32, i32
  }
  func.func @transform_9(%arg0: i32) -> (i32, i32, i32) {
    %c0_i32 = arith.constant 0 : i32
    %c0_i32_0 = arith.constant 0 : i32
    %c0_i32_1 = arith.constant 0 : i32
    %c0_i32_2 = arith.constant 0 : i32
    return %c0_i32, %c0_i32_0, %c0_i32_1 : i32, i32, i32
  }
  func.func @transform_10(%arg0: i32) -> (i32, i32, i32) {
    %c0_i32 = arith.constant 0 : i32
    %c0_i32_0 = arith.constant 0 : i32
    %c0_i32_1 = arith.constant 0 : i32
    return %arg0, %c0_i32, %c0_i32_0 : i32, i32, i32
  }
  func.func @transform_11(%arg0: i32) -> (i32, i32, i32) {
    %c0_i32 = arith.constant 0 : i32
    %c0_i32_0 = arith.constant 0 : i32
    %c0_i32_1 = arith.constant 0 : i32
    return %arg0, %c0_i32, %c0_i32_0 : i32, i32, i32
  }
}

</mosaic_0001>

<bundles_post_ra>
// kernel: fwd.1
= control target key start
LH: loop header
LB: loop body
LE: loop exit
PB: predicated region body
PF: predicated region fallthrough
CT: control target
= control target key end

     0   :  { %17 = vsyncpa [#allocation3], 0  ;;  %s9453_s0 = inlined_call_operand.vmem [shape: f32[2,16,128], index: 0, kind: input, shape index: {}]   ;;  %s9454_s1 = inlined_call_operand.hbm [shape: bf16[34,128,128], index: 1, kind: input, shape index: {}]   ;;  %s9455_s2 = inlined_call_operand.hbm [shape: f32[49,1,128], index: 2, kind: input, shape index: {}]   ;;  %s9456_s3 = inlined_call_operand.vmem [shape: f32[2,32,16], index: 3, kind: input, shape index: {}]   ;;  %s9457_s4 = inlined_call_operand.vmem [shape: f32[2,16,4], index: 4, kind: input, shape index: {}]   ;;  %s9458_s5 = inlined_call_operand.hbm [shape: f32[32,128], index: 5, kind: input, shape index: {}]   ;;  %s9459_s6 = inlined_call_operand.hbm [shape: f32[16,128], index: 6, kind: input, shape index: {}]   ;;  %s9460_s7 = inlined_call_operand.hbm [shape: f32[16,32], index: 7, kind: input, shape index: {}]   ;;  %s9461_s8 = inlined_call_operand.hbm [shape: f32[4,16], index: 8, kind: input, shape index: {}]   ;;  %s9462_s9 = inlined_call_operand.hbm [shape: f32[4,4,16], index: 9, kind: input, shape index: {}]   ;;  %s9463_s10 = inlined_call_operand.hbm [shape: f32[2,1,128], index: 10, kind: output, shape index: {0}]   ;;  %s9464_s11 = inlined_call_operand.hbm [shape: f32[2,1,128], index: 11, kind: output, shape index: {1}]  }
   0x1   :  { %18 = vsyncpa [#allocation6], 0 }
   0x2   :  { %19 = vsyncpa [#allocation9], 0 }
   0x3   :  { %20 = vsyncpa [#allocation12], 0 }
   0x4   :  { %21 = vsyncpa [#allocation4], 0 }
   0x5   :  { %23 = vsyncpa [#allocation4 + $0x1], 0 }
   0x6   :  { %24 = vsyncpa [#allocation16], 0 }
   0x7   :  { %26 = vsyncpa [#allocation16 + $0x1], 0  ;;  %s8597_s17 = smov 0   ;;  %s8599_s18 = smov 0  }
   0x8   :  { %s8601_s19 = smov 0   ;;  %s8603_s20 = smov 0  }
   0x9 LB: > { %9473 = sst [smem:[#allocation23_spill]] %s8514_s19  ;;  %s8618_s21 = sadd.s32 4294967295, %s8518_s20   ;;  %s8518_s20 = sphi %s8603_s20, %s9494_s20   ;;  %s8514_s19 = sphi %s8601_s19, %s9496_s19   ;;  %s8510_s18 = sphi %s8599_s18, %s9498_s18   ;;  %s8506_s17 = sphi %s8597_s17, %s9497_s17  }
   0xa   : > { %s6222_s22 = sadd.s32 4294967294, %s8518_s20   ;;  %s8622_s23 = sadd.s32 1, %s8518_s20  }
   0xb   : > { %9474 = sst [smem:[#allocation24_spill]] %s8622_s23  ;;  %s254_s24 = sadd.s32 1, %s8514_s19 }
   0xc   : > { %s251_s25 = ssub.s32 %s8518_s20, %s8622_s23  ;;  %p264_p0 = scmp.ne.s32.totalorder %s8514_s19, %s8510_s18 }
   0xd   : > { %p252_p1 = scmp.eq.s32.totalorder %s251_s25, 0  ;;  %p265_p2 = scmp.eq.s32.totalorder %s8618_s21, 1 }
   0xe   : > { %p270_p3 = scmp.ne.s32.totalorder %s8510_s18, %s8506_s17  ;;  %p271_p4 = scmp.eq.s32.totalorder %s6222_s22, 1 }
   0xf   : > { %s8633_s26 = scalar_select %p252_p1, %s8514_s19, %s254_s24  }
  0x10   : > { %p8635_p5 = por %p265_p2, %p264_p0  ;;  %p8639_p6 = por %p271_p4, %p270_p3 }
  0x11   : > { %9475 = sst [smem:[#allocation25_spill]] %s8633_s26  ;;  %p6223_p7 = scmp.ge.s32.totalorder %s8518_s20, 1 }
  0x12   : > { %s9477_s28 = scalar_select %p8639_p6, 1, 0 }
  0x13   : > { %p304_p8 = scmp.lt.s32.totalorder %s8518_s20, 3  ;;  %p9469_p9 = scmp.eq.s32.totalorder %s8618_s21, 0 }
  0x14   : > { %9478 = sst [smem:[#allocation26_spill]] %s9477_s28  ;;  %s8520_s30 = smov [#allocation5]  }
  0x15   : > { %p8646_p10 = pnand %p6223_p7, %p304_p8  ;;  %s329_s12 = sshll.u32 %s8520_s30, 4  ;;  %s330_s12 = int_to_ptr.vmem [resolvable:$true] %s329_s12 }
  0x16   : > { %s8521_s14 = smov [#allocation8]   ;;  %s8241_s22 = scalar_lea.vmem %s330_s12, 784 }
  0x17   : > { %p7769_p11 = pneg %p8646_p10  ;;  %s361_s15 = sshll.u32 %s8521_s14, 4  ;;  %s362_s15 = int_to_ptr.vmem [resolvable:$true] %s361_s15 }
  0x18   : > { %p8242_p0 = scmp.ne.s32.totalorder %s330_s12, %s8241_s22  ;;  %s8248_s24 = scalar_lea.vmem %s330_s12, 800 }
  0x19   : > { %p8654_p12 = pnand %p9469_p9, %p7769_p11  ;;  %p8249_p3 = scmp.lt.s32.totalorder %s330_s12, %s330_s12 }
  0x1a   : > { %p8250_p4 = scmp.lt.s32.totalorder %s8248_s24, %s8241_s22 }
  0x1b   : > { %p8660_p13 = pneg %p8654_p12 }
  0x1c   : > { %p8251_p7 = por %p8250_p4, %p8249_p3 }
  0x1d   : > { %p8244_p1 = pnand %p8242_p0, %p8660_p13 }
  0x1f   : > { %p8245_p2 = pneg %p8244_p1 }
  0x21   : > { %p8252_p8 = pnand %p8251_p7, %p8245_p2 }
  0x23   : > { %8255 = shalt.err (!%p8252_p8)
}
  0x24   : > { %s8522_s25 = smov 16   ;;  %s8523_s30 = smov 1  }
  0x25   : > { %7775 = dma.hbm_to_vmem [thread:$0]  (!%p8654_p12), %s9455_s2, 784, %s330_s12, [#allocation6], %s8522_s25, %s8522_s25, %s8523_s30  }
  0x26   : > { %s8524_s19 = smov [#allocation11]   ;;  %s8267_s28 = scalar_lea.vmem %s362_s15, 256 }
  0x27   : > { %s388_s23 = sshll.u32 %s8524_s19, 4  ;;  %p8268_p11 = scmp.ne.s32.totalorder %s362_s15, %s8267_s28  ;;  %s389_s23 = int_to_ptr.vmem [resolvable:$true] %s388_s23 }
  0x28   : > { %p8275_p3 = scmp.lt.s32.totalorder %s362_s15, %s362_s15  ;;  %p8276_p2 = scmp.lt.s32.totalorder %s8267_s28, %s8267_s28 }
  0x29   : > { %p8270_p0 = pnand %p8268_p11, %p8660_p13 }
  0x2a   : > { %p8277_p4 = por %p8276_p2, %p8275_p3 }
  0x2b   : > { %p8271_p1 = pneg %p8270_p0 }
  0x2d   : > { %p8278_p7 = pnand %p8277_p4, %p8271_p1 }
  0x2f   : > { %8281 = shalt.err (!%p8278_p7)
}
  0x30   : > { %s9470_s22 = smov 128   ;;  %s8526_s24 = smov 8  }
  0x31   : > { %7781 = dma.hbm_to_vmem [thread:$0]  (!%p8654_p12), %s9459_s6, 256, %s362_s15, [#allocation9], %s9470_s22, %s9470_s22, %s8526_s24  }
  0x32   : > { %s8293_s12 = scalar_lea.vmem %s389_s23, 64  ;;  %p8301_p1 = scmp.lt.s32.totalorder %s389_s23, %s389_s23 }
  0x33   : > { %p8294_p8 = scmp.ne.s32.totalorder %s389_s23, %s8293_s12  ;;  %p8302_p3 = scmp.lt.s32.totalorder %s8293_s12, %s8293_s12 }
  0x35   : > { %p8296_p11 = pnand %p8294_p8, %p8660_p13  ;;  %p8303_p2 = por %p8302_p3, %p8301_p1 }
  0x37   : > { %p8297_p0 = pneg %p8296_p11 }
  0x39   : > { %p8304_p4 = pnand %p8303_p2, %p8297_p0 }
  0x3b   : > { %8307 = shalt.err (!%p8304_p4)
}
  0x3c   : > { %7787 = dma.hbm_to_vmem [thread:$0]  (!%p8654_p12), %s9461_s8, 64, %s389_s23, [#allocation12]  }
  0x3d   : > { %s8527_s30 = smov [#allocation2]  }
  0x3e   : > { %s316_s15 = sshll.u32 %s8527_s30, 4  ;;  %s317_s15 = int_to_ptr.vmem [resolvable:$true] %s316_s15 }
  0x3f   : > { %s8319_s14 = scalar_lea.vmem %s317_s15, 34816  ;;  %p8327_p9 = scmp.lt.s32.totalorder %s317_s15, %s317_s15 }
  0x40   : > { %p8320_p7 = scmp.ne.s32.totalorder %s317_s15, %s8319_s14  ;;  %p8328_p6 = scmp.lt.s32.totalorder %s8319_s14, %s8319_s14 }
  0x42   : > { %p8322_p8 = pnand %p8320_p7, %p8660_p13  ;;  %p8329_p1 = por %p8328_p6, %p8327_p9 }
  0x44   : > { %p8323_p11 = pneg %p8322_p8 }
  0x46   : > { %p8330_p0 = pnand %p8329_p1, %p8323_p11 }
  0x48   : > { %8333 = shalt.err (!%p8330_p0)
}
  0x49   : > { %s8528_s26 = smov 64   ;;  %s8529_s19 = smov 4  }
  0x4a   : > { %7772 = dma.hbm_to_vmem [thread:$0]  (!%p8654_p12), %s9454_s1, 34816, %s317_s15, [#allocation3], %s8528_s26, %s8528_s26, %s8529_s19  }
  0x4b   : > { %s8530_s28 = smov [#allocation7]   ;;  %s8531_s30 = smov [#allocation10]  }
  0x4c   : > { %s348_s25 = sshll.u32 %s8530_s28, 4  ;;  %s374_s22 = sshll.u32 %s8531_s30, 4  ;;  %s349_s25 = int_to_ptr.vmem [resolvable:$true] %s348_s25  ;;  %s375_s22 = int_to_ptr.vmem [resolvable:$true] %s374_s22 }
  0x4d   : > { %s8345_s14 = scalar_lea.vmem %s349_s25, 512  ;;  %p8353_p2 = scmp.lt.s32.totalorder %s349_s25, %s349_s25 }
  0x4e   : > { %p8346_p6 = scmp.ne.s32.totalorder %s349_s25, %s8345_s14  ;;  %p8354_p4 = scmp.lt.s32.totalorder %s8345_s14, %s8345_s14 }
  0x50   : > { %p8348_p9 = pnand %p8346_p6, %p8660_p13  ;;  %p8355_p7 = por %p8354_p4, %p8353_p2 }
  0x52   : > { %p8349_p3 = pneg %p8348_p9 }
  0x54   : > { %p8356_p8 = pnand %p8355_p7, %p8349_p3 }
  0x56   : > { %8359 = shalt.err (!%p8356_p8)
}
  0x57   : > { %s9482_s15 = smov 128   ;;  %s8371_s28 = scalar_lea.vmem %s375_s22, 256 }
  0x58   : > { %7778 = dma.hbm_to_vmem [thread:$0]  (!%p8654_p12), %s9458_s5, 512, %s349_s25, [#allocation6], %s9482_s15, %s9482_s15, %s8526_s24  }
  0x59   : > { %p8372_p11 = scmp.ne.s32.totalorder %s375_s22, %s8371_s28  ;;  %p8379_p6 = scmp.lt.s32.totalorder %s375_s22, %s375_s22 }
  0x5a   : > { %p8380_p9 = scmp.lt.s32.totalorder %s8371_s28, %s8371_s28 }
  0x5b   : > { %p8374_p1 = pnand %p8372_p11, %p8660_p13 }
  0x5c   : > { %p8381_p2 = por %p8380_p9, %p8379_p6 }
  0x5d   : > { %p8375_p0 = pneg %p8374_p1 }
  0x5f   : > { %p8382_p3 = pnand %p8381_p2, %p8375_p0 }
  0x61   : > { %8385 = shalt.err (!%p8382_p3)
}
  0x62   : > { %7784 = dma.hbm_to_vmem [thread:$0]  (!%p8654_p12), %s9460_s7, 256, %s375_s22, [#allocation9], %s9482_s15, %s9482_s15, %s8526_s24  }
  0x63   : > { %s8532_s25 = smov [#allocation13]  }
  0x64   : > { %s398_s23 = sshll.u32 %s8532_s25, 4  ;;  %s399_s23 = int_to_ptr.vmem [resolvable:$true] %s398_s23 }
  0x65   : > { %s8397_s12 = scalar_lea.vmem %s399_s23, 256  ;;  %p8405_p11 = scmp.lt.s32.totalorder %s399_s23, %s399_s23 }
  0x66   : > { %p8398_p4 = scmp.ne.s32.totalorder %s399_s23, %s8397_s12  ;;  %p8406_p1 = scmp.lt.s32.totalorder %s8397_s12, %s8397_s12 }
  0x68   : > { %p8400_p7 = pnand %p8398_p4, %p8660_p13  ;;  %p8407_p0 = por %p8406_p1, %p8405_p11 }
  0x6a   : > { %p8401_p8 = pneg %p8400_p7 }
  0x6c   : > { %p8408_p6 = pnand %p8407_p0, %p8401_p8 }
  0x6e   : > { %8411 = shalt.err (!%p8408_p6)
}
  0x6f   : > { %7790 = dma.hbm_to_vmem [thread:$0]  (!%p8654_p12), %s9462_s9, 256, %s399_s23, [#allocation12], %s8528_s26, %s8528_s26, %s8529_s19  }
  0x70   : > { %422 = sbr.rel (%p8646_p10) target bundleno = 9830 (0x2666), region = 60  ;;  %p9483_p13 = scmp.eq.s32.totalorder (!%p8646_p10), %s8618_s21, 0 }
  0x75   : > { %8481 = dma.done.wait (%p9483_p13), [#allocation3], 34816   ;;  %p9484_p9 = pmov %p9483_p13 }
  0x77   : > { %8483 = vsyncadd (%p9484_p9), [#allocation3], 4294932480  ;;  %p9485_p2 = pmov %p9484_p9 }
  0x79   : > { %8485 = dma.done.wait (%p9485_p2), [#allocation6], 1296   ;;  %p9486_p3 = pmov %p9485_p2 }
  0x7a   : > { %p9487_p4 = pmov %p9485_p2 }
  0x7b   : > { %8487 = vsyncadd (%p9486_p3), [#allocation6], 4294966000 }
  0x7c   : > { %8489 = dma.done.wait (%p9487_p4), [#allocation9], 512   ;;  %p9488_p12 = pmov %p9485_p2 }
  0x7d   : > { %p9489_p10 = pmov %p9485_p2 }
  0x7e   : > { %8491 = vsyncadd (%p9488_p12), [#allocation9], 4294966784 }
  0x7f   : > { %8493 = dma.done.wait (%p9489_p10), [#allocation12], 320   ;;  %p9490_p7 = pmov %p9485_p2 }
  0x80   : > { %v8533_v0 = vmov 0.0   ;;  %vm8534_vm0 = vmmov 0   ;;  %v7860_v1 = vld [vmem:[#allocation2 + $0x38] sm:$0xff]   ;;  %p489_p8 = scmp.lt.s32.totalorder %s8618_s21, 1  ;;  %v7861_v2 = vld [vmem:[#allocation2 + $0x30] sm:$0xff]   ;;  %v7862_v3 = vld [vmem:[#allocation2 + $0x28] sm:$0xff]  }
  0x81   : > { %8495 = vsyncadd (%p9490_p7), [#allocation12], 4294966976  ;;  %6945 = vmatprep.subr.bf16.mxu0 %v8533_v0  ;;  %6961 = vmatprep.mubr.msk.bf16.mxu0 %vm8534_vm0, %v8533_v0  ;;  %v7863_v4 = vld [vmem:[#allocation2 + $0x20] sm:$0xff]   ;;  %v7864_v5 = vld [vmem:[#allocation2 + $0x18] sm:$0xff]   ;;  %vm1111_vm1 = vcmask 130048   ;;  %vm1218_vm2 = vcmask 261120  }
  0x82   : > { %6965 = vmatprep.subr.bf16.mxu1 %v8533_v0  ;;  %6981 = vmatprep.mubr.msk.bf16.mxu1 %vm8534_vm0, %v8533_v0  ;;  %s490_s29 = scalar_select %p489_p8, %s8618_s21, 1  ;;  %v7865_v6 = vld [vmem:[#allocation2 + $0x10] sm:$0xff]   ;;  %v7866_v7 = vld [vmem:[#allocation2 + $0x8] sm:$0xff]   ;;  %v7867_v8 = vld [vmem:[#allocation2] sm:$0xff]   ;;  %vm3048_vm3 = vcmask 1043456   ;;  %vm3984_vm4 = vcmask 1041408  }
  0x83   : > { %6946 = vmatpush3.bf16.msra.mxu0 %v7860_v1  ;;  %v6242_v12 = vld [vmem:[#allocation5] ss:$0 sm:$0xff]  ;;  %v6251_v37 = vld [vmem:[#allocation5 + $0x1] ss:$0 sm:$0xff]  ;;  %v6252_v39 = vld [vmem:[#allocation5 + $0x2] ss:$0 sm:$0xff] }
  0x84   : > { %6947 = vmatprep.subr.bf16.mxu0 %v8533_v0  ;;  %s6588_s13 = sshll.u32 %s490_s29, 4  ;;  %v7868_v49 = vld [vmem:[#allocation2 + $0x78] sm:$0xff]   ;;  %v7870_v51 = vld [vmem:[#allocation2 + $0x70] sm:$0xff]   ;;  %v7872_v53 = vld [vmem:[#allocation2 + $0x68] sm:$0xff]   ;;  %vm3956_vm5 = vcmask 31744   ;;  %s9472_s24 = sshll.u32 %s8618_s21, 4 }
  0x85   : > { %s493_s26 = scalar_lea.vmem %s9453_s0, %s6588_s13  ;;  %v7869_v50 = vld [vmem:[#allocation2 + $0xb8] sm:$0xff]   ;;  %6966 = vmatpush3.bf16.msra.mxu1 %v7868_v49  ;;  %v7871_v52 = vld [vmem:[#allocation2 + $0xb0] sm:$0xff]   ;;  %v7873_v54 = vld [vmem:[#allocation2 + $0xa8] sm:$0xff]   ;;  %s9383_s13 = sand.u32 1, %s8510_s18  }
  0x86   : > { %v495_v9 = vld [vmem:[%s493_s26] sm:$0xff]  ;;  %v496_v10 = vld [vmem:[%s493_s26 + $0x8] sm:$0xff]  ;;  %6967 = vmatprep.subr.bf16.mxu1 %v8533_v0  ;;  %v7876_v57 = vld [vmem:[#allocation2 + $0x58] sm:$0xff]   ;;  %s482_s16 = scalar_lea.vmem [#allocation14], %s9383_s13  ;;  %s6055_s30 = scalar_lea.hbm %s9463_s10, %s9472_s24 }
  0x87   : > { %6948 = vmatpush3.bf16.msra.mxu0 %v7861_v2  ;;  %v497_v11 = vpack.c.bf16 %v496_v10, %v495_v9  ;;  %v7874_v55 = vld [vmem:[#allocation2 + $0x60] sm:$0xff]   ;;  %v7877_v58 = vld [vmem:[#allocation2 + $0x98] sm:$0xff]   ;;  %v7878_v59 = vld [vmem:[#allocation2 + $0x50] sm:$0xff]   ;;  %s6057_s26 = sshll.u32 %s482_s16, 4  ;;  %s6041_s14 = scalar_lea.sflag [#allocation4], %s9383_s13  ;;  %s6058_s26 = int_to_ptr.vmem [resolvable:$true] %s6057_s26 }
  0x88   : > { %6949 = vmatprep.subr.bf16.mxu0 %v8533_v0  ;;  %v7875_v56 = vld [vmem:[#allocation2 + $0xa0] sm:$0xff]   ;;  %v7879_v60 = vld [vmem:[#allocation2 + $0x90] sm:$0xff]   ;;  %v7880_v61 = vld [vmem:[#allocation2 + $0x48] sm:$0xff]   ;;  %s8412_s25 = scalar_lea.vmem %s6058_s26, 16  ;;  %s8535_s23 = smov [#allocation14]  }
  0x89   : > { %6968 = vmatpush3.bf16.msra.mxu1 %v7870_v51  ;;  %v7881_v62 = vld [vmem:[#allocation2 + $0x88] sm:$0xff]   ;;  %v7882_v63 = vld [vmem:[#allocation2 + $0x40] sm:$0xff]   ;;  %p8413_p11 = scmp.ne.s32.totalorder %s6058_s26, %s8412_s25  ;;  %s8416_s12 = sshll.u32 %s8535_s23, 4  ;;  %s8417_s12 = int_to_ptr.vmem [resolvable:$false] %s8416_s12 }
  0x8a   : > { %6969 = vmatprep.subr.bf16.mxu1 %v8533_v0  ;;  %v7883_v1 = vld [vmem:[#allocation2 + $0x80] sm:$0xff]   ;;  %s8418_s28 = scalar_lea.vmem %s8417_s12, 32  ;;  %p8419_p6 = scmp.lt.s32.totalorder %s6058_s26, %s8417_s12 }
  0x8b   : > { %6950 = vmatpush3.bf16.msra.mxu0 %v7862_v3  ;;  %p8414_p1 = pnand %p8413_p11, %p8635_p5  ;;  %p8420_p13 = scmp.lt.s32.totalorder %s8418_s28, %s8412_s25 }
  0x8c   : > { %6951 = vmatprep.subr.bf16.mxu0 %v8533_v0 }
  0x8d   : > { %6970 = vmatpush3.bf16.msra.mxu1 %v7872_v53  ;;  %p8415_p0 = pneg %p8414_p1  ;;  %p8421_p9 = por %p8420_p13, %p8419_p6 }
  0x8e   : > { %6971 = vmatprep.subr.bf16.mxu1 %v8533_v0 }
  0x8f   : > { %6952 = vmatpush3.bf16.msra.mxu0 %v7863_v4  ;;  %p8422_p2 = pnand %p8421_p9, %p8415_p0 }
  0x90   : > { %6953 = vmatprep.subr.bf16.mxu0 %v8533_v0 }
  0x91   : > { %6972 = vmatpush3.bf16.msra.mxu1 %v7874_v55 }
  0x92   : > { %6973 = vmatprep.subr.bf16.mxu1 %v8533_v0 }
  0x93   : > { %6954 = vmatpush3.bf16.msra.mxu0 %v7864_v5 }
  0x94   : > { %6955 = vmatprep.subr.bf16.mxu0 %v8533_v0 }
  0x95   : > { %6974 = vmatpush3.bf16.msra.mxu1 %v7876_v57 }
  0x96   : > { %6975 = vmatprep.subr.bf16.mxu1 %v8533_v0 }
  0x97   : > { %6956 = vmatpush3.bf16.msra.mxu0 %v7865_v6 }
  0x98   : > { %6957 = vmatprep.subr.bf16.mxu0 %v8533_v0 }
  0x99   : > { %6976 = vmatpush3.bf16.msra.mxu1 %v7878_v59 }
  0x9a   : > { %6977 = vmatprep.subr.bf16.mxu1 %v8533_v0 }
  0x9b   : > { %6958 = vmatpush3.bf16.msra.mxu0 %v7866_v7 }
  0x9c   : > { %6959 = vmatprep.subr.bf16.mxu0 %v8533_v0 }
  0x9d   : > { %6978 = vmatpush3.bf16.msra.mxu1 %v7880_v61 }
  0x9e   : > { %6979 = vmatprep.subr.bf16.mxu1 %v8533_v0 }
  0x9f   : > { %6960 = vmatpush3.bf16.msra.mxu0 %v7867_v8 }
  0xa0   : > { %6985 = vmatprep.subr.bf16.mxu0 %v8533_v0 }
  0xa1   : > { %6980 = vmatpush3.bf16.msra.mxu1 %v7882_v63 }
  0xa2   : > { %6962 = vmatmul.mubr.bf16.vlgmr.msra.gmra.mxu0 %v497_v11  ;;  %7005 = vmatprep.subr.bf16.mxu1 %v8533_v0 }
  0xa3   : > { %7001 = vmatprep.mubr.msk.bf16.mxu0 %vm8534_vm0, %v8533_v0  ;;  %6986 = vmatpush3.bf16.msra.mxu0 %v7869_v50 }
  0xa4   : > { %6987 = vmatprep.subr.bf16.mxu0 %v8533_v0 }
  0xa7   : > { %6988 = vmatpush3.bf16.msra.mxu0 %v7871_v52 }
  0xa8   : > { %6989 = vmatprep.subr.bf16.mxu0 %v8533_v0 }
  0xab   : > { %6990 = vmatpush3.bf16.msra.mxu0 %v7873_v54 }
  0xac   : > { %6991 = vmatprep.subr.bf16.mxu0 %v8533_v0 }
  0xaf   : > { %6992 = vmatpush3.bf16.msra.mxu0 %v7875_v56 }
  0xb0   : > { %6993 = vmatprep.subr.bf16.mxu0 %v8533_v0 }
  0xb3   : > { %6994 = vmatpush3.bf16.msra.mxu0 %v7877_v58  ;;  %v8809_v58 = vld [vmem:[#allocation7 + $0x18] sm:$0xff] }
  0xb4   : > { %6995 = vmatprep.subr.bf16.mxu0 %v8533_v0 }
  0xb7   : > { %6996 = vmatpush3.bf16.msra.mxu0 %v7879_v60  ;;  %v8811_v60 = vld [vmem:[#allocation7 + $0x10] sm:$0xff] }
  0xb8   : > { %6997 = vmatprep.subr.bf16.mxu0 %v8533_v0 }
  0xbb   : > { %6998 = vmatpush3.bf16.msra.mxu0 %v7881_v62 }
  0xbc   : > { %6999 = vmatprep.subr.bf16.mxu0 %v8533_v0 }
  0xbf   : > { %7000 = vmatpush3.bf16.msra.mxu0 %v7883_v1 }
 0x162   : > { %v603_v13 = vpop.f32.mrf.mxu0 }
 0x163   : > { %v604_v14 = vadd.f32 %v6242_v12, %v603_v13 }
 0x164   : > { %v6963_v15 = vpop.f32.mrf.mxu0 }
 0x165   : > { %614 = vadd.xlane.f32.xlu0 %v604_v14  ;;  %v620_v16 = vmul.f32 %v604_v14, %v604_v14 }
 0x166   : > { %v606_v17 = vpop.f32.mrf.mxu0 }
 0x167   : > { %v607_v18 = vadd.f32 %v6242_v12, %v606_v17  ;;  %622 = vadd.xlane.f32.xlu1 %v620_v16 }
 0x168   : > { %v6964_v19 = vpop.f32.mrf.mxu0 }
 0x169   : > { %616 = vadd.xlane.f32.xlu0 %v607_v18  ;;  %v621_v20 = vmul.f32 %v607_v18, %v607_v18  ;;  %v6253_v19 = vld [vmem:[#allocation5 + $0x3] ss:$0 sm:$0xff] }
 0x16b   : > { %624 = vadd.xlane.f32.xlu1 %v621_v20 }
 0x1ee   : > { %v615_v21 = vpop.xlane.xlu0 %614 }
 0x1ef   : > { %v618_v22 = vmul.f32 0.03125, %v615_v21 }
 0x1f0   : > { %v623_v23 = vpop.xlane.xlu1 %622 }
 0x1f1   : > { %v628_v24 = vmul.f32 %v618_v22, %v618_v22  ;;  %v626_v25 = vmul.f32 0.03125, %v623_v23  ;;  %v632_v35 = vsub.f32 %v604_v14, %v618_v22 }
 0x1f2   : > { %v617_v26 = vpop.xlane.xlu0 %616 }
 0x1f3   : > { %v630_v27 = vsub.f32 %v626_v25, %v628_v24  ;;  %v619_v28 = vmul.f32 0.03125, %v617_v26  ;;  %v6254_v24 = vld [vmem:[#allocation5 + $0x4] ss:$0 sm:$0xff] }
 0x1f4   : > { %v625_v29 = vpop.xlane.xlu1 %624 }
 0x1f5   : > { %v634_v30 = vadd.f32 1e-05, %v630_v27  ;;  %v629_v31 = vmul.f32 %v619_v28, %v619_v28  ;;  %v627_v32 = vmul.f32 0.03125, %v625_v29  ;;  %v633_v40 = vsub.f32 %v607_v18, %v619_v28  ;;  %v7884_v28 = vld [vmem:[#allocation2 + $0xf8] sm:$0xff]  }
 0x1f7   : > { %8132 = vrsqrt.f32 %v634_v30  ;;  %v631_v33 = vsub.f32 %v627_v32, %v629_v31  ;;  %v7885_v30 = vld [vmem:[#allocation2 + $0xf0] sm:$0xff]   ;;  %v7886_v31 = vld [vmem:[#allocation2 + $0xe8] sm:$0xff]   ;;  %v7887_v32 = vld [vmem:[#allocation2 + $0xe0] sm:$0xff]  }
 0x1f9   : > { %v635_v34 = vadd.f32 1e-05, %v631_v33  ;;  %v7888_v33 = vld [vmem:[#allocation2 + $0xd8] sm:$0xff]  }
 0x1fb   : > { %8134 = vrsqrt.f32 %v635_v34  ;;  %v7889_v34 = vld [vmem:[#allocation2 + $0xd0] sm:$0xff]  }
 0x204   : > { %v8133_v36 = vpop.eup %8132 }
 0x205   : > { %v638_v38 = vmul.f32 %v8133_v36, %v632_v35  ;;  %v7890_v35 = vld [vmem:[#allocation2 + $0xc8] sm:$0xff]   ;;  %v7891_v36 = vld [vmem:[#allocation2 + $0xc0] sm:$0xff]  }
 0x207   : > { %v646_v41 = vmul.f32 %v6251_v37, %v638_v38 }
 0x208   : > { %v8135_v42 = vpop.eup %8134 }
 0x209   : > { %v8767_v43 = vadd.f32 %v6252_v39, %v646_v41  ;;  %v639_v44 = vmul.f32 %v8135_v42, %v633_v40  ;;  %v6264_v40 = vld [vmem:[#allocation5 + $0x6] ss:$0 sm:$0xff] }
 0x20b   : > { %670 = vadd.xlane.f32.xlu0 %v8767_v43  ;;  %v647_v45 = vmul.f32 %v6251_v37, %v639_v44  ;;  %v676_v46 = vmul.f32 %v8767_v43, %v8767_v43  ;;  %v6255_v37 = vld [vmem:[#allocation5 + $0x5] ss:$0 sm:$0xff] }
 0x20d   : > { %v8772_v47 = vadd.f32 %v6252_v39, %v647_v45  ;;  %v8803_v45 = vld [vmem:[#allocation7] sm:$0xff] }
 0x20f   : > { %678 = vadd.xlane.f32.xlu0 %v676_v46  ;;  %672 = vadd.xlane.f32.xlu1 %v8772_v47  ;;  %v677_v48 = vmul.f32 %v8772_v47, %v8772_v47  ;;  %v8805_v46 = vld [vmem:[#allocation7 + $0x8] sm:$0xff] }
 0x213   : > { %680 = vadd.xlane.f32.xlu1 %v677_v48 }
 0x294   : > { %v671_v2 = vpop.xlane.xlu0 %670 }
 0x295   : > { %v674_v3 = vmul.f32 0.03125, %v671_v2  ;;  %v6273_v2 = vld [vmem:[#allocation5 + $0x7] ss:$0 sm:$0xff] }
 0x297   : > { %v684_v6 = vmul.f32 %v674_v3, %v674_v3  ;;  %v688_v16 = vsub.f32 %v8767_v43, %v674_v3 }
 0x298   : > { %v679_v4 = vpop.xlane.xlu0 %678  ;;  %v673_v5 = vpop.xlane.xlu1 %672 }
 0x299   : > { %v682_v7 = vmul.f32 0.03125, %v679_v4  ;;  %v675_v8 = vmul.f32 0.03125, %v673_v5 }
 0x29b   : > { %v686_v9 = vsub.f32 %v682_v7, %v684_v6  ;;  %v685_v12 = vmul.f32 %v675_v8, %v675_v8  ;;  %v689_v20 = vsub.f32 %v8772_v47, %v675_v8 }
 0x29c   : > { %v681_v10 = vpop.xlane.xlu1 %680 }
 0x29d   : > { %v690_v11 = vadd.f32 1e-05, %v686_v9  ;;  %v683_v13 = vmul.f32 0.03125, %v681_v10  ;;  %v662_v10 = vld [vmem:[%s9456_s3] sm:$0xff] }
 0x29f   : > { %8136 = vrsqrt.f32 %v690_v11  ;;  %v687_v14 = vsub.f32 %v683_v13, %v685_v12  ;;  %v664_v11 = vld [vmem:[%s9456_s3 + $0x10] sm:$0xff] }
 0x2a1   : > { %v691_v15 = vadd.f32 1e-05, %v687_v14 }
 0x2a3   : > { %8138 = vrsqrt.f32 %v691_v15  ;;  %v663_v15 = vld [vmem:[%s9456_s3 + $0x8] sm:$0xff] }
 0x2ac   : > { %v8137_v17 = vpop.eup %8136 }
 0x2ad   : > { %v694_v18 = vmul.f32 %v8137_v17, %v688_v16 }
 0x2af   : > { %v702_v23 = vmul.f32 %v6253_v19, %v694_v18  ;;  %v665_v18 = vld [vmem:[%s9456_s3 + $0x18] sm:$0xff] }
 0x2b0   : > { %v8139_v21 = vpop.eup %8138 }
 0x2b1   : > { %v695_v22 = vmul.f32 %v8139_v21, %v689_v20  ;;  %v710_v26 = vadd.f32 %v6254_v24, %v702_v23 }
 0x2b3   : > { %v703_v25 = vmul.f32 %v6253_v19, %v695_v22 }
 0x2b5   : > { %v711_v27 = vadd.f32 %v6254_v24, %v703_v25 }
 0x2b7   : > { %v712_v29 = vpack.c.bf16 %v711_v27, %v710_v26 }
 0x2b9   : > { %6982 = vmatmul.mubr.bf16.vlgmr.msra.gmra.mxu1 %v712_v29  ;;  %7002 = vmatmul.mubr.bf16.vlgmr.msra.gmra.mxu0 %v712_v29 }
 0x2ba   : > { %7006 = vmatpush3.bf16.msra.mxu1 %v7884_v28  ;;  %7021 = vmatprep.mubr.msk.bf16.mxu1 %vm8534_vm0, %v8533_v0 }
 0x2bb   : > { %7007 = vmatprep.subr.bf16.mxu1 %v8533_v0 }
 0x2be   : > { %7008 = vmatpush3.bf16.msra.mxu1 %v7885_v30 }
 0x2bf   : > { %7009 = vmatprep.subr.bf16.mxu1 %v8533_v0 }
 0x2c2   : > { %7010 = vmatpush3.bf16.msra.mxu1 %v7886_v31 }
 0x2c3   : > { %7011 = vmatprep.subr.bf16.mxu1 %v8533_v0 }
 0x2c6   : > { %7012 = vmatpush3.bf16.msra.mxu1 %v7887_v32 }
 0x2c7   : > { %7013 = vmatprep.subr.bf16.mxu1 %v8533_v0 }
 0x2ca   : > { %7014 = vmatpush3.bf16.msra.mxu1 %v7888_v33 }
 0x2cb   : > { %7015 = vmatprep.subr.bf16.mxu1 %v8533_v0 }
 0x2ce   : > { %7016 = vmatpush3.bf16.msra.mxu1 %v7889_v34 }
 0x2cf   : > { %7017 = vmatprep.subr.bf16.mxu1 %v8533_v0 }
 0x2d2   : > { %7018 = vmatpush3.bf16.msra.mxu1 %v7890_v35 }
 0x2d3   : > { %7019 = vmatprep.subr.bf16.mxu1 %v8533_v0 }
 0x2d6   : > { %7020 = vmatpush3.bf16.msra.mxu1 %v7891_v36 }
 0x2d9   : > { %7022 = vmatmul.mubr.bf16.vlgmr.msra.gmra.mxu1 %v712_v29 }
 0x379   : > { %v820_v38 = vpop.f32.mrf.mxu1  ;;  %v934_v39 = vpop.f32.mrf.mxu0 }
 0x37a   : > { %v821_v44 = vadd.f32 %v6255_v37, %v820_v38  ;;  %v935_v50 = vadd.f32 %v6264_v40, %v934_v39 }
 0x37b   : > { %v6983_v41 = vpop.f32.mrf.mxu1  ;;  %v7003_v42 = vpop.f32.mrf.mxu0 }
 0x37c   : > { %v1055_v55 = vmul.f32 %v821_v44, %v8803_v45  ;;  %v1057_v62 = vmul.f32 %v821_v44, %v8811_v60 }
 0x37d   : > { %v823_v48 = vpop.f32.mrf.mxu1  ;;  %v937_v49 = vpop.f32.mrf.mxu0 }
 0x37e   : > { %v824_v51 = vadd.f32 %v6255_v37, %v823_v48  ;;  %v938_v52 = vadd.f32 %v6264_v40, %v937_v49 }
 0x37f   : > { %v6984_v53 = vpop.f32.mrf.mxu1  ;;  %v7004_v54 = vpop.f32.mrf.mxu0 }
 0x380   : > { %v1056_v56 = vmul.f32 %v824_v51, %v8805_v46  ;;  %v1061_v57 = vpack.c.bf16 %v938_v52, %v935_v50  ;;  %v1058_v61 = vmul.f32 %v824_v51, %v8809_v58 }
 0x382   : > { %7025 = vmatprep.subr.bf16.mxu0 %v1061_v57  ;;  %v1059_v59 = vpack.c.bf16 %v1056_v56, %v1055_v55  ;;  %v1060_v63 = vpack.c.bf16 %v1058_v61, %v1057_v62 }
 0x383   : > { %7026 = vmatpush3.bf16.xpose.msra.mxu0 %v1061_v57 }
 0x384   : > { %7027 = vmatprep.mubr.bf16.mxu0 %v1059_v59 }
 0x38a   : > { %7028 = vmatmul.mubr.bf16.vlgmr.msra.gmra.mxu0 %v1060_v63 }
 0x399   : > { %v1048_v1 = vpop.f32.mrf.mxu1 }
 0x39a   : > { %v1049_v5 = vadd.f32 %v6273_v2, %v1048_v1 }
 0x39b   : > { %v7023_v3 = vpop.f32.mrf.mxu1 }
 0x39c   : > { %v7892_v3 = vld [vmem:[#allocation2 + $0x138] sm:$0xff]  }
 0x39d   : > { %v1051_v4 = vpop.f32.mrf.mxu1 }
 0x39e   : > { %v1052_v6 = vadd.f32 %v6273_v2, %v1051_v4  ;;  %v8840_v2 = vld [vmem:[#allocation10] sm:$0xff]  ;;  %v7893_v4 = vld [vmem:[#allocation2 + $0x130] sm:$0xff]  }
 0x39f   : > { %v7024_v7 = vpop.f32.mrf.mxu1  ;;  %7045 = vmatprep.mubr.msk.f32.mxu0 %vm1218_vm2, %v8840_v2 }
 0x3a0   : > { %v1158_v8 = vpack.c.bf16 %v1052_v6, %v1049_v5  ;;  %v7894_v5 = vld [vmem:[#allocation2 + $0x128] sm:$0xff]   ;;  %v7895_v6 = vld [vmem:[#allocation2 + $0x120] sm:$0xff]   ;;  %v7896_v7 = vld [vmem:[#allocation2 + $0x118] sm:$0xff]  }
 0x3a2   : > { %7031 = vmatprep.subr.bf16.mxu1 %v1158_v8 }
 0x3a3   : > { %7032 = vmatpush3.bf16.msra.mxu1 %v1158_v8  ;;  %v7897_v8 = vld [vmem:[#allocation2 + $0x110] sm:$0xff]  }
 0x3a4   : > { %7048 = vmatprep.subr.bf16.mxu1 %v8533_v0 }
 0x44a   : > { %v7029_v9 = vpop.f32.mrf.mxu0 }
 0x44b   : > { %v1105_v16 = vadd.f32 %v7029_v9, %v664_v11  ;;  %v7898_v9 = vld [vmem:[#allocation2 + $0x108] sm:$0xff]  }
 0x44c   : > { %v1096_v12 = vpop.f32.mrf.mxu0 }
 0x44d   : > { %v1097_v13 = vadd.f32 %v1096_v12, %v662_v10  ;;  %v1118_v23 = vsel %vm1111_vm1, %v1105_v16, -inf }
 0x44e   : > { %v7030_v14 = vpop.f32.mrf.mxu0 }
 0x44f   : > { %v1112_v17 = vsel %vm1111_vm1, %v1097_v13, -inf  ;;  %v1108_v21 = vadd.f32 %v7030_v14, %v665_v18  ;;  %v8855_v18 = vld [vmem:[#allocation10 + $0x8] sm:$0xff] }
 0x450   : > { %v1099_v19 = vpop.f32.mrf.mxu0  ;;  %1113 = vmax.xlane.f32.xlu0 %v1112_v17 }
 0x451   : > { %v1100_v20 = vadd.f32 %v1099_v19, %v663_v15  ;;  %v1121_v24 = vsel %vm1111_vm1, %v1108_v21, -inf  ;;  %v7899_v19 = vld [vmem:[#allocation2 + $0x100] sm:$0xff]  }
 0x453   : > { %v1115_v22 = vsel %vm1111_vm1, %v1100_v20, -inf }
 0x454   : > { %1116 = vmax.xlane.f32.xlu1 %v1115_v22  ;;  %1119 = vmax.xlane.f32.xlu0 %v1118_v23 }
 0x458   : > { %1122 = vmax.xlane.f32.xlu1 %v1121_v24  ;;  %v6294_v24 = vld [vmem:[#allocation5 + $0x8] ss:$0 sm:$0xff] }
 0x4d9   : > { %v1114_v25 = vpop.xlane.xlu0 %1113 }
 0x4da   : > { %v1124_v26 = vsub.f32 %v1097_v13, %v1114_v25 }
 0x4dc   : > { %v1128_v27 = vmul.f32 1.442695, %v1124_v26 }
 0x4dd   : > { %v1117_v28 = vpop.xlane.xlu1 %1116  ;;  %v1120_v29 = vpop.xlane.xlu0 %1119 }
 0x4de   : > { %8140 = vpow2.f32 %v1128_v27  ;;  %v1125_v30 = vsub.f32 %v1100_v20, %v1117_v28  ;;  %v1126_v31 = vsub.f32 %v1105_v16, %v1120_v29 }
 0x4e0   : > { %v1130_v32 = vmul.f32 1.442695, %v1125_v30  ;;  %v1132_v33 = vmul.f32 1.442695, %v1126_v31 }
 0x4e1   : > { %v1123_v34 = vpop.xlane.xlu1 %1122 }
 0x4e2   : > { %8142 = vpow2.f32 %v1130_v32  ;;  %v1127_v35 = vsub.f32 %v1108_v21, %v1123_v34  ;;  %v7902_v34 = vld [vmem:[#allocation2 + $0x168] sm:$0xff]  }
 0x4e3   : > { %8144 = vpow2.f32 %v1132_v33  ;;  %v7900_v33 = vld [vmem:[#allocation2 + $0x178] sm:$0xff]  }
 0x4e4   : > { %v1134_v36 = vmul.f32 1.442695, %v1127_v35  ;;  %v7903_v35 = vld [vmem:[#allocation2 + $0x160] sm:$0xff]  }
 0x4e6   : > { %8146 = vpow2.f32 %v1134_v36  ;;  %v7904_v36 = vld [vmem:[#allocation2 + $0x158] sm:$0xff]  }
 0x4eb   : > { %v8141_v37 = vpop.eup %8140 }
 0x4ec   : > { %v1136_v38 = vsel %vm1111_vm1, %v8141_v37, 0.0 }
 0x4ed   : > { %1137 = vadd.xlane.f32.xlu0 %v1136_v38  ;;  %v7906_v38 = vld [vmem:[#allocation2 + $0x148] sm:$0xff]  }
 0x4ef   : > { %v8143_v39 = vpop.eup %8142 }
 0x4f0   : > { %v8145_v40 = vpop.eup %8144  ;;  %v1139_v41 = vsel %vm1111_vm1, %v8143_v39, 0.0 }
 0x4f1   : > { %1140 = vadd.xlane.f32.xlu1 %v1139_v41  ;;  %v1142_v42 = vsel %vm1111_vm1, %v8145_v40, 0.0 }
 0x4f2   : > { %1143 = vadd.xlane.f32.xlu0 %v1142_v42 }
 0x4f3   : > { %v8147_v44 = vpop.eup %8146 }
 0x4f4   : > { %v1145_v48 = vsel %vm1111_vm1, %v8147_v44, 0.0 }
 0x4f5   : > { %1146 = vadd.xlane.f32.xlu1 %v1145_v48 }
 0x576   : > { %v1138_v49 = vpop.xlane.xlu0 %1137 }
 0x577   : > { %8148 = vrcp.f32 %v1138_v49 }
 0x57a   : > { %v1141_v50 = vpop.xlane.xlu1 %1140 }
 0x57b   : > { %8150 = vrcp.f32 %v1141_v50  ;;  %v1144_v51 = vpop.xlane.xlu0 %1143 }
 0x57c   : > { %8152 = vrcp.f32 %v1144_v51 }
 0x57e   : > { %v1147_v52 = vpop.xlane.xlu1 %1146 }
 0x57f   : > { %8154 = vrcp.f32 %v1147_v52 }
 0x584   : > { %v8149_v53 = vpop.eup %8148 }
 0x585   : > { %v1152_v55 = vmul.f32 %v8149_v53, %v8141_v37  ;;  %v7905_v37 = vld [vmem:[#allocation2 + $0x150] sm:$0xff]  }
 0x588   : > { %v8151_v54 = vpop.eup %8150 }
 0x589   : > { %v1153_v56 = vmul.f32 %v8151_v54, %v8143_v39  ;;  %v8153_v57 = vpop.eup %8152  ;;  %v7907_v39 = vld [vmem:[#allocation2 + $0x140] sm:$0xff]  }
 0x58a   : > { %v1154_v62 = vmul.f32 %v8153_v57, %v8145_v40  ;;  %v7908_v40 = vld [vmem:[#allocation2 + $0x1b8] sm:$0xff]  }
 0x58b   : > { %v1156_v59 = vpack.c.bf16 %v1153_v56, %v1152_v55 }
 0x58c   : > { %v8155_v61 = vpop.eup %8154 }
 0x58d   : > { %7033 = vmatprep.mubr.msk.bf16.mxu1 %vm1111_vm1, %v1156_v59  ;;  %v1155_v63 = vmul.f32 %v8155_v61, %v8147_v44 }
 0x58f   : > { %v1157_v1 = vpack.c.bf16 %v1155_v63, %v1154_v62 }
 0x591   : > { %7034 = vmatmul.mubr.msk.bf16.vlgmr.msra.gmra.mxu1 %vm1111_vm1, %v1157_v1  ;;  %v6295_v1 = vld [vmem:[#allocation5 + $0x9] ss:$0 sm:$0xff] }
 0x592   : > { %7064 = vmatprep.mubr.msk.bf16.mxu1 %vm8534_vm0, %v8533_v0  ;;  %7049 = vmatpush3.bf16.msra.mxu1 %v7892_v3 }
 0x593   : > { %7050 = vmatprep.subr.bf16.mxu1 %v8533_v0 }
 0x596   : > { %7051 = vmatpush3.bf16.msra.mxu1 %v7893_v4 }
 0x597   : > { %7052 = vmatprep.subr.bf16.mxu1 %v8533_v0 }
 0x59a   : > { %7053 = vmatpush3.bf16.msra.mxu1 %v7894_v5 }
 0x59b   : > { %7054 = vmatprep.subr.bf16.mxu1 %v8533_v0 }
 0x59e   : > { %7055 = vmatpush3.bf16.msra.mxu1 %v7895_v6 }
 0x59f   : > { %7056 = vmatprep.subr.bf16.mxu1 %v8533_v0 }
 0x5a2   : > { %7057 = vmatpush3.bf16.msra.mxu1 %v7896_v7  ;;  %v6296_v7 = vld [vmem:[#allocation5 + $0xa] ss:$0 sm:$0xff] }
 0x5a3   : > { %7058 = vmatprep.subr.bf16.mxu1 %v8533_v0 }
 0x5a6   : > { %7059 = vmatpush3.bf16.msra.mxu1 %v7897_v8 }
 0x5a7   : > { %7060 = vmatprep.subr.bf16.mxu1 %v8533_v0 }
 0x5aa   : > { %7061 = vmatpush3.bf16.msra.mxu1 %v7898_v9 }
 0x5ab   : > { %7062 = vmatprep.subr.bf16.mxu1 %v8533_v0 }
 0x5ae   : > { %7063 = vmatpush3.bf16.msra.mxu1 %v7899_v19  ;;  %v7915_v19 = vld [vmem:[#allocation2 + $0x180] sm:$0xff]  }
 0x5af   : > { %7088 = vmatprep.subr.bf16.mxu1 %v8533_v0 }
 0x651   : > { %v7035_v10 = vpop.f32.mrf.mxu1 }
 0x652   : > { %v1216_v15 = vmul.f32 %v7035_v10, %v8811_v60 }
 0x653   : > { %v1199_v11 = vpop.f32.mrf.mxu1 }
 0x654   : > { %v1214_v17 = vmul.f32 %v1199_v11, %v8803_v45 }
 0x655   : > { %v7036_v12 = vpop.f32.mrf.mxu1 }
 0x656   : > { %v1217_v13 = vmul.f32 %v7036_v12, %v8809_v58  ;;  %v7909_v12 = vld [vmem:[#allocation2 + $0x1b0] sm:$0xff]  }
 0x657   : > { %v1202_v14 = vpop.f32.mrf.mxu1 }
 0x658   : > { %7037 = vmatprep.subr.mxu0 %v1217_v13  ;;  %v1215_v16 = vmul.f32 %v1202_v14, %v8805_v46  ;;  %v7911_v14 = vld [vmem:[#allocation2 + $0x1a0] sm:$0xff]  }
 0x659   : > { %7038 = vmatpush3.msra.mxu0 %v1217_v13  ;;  %v7910_v13 = vld [vmem:[#allocation2 + $0x1a8] sm:$0xff]  }
 0x65a   : > { %7039 = vmatprep.subr.mxu0 %v1216_v15 }
 0x65b   : > { %7040 = vmatpush3.msra.mxu0 %v1216_v15  ;;  %v7912_v15 = vld [vmem:[#allocation2 + $0x198] sm:$0xff]  }
 0x65c   : > { %7041 = vmatprep.subr.mxu0 %v1215_v16 }
 0x65d   : > { %7042 = vmatpush3.msra.mxu0 %v1215_v16  ;;  %v7913_v16 = vld [vmem:[#allocation2 + $0x190] sm:$0xff]  }
 0x65e   : > { %7043 = vmatprep.subr.mxu0 %v1214_v17 }
 0x65f   : > { %7044 = vmatpush3.msra.mxu0 %v1214_v17  ;;  %v7914_v17 = vld [vmem:[#allocation2 + $0x188] sm:$0xff]  }
 0x660   : > { %7046 = vmatmul.mubr.msk.f32.vlgmr.msra.gmra.mxu0 %vm1218_vm2, %v8855_v18  ;;  %7068 = vmatprep.subr.bf16.mxu0 %v8533_v0 }
 0x661   : > { %7084 = vmatprep.mubr.msk.bf16.mxu0 %vm8534_vm0, %v8533_v0  ;;  %7069 = vmatpush3.bf16.msra.mxu0 %v7900_v33 }
 0x662   : > { %7070 = vmatprep.subr.bf16.mxu0 %v8533_v0 }
 0x720   : > { %v7047_v20 = vpop.f32.mrf.mxu0 }
 0x722   : > { %v1291_v21 = vpop.f32.mrf.mxu0 }
 0x723   : > { %v1300_v22 = vpack.c.bf16 %v7047_v20, %v1291_v21  ;;  %v6297_v20 = vld [vmem:[#allocation5 + $0xb] ss:$0 sm:$0xff] }
 0x725   : > { %7065 = vmatmul.mubr.bf16.vlgmr.msra.gmra.mxu1 %v1300_v22 }
 0x726   : > { %7104 = vmatprep.mubr.msk.bf16.mxu1 %vm8534_vm0, %v8533_v0  ;;  %7089 = vmatpush3.bf16.msra.mxu1 %v7908_v40 }
 0x727   : > { %7090 = vmatprep.subr.bf16.mxu1 %v8533_v0 }
 0x72a   : > { %7091 = vmatpush3.bf16.msra.mxu1 %v7909_v12 }
 0x72b   : > { %7092 = vmatprep.subr.bf16.mxu1 %v8533_v0 }
 0x72e   : > { %7093 = vmatpush3.bf16.msra.mxu1 %v7910_v13 }
 0x72f   : > { %7094 = vmatprep.subr.bf16.mxu1 %v8533_v0 }
 0x732   : > { %7095 = vmatpush3.bf16.msra.mxu1 %v7911_v14 }
 0x733   : > { %7096 = vmatprep.subr.bf16.mxu1 %v8533_v0 }
 0x736   : > { %7097 = vmatpush3.bf16.msra.mxu1 %v7912_v15 }
 0x737   : > { %7098 = vmatprep.subr.bf16.mxu1 %v8533_v0 }
 0x73a   : > { %7099 = vmatpush3.bf16.msra.mxu1 %v7913_v16 }
 0x73b   : > { %7100 = vmatprep.subr.bf16.mxu1 %v8533_v0 }
 0x73e   : > { %7101 = vmatpush3.bf16.msra.mxu1 %v7914_v17 }
 0x73f   : > { %7102 = vmatprep.subr.bf16.mxu1 %v8533_v0 }
 0x742   : > { %7103 = vmatpush3.bf16.msra.mxu1 %v7915_v19 }
 0x743   : > { %7128 = vmatprep.subr.bf16.mxu1 %v8533_v0 }
 0x7e5   : > { %v1400_v23 = vpop.f32.mrf.mxu1 }
 0x7e6   : > { %v1407_v25 = vadd.f32 %v1400_v23, %v8767_v43 }
 0x7e7   : > { %v7066_v26 = vpop.f32.mrf.mxu1 }
 0x7e8   : > { %v8866_v27 = vadd.f32 %v6294_v24, %v1407_v25 }
 0x7e9   : > { %v1403_v28 = vpop.f32.mrf.mxu1 }
 0x7ea   : > { %v1408_v29 = vadd.f32 %v1403_v28, %v8772_v47  ;;  %1423 = vadd.xlane.f32.xlu0 %v8866_v27  ;;  %v1429_v32 = vmul.f32 %v8866_v27, %v8866_v27  ;;  %v7901_v47 = vld [vmem:[#allocation2 + $0x170] sm:$0xff]  }
 0x7eb   : > { %v7067_v30 = vpop.f32.mrf.mxu1  ;;  %7071 = vmatpush3.bf16.msra.mxu0 %v7901_v47 }
 0x7ec   : > { %v8870_v31 = vadd.f32 %v6294_v24, %v1408_v29  ;;  %7072 = vmatprep.subr.bf16.mxu0 %v8533_v0 }
 0x7ee   : > { %1431 = vadd.xlane.f32.xlu0 %v1429_v32  ;;  %1425 = vadd.xlane.f32.xlu1 %v8870_v31  ;;  %v1430_v43 = vmul.f32 %v8870_v31, %v8870_v31 }
 0x7ef   : > { %7073 = vmatpush3.bf16.msra.mxu0 %v7902_v34 }
 0x7f0   : > { %7074 = vmatprep.subr.bf16.mxu0 %v8533_v0 }
 0x7f2   : > { %1433 = vadd.xlane.f32.xlu1 %v1430_v43 }
 0x7f3   : > { %7075 = vmatpush3.bf16.msra.mxu0 %v7903_v35 }
 0x7f4   : > { %7076 = vmatprep.subr.bf16.mxu0 %v8533_v0 }
 0x7f7   : > { %7077 = vmatpush3.bf16.msra.mxu0 %v7904_v36 }
 0x7f8   : > { %7078 = vmatprep.subr.bf16.mxu0 %v8533_v0 }
 0x7fb   : > { %7079 = vmatpush3.bf16.msra.mxu0 %v7905_v37 }
 0x7fc   : > { %7080 = vmatprep.subr.bf16.mxu0 %v8533_v0 }
 0x7ff   : > { %7081 = vmatpush3.bf16.msra.mxu0 %v7906_v38 }
 0x800   : > { %7082 = vmatprep.subr.bf16.mxu0 %v8533_v0 }
 0x803   : > { %7083 = vmatpush3.bf16.msra.mxu0 %v7907_v39  ;;  %v6314_v39 = vld [vmem:[#allocation5 + $0xc] ss:$0 sm:$0xff] }
 0x804   : > { %7108 = vmatprep.subr.bf16.mxu0 %v8533_v0 }
 0x873   : > { %v1424_v41 = vpop.xlane.xlu0 %1423 }
 0x874   : > { %v1427_v42 = vmul.f32 0.03125, %v1424_v41 }
 0x876   : > { %v1437_v49 = vmul.f32 %v1427_v42, %v1427_v42  ;;  %v1441_v61 = vsub.f32 %v8866_v27, %v1427_v42 }
 0x877   : > { %v1432_v44 = vpop.xlane.xlu0 %1431  ;;  %v1426_v48 = vpop.xlane.xlu1 %1425 }
 0x878   : > { %v1435_v50 = vmul.f32 0.03125, %v1432_v44  ;;  %v1428_v51 = vmul.f32 0.03125, %v1426_v48 }
 0x87a   : > { %v1439_v52 = vsub.f32 %v1435_v50, %v1437_v49  ;;  %v1438_v55 = vmul.f32 %v1428_v51, %v1428_v51  ;;  %v1442_v3 = vsub.f32 %v8870_v31, %v1428_v51 }
 0x87b   : > { %v1434_v53 = vpop.xlane.xlu1 %1433 }
 0x87c   : > { %v1443_v54 = vadd.f32 1e-05, %v1439_v52  ;;  %v1436_v56 = vmul.f32 0.03125, %v1434_v53  ;;  %v7916_v52 = vld [vmem:[#allocation2 + $0x1f8] sm:$0xff]  }
 0x87d   : > { %v7917_v53 = vld [vmem:[#allocation2 + $0x238] sm:$0xff]  }
 0x87e   : > { %8156 = vrsqrt.f32 %v1443_v54  ;;  %v1440_v57 = vsub.f32 %v1436_v56, %v1438_v55  ;;  %v7919_v54 = vld [vmem:[#allocation2 + $0x230] sm:$0xff]   ;;  %v7920_v55 = vld [vmem:[#allocation2 + $0x1e8] sm:$0xff]  }
 0x87f   : > { %v7921_v56 = vld [vmem:[#allocation2 + $0x228] sm:$0xff]  }
 0x880   : > { %v1444_v59 = vadd.f32 1e-05, %v1440_v57  ;;  %v7922_v57 = vld [vmem:[#allocation2 + $0x1e0] sm:$0xff]  }
 0x882   : > { %8158 = vrsqrt.f32 %v1444_v59  ;;  %v7923_v59 = vld [vmem:[#allocation2 + $0x220] sm:$0xff]  }
 0x88b   : > { %v8157_v62 = vpop.eup %8156 }
 0x88c   : > { %v1447_v63 = vmul.f32 %v8157_v62, %v1441_v61  ;;  %v7924_v61 = vld [vmem:[#allocation2 + $0x1d8] sm:$0xff]  }
 0x88d   : > { %v7925_v62 = vld [vmem:[#allocation2 + $0x218] sm:$0xff]  }
 0x88e   : > { %v1455_v6 = vmul.f32 %v6295_v1, %v1447_v63  ;;  %v7926_v63 = vld [vmem:[#allocation2 + $0x1d0] sm:$0xff]  }
 0x88f   : > { %v8159_v4 = vpop.eup %8158 }
 0x890   : > { %v1448_v5 = vmul.f32 %v8159_v4, %v1442_v3  ;;  %v1463_v9 = vadd.f32 %v6296_v7, %v1455_v6  ;;  %v7928_v3 = vld [vmem:[#allocation2 + $0x1c8] sm:$0xff]   ;;  %v7931_v6 = vld [vmem:[#allocation2 + $0x200] sm:$0xff]  }
 0x891   : > { %v7929_v4 = vld [vmem:[#allocation2 + $0x208] sm:$0xff]  }
 0x892   : > { %v1456_v8 = vmul.f32 %v6295_v1, %v1448_v5  ;;  %v7927_v1 = vld [vmem:[#allocation2 + $0x210] sm:$0xff]   ;;  %v7930_v5 = vld [vmem:[#allocation2 + $0x1c0] sm:$0xff]  }
 0x894   : > { %v1464_v10 = vadd.f32 %v6296_v7, %v1456_v8 }
 0x896   : > { %v1465_v11 = vpack.c.bf16 %v1464_v10, %v1463_v9 }
 0x898   : > { %7085 = vmatmul.mubr.bf16.vlgmr.msra.gmra.mxu0 %v1465_v11 }
 0x899   : > { %7124 = vmatprep.mubr.msk.bf16.mxu0 %vm8534_vm0, %v8533_v0  ;;  %7109 = vmatpush3.bf16.msra.mxu0 %v7916_v52 }
 0x89a   : > { %7110 = vmatprep.subr.bf16.mxu0 %v8533_v0 }
 0x958   : > { %v1573_v21 = vpop.f32.mrf.mxu0 }
 0x959   : > { %v1574_v22 = vadd.f32 %v6297_v20, %v1573_v21 }
 0x95a   : > { %v7086_v23 = vpop.f32.mrf.mxu0 }
 0x95b   : > { %v1582_v24 = vmul.f32 0.70710677, %v1574_v22  ;;  %v1580_v33 = vmul.f32 0.5, %v1574_v22 }
 0x95c   : > { %v1576_v25 = vpop.f32.mrf.mxu0 }
 0x95d   : > { %8160 = verf.f32 %v1582_v24  ;;  %v1577_v26 = vadd.f32 %v6297_v20, %v1576_v25  ;;  %v6319_v25 = vld [vmem:[#allocation5 + $0xd] ss:$0 sm:$0xff] }
 0x95e   : > { %v7087_v28 = vpop.f32.mrf.mxu0 }
 0x95f   : > { %v1583_v29 = vmul.f32 0.70710677, %v1577_v26  ;;  %v1581_v47 = vmul.f32 0.5, %v1577_v26 }
 0x961   : > { %8162 = verf.f32 %v1583_v29 }
 0x96a   : > { %v8161_v30 = vpop.eup %8160 }
 0x96b   : > { %v1586_v32 = vadd.f32 1.0, %v8161_v30 }
 0x96d   : > { %v1588_v35 = vmul.f32 %v1586_v32, %v1580_v33  ;;  %v6320_v32 = vld [vmem:[#allocation5 + $0xe] ss:$0 sm:$0xff] }
 0x96e   : > { %v8163_v43 = vpop.eup %8162 }
 0x96f   : > { %v1587_v34 = vadd.f32 1.0, %v8163_v43 }
 0x971   : > { %v1589_v36 = vmul.f32 %v1587_v34, %v1581_v47  ;;  %v7932_v34 = vld [vmem:[#allocation2 + $0x278] sm:$0xff]  }
 0x973   : > { %v1590_v37 = vpack.c.bf16 %v1589_v36, %v1588_v35  ;;  %v7933_v36 = vld [vmem:[#allocation2 + $0x270] sm:$0xff]  }
 0x975   : > { %7105 = vmatmul.mubr.bf16.vlgmr.msra.gmra.mxu1 %v1590_v37  ;;  %v7934_v37 = vld [vmem:[#allocation2 + $0x268] sm:$0xff]  }
 0x976   : > { %7144 = vmatprep.mubr.msk.bf16.mxu1 %vm8534_vm0, %v8533_v0  ;;  %7129 = vmatpush3.bf16.msra.mxu1 %v7917_v53 }
 0x977   : > { %7130 = vmatprep.subr.bf16.mxu1 %v8533_v0 }
 0x97a   : > { %7131 = vmatpush3.bf16.msra.mxu1 %v7919_v54 }
 0x97b   : > { %7132 = vmatprep.subr.bf16.mxu1 %v8533_v0 }
 0x97e   : > { %7133 = vmatpush3.bf16.msra.mxu1 %v7921_v56 }
 0x97f   : > { %7134 = vmatprep.subr.bf16.mxu1 %v8533_v0 }
 0x982   : > { %7135 = vmatpush3.bf16.msra.mxu1 %v7923_v59 }
 0x983   : > { %7136 = vmatprep.subr.bf16.mxu1 %v8533_v0 }
 0x986   : > { %7137 = vmatpush3.bf16.msra.mxu1 %v7925_v62 }
 0x987   : > { %7138 = vmatprep.subr.bf16.mxu1 %v8533_v0 }
 0x98a   : > { %7139 = vmatpush3.bf16.msra.mxu1 %v7927_v1 }
 0x98b   : > { %7140 = vmatprep.subr.bf16.mxu1 %v8533_v0 }
 0x98e   : > { %7141 = vmatpush3.bf16.msra.mxu1 %v7929_v4 }
 0x98f   : > { %7142 = vmatprep.subr.bf16.mxu1 %v8533_v0 }
 0x992   : > { %7143 = vmatpush3.bf16.msra.mxu1 %v7931_v6 }
 0xa35   : > { %v1690_v38 = vpop.f32.mrf.mxu1 }
 0xa36   : > { %v1697_v40 = vadd.f32 %v1690_v38, %v8866_v27  ;;  %v7935_v38 = vld [vmem:[#allocation2 + $0x260] sm:$0xff]  }
 0xa37   : > { %v7106_v41 = vpop.f32.mrf.mxu1 }
 0xa38   : > { %v8900_v42 = vadd.f32 %v6314_v39, %v1697_v40  ;;  %v7937_v40 = vld [vmem:[#allocation2 + $0x250] sm:$0xff]   ;;  %v7938_v41 = vld [vmem:[#allocation2 + $0x248] sm:$0xff]  }
 0xa39   : > { %v1693_v44 = vpop.f32.mrf.mxu1 }
 0xa3a   : > { %v1698_v48 = vadd.f32 %v1693_v44, %v8870_v31  ;;  %1718 = vadd.xlane.f32.xlu0 %v8900_v42  ;;  %v1724_v51 = vmul.f32 %v8900_v42, %v8900_v42  ;;  %v7918_v31 = vld [vmem:[#allocation2 + $0x1f0] sm:$0xff]   ;;  %v7939_v44 = vld [vmem:[#allocation2 + $0x240] sm:$0xff]  }
 0xa3b   : > { %v7107_v49 = vpop.f32.mrf.mxu1  ;;  %7111 = vmatpush3.bf16.msra.mxu0 %v7918_v31 }
 0xa3c   : > { %v8904_v50 = vadd.f32 %v6314_v39, %v1698_v48  ;;  %7112 = vmatprep.subr.bf16.mxu0 %v8533_v0  ;;  %v7936_v39 = vld [vmem:[#allocation2 + $0x258] sm:$0xff]   ;;  %v6321_v48 = vld [vmem:[#allocation5 + $0xf] ss:$0 sm:$0xff] }
 0xa3e   : > { %1726 = vadd.xlane.f32.xlu0 %v1724_v51  ;;  %1720 = vadd.xlane.f32.xlu1 %v8904_v50  ;;  %v1725_v27 = vmul.f32 %v8904_v50, %v8904_v50 }
 0xa3f   : > { %7113 = vmatpush3.bf16.msra.mxu0 %v7920_v55 }
 0xa40   : > { %7114 = vmatprep.subr.bf16.mxu0 %v8533_v0 }
 0xa42   : > { %1728 = vadd.xlane.f32.xlu1 %v1725_v27  ;;  %v6330_v27 = vld [vmem:[#allocation5 + $0x10] ss:$0 sm:$0xff] }
 0xa43   : > { %7115 = vmatpush3.bf16.msra.mxu0 %v7922_v57 }
 0xa44   : > { %7116 = vmatprep.subr.bf16.mxu0 %v8533_v0 }
 0xa47   : > { %7117 = vmatpush3.bf16.msra.mxu0 %v7924_v61 }
 0xa48   : > { %7118 = vmatprep.subr.bf16.mxu0 %v8533_v0 }
 0xa4b   : > { %7119 = vmatpush3.bf16.msra.mxu0 %v7926_v63 }
 0xa4c   : > { %7120 = vmatprep.subr.bf16.mxu0 %v8533_v0 }
 0xa4f   : > { %7121 = vmatpush3.bf16.msra.mxu0 %v7928_v3 }
 0xa50   : > { %7122 = vmatprep.subr.bf16.mxu0 %v8533_v0 }
 0xa53   : > { %7123 = vmatpush3.bf16.msra.mxu0 %v7930_v5 }
 0xa54   : > { %7148 = vmatprep.subr.bf16.mxu0 %v8533_v0 }
 0xac3   : > { %v1719_v7 = vpop.xlane.xlu0 %1718 }
 0xac4   : > { %v1722_v8 = vmul.f32 0.03125, %v1719_v7 }
 0xac6   : > { %v1732_v11 = vmul.f32 %v1722_v8, %v1722_v8  ;;  %v1736_v22 = vsub.f32 %v8900_v42, %v1722_v8 }
 0xac7   : > { %v1727_v9 = vpop.xlane.xlu0 %1726  ;;  %v1721_v10 = vpop.xlane.xlu1 %1720 }
 0xac8   : > { %v1730_v12 = vmul.f32 0.03125, %v1727_v9  ;;  %v1723_v13 = vmul.f32 0.03125, %v1721_v10  ;;  %v6339_v9 = vld [vmem:[#allocation5 + $0x11] ss:$0 sm:$0xff] }
 0xaca   : > { %v1734_v14 = vsub.f32 %v1730_v12, %v1732_v11  ;;  %v1733_v17 = vmul.f32 %v1723_v13, %v1723_v13  ;;  %v1737_v26 = vsub.f32 %v8904_v50, %v1723_v13 }
 0xacb   : > { %v1729_v15 = vpop.xlane.xlu1 %1728 }
 0xacc   : > { %v1738_v16 = vadd.f32 1e-05, %v1734_v14  ;;  %v1731_v19 = vmul.f32 0.03125, %v1729_v15  ;;  %v6315_v15 = vld [vmem:[%s9456_s3 + $0x20] sm:$0xff] }
 0xace   : > { %8164 = vrsqrt.f32 %v1738_v16  ;;  %v1735_v20 = vsub.f32 %v1731_v19, %v1733_v17 }
 0xad0   : > { %v1739_v21 = vadd.f32 1e-05, %v1735_v20  ;;  %v6316_v20 = vld [vmem:[%s9456_s3 + $0x28] sm:$0xff] }
 0xad2   : > { %8166 = vrsqrt.f32 %v1739_v21 }
 0xadb   : > { %v8165_v23 = vpop.eup %8164 }
 0xadc   : > { %v1742_v24 = vmul.f32 %v8165_v23, %v1736_v22  ;;  %v6318_v23 = vld [vmem:[%s9456_s3 + $0x38] sm:$0xff] }
 0xade   : > { %v1750_v30 = vmul.f32 %v6319_v25, %v1742_v24 }
 0xadf   : > { %v8167_v28 = vpop.eup %8166 }
 0xae0   : > { %v1743_v29 = vmul.f32 %v8167_v28, %v1737_v26  ;;  %v1758_v33 = vadd.f32 %v6320_v32, %v1750_v30 }
 0xae2   : > { %v1751_v43 = vmul.f32 %v6319_v25, %v1743_v29 }
 0xae4   : > { %v1759_v47 = vadd.f32 %v6320_v32, %v1751_v43 }
 0xae6   : > { %v1760_v35 = vpack.c.bf16 %v1759_v47, %v1758_v33 }
 0xae8   : > { %7125 = vmatmul.mubr.bf16.vlgmr.msra.gmra.mxu0 %v1760_v35  ;;  %7145 = vmatmul.mubr.bf16.vlgmr.msra.gmra.mxu1 %v1760_v35 }
 0xae9   : > { %7149 = vmatpush3.bf16.msra.mxu0 %v7932_v34  ;;  %7164 = vmatprep.mubr.msk.bf16.mxu0 %vm8534_vm0, %v8533_v0 }
 0xaea   : > { %7150 = vmatprep.subr.bf16.mxu0 %v8533_v0 }
 0xaed   : > { %7151 = vmatpush3.bf16.msra.mxu0 %v7933_v36 }
 0xaee   : > { %7152 = vmatprep.subr.bf16.mxu0 %v8533_v0 }
 0xaf1   : > { %7153 = vmatpush3.bf16.msra.mxu0 %v7934_v37 }
 0xaf2   : > { %7154 = vmatprep.subr.bf16.mxu0 %v8533_v0 }
 0xaf5   : > { %7155 = vmatpush3.bf16.msra.mxu0 %v7935_v38 }
 0xaf6   : > { %7156 = vmatprep.subr.bf16.mxu0 %v8533_v0 }
 0xaf9   : > { %7157 = vmatpush3.bf16.msra.mxu0 %v7936_v39 }
 0xafa   : > { %7158 = vmatprep.subr.bf16.mxu0 %v8533_v0 }
 0xafd   : > { %7159 = vmatpush3.bf16.msra.mxu0 %v7937_v40 }
 0xafe   : > { %7160 = vmatprep.subr.bf16.mxu0 %v8533_v0 }
 0xb01   : > { %7161 = vmatpush3.bf16.msra.mxu0 %v7938_v41 }
 0xb02   : > { %7162 = vmatprep.subr.bf16.mxu0 %v8533_v0 }
 0xb05   : > { %7163 = vmatpush3.bf16.msra.mxu0 %v7939_v44 }
 0xb08   : > { %7165 = vmatmul.mubr.bf16.vlgmr.msra.gmra.mxu0 %v1760_v35 }
 0xba8   : > { %v1868_v49 = vpop.f32.mrf.mxu0  ;;  %v1982_v51 = vpop.f32.mrf.mxu1 }
 0xba9   : > { %v1869_v31 = vadd.f32 %v6321_v48, %v1868_v49  ;;  %v1983_v56 = vadd.f32 %v6330_v27, %v1982_v51 }
 0xbaa   : > { %v7126_v52 = vpop.f32.mrf.mxu0  ;;  %v7146_v53 = vpop.f32.mrf.mxu1 }
 0xbab   : > { %v2103_v63 = vmul.f32 %v1869_v31, %v8803_v45  ;;  %v2105_v6 = vmul.f32 %v1869_v31, %v8811_v60 }
 0xbac   : > { %v1871_v54 = vpop.f32.mrf.mxu0  ;;  %v1985_v55 = vpop.f32.mrf.mxu1 }
 0xbad   : > { %v1872_v57 = vadd.f32 %v6321_v48, %v1871_v54  ;;  %v1986_v59 = vadd.f32 %v6330_v27, %v1985_v55 }
 0xbae   : > { %v7127_v61 = vpop.f32.mrf.mxu0  ;;  %v7147_v62 = vpop.f32.mrf.mxu1 }
 0xbaf   : > { %v2104_v1 = vmul.f32 %v1872_v57, %v8805_v46  ;;  %v2109_v3 = vpack.c.bf16 %v1986_v59, %v1983_v56  ;;  %v2106_v5 = vmul.f32 %v1872_v57, %v8809_v58 }
 0xbb1   : > { %7168 = vmatprep.subr.bf16.mxu1 %v2109_v3  ;;  %v2107_v4 = vpack.c.bf16 %v2104_v1, %v2103_v63  ;;  %v2108_v7 = vpack.c.bf16 %v2106_v5, %v2105_v6 }
 0xbb2   : > { %7169 = vmatpush3.bf16.xpose.msra.mxu1 %v2109_v3 }
 0xbb3   : > { %7170 = vmatprep.mubr.bf16.mxu1 %v2107_v4 }
 0xbb9   : > { %7171 = vmatmul.mubr.bf16.vlgmr.msra.gmra.mxu1 %v2108_v7 }
 0xbba   : > { %7188 = vmatprep.mubr.msk.f32.mxu1 %vm1218_vm2, %v8840_v2  ;;  %v6317_v2 = vld [vmem:[%s9456_s3 + $0x30] sm:$0xff] }
 0xbc8   : > { %v2096_v8 = vpop.f32.mrf.mxu0 }
 0xbc9   : > { %v2097_v11 = vadd.f32 %v6339_v9, %v2096_v8  ;;  %v7940_v8 = vld [vmem:[#allocation2 + $0x2b8] sm:$0xff]  }
 0xbca   : > { %v7166_v10 = vpop.f32.mrf.mxu0 }
 0xbcb   : > { %v7942_v10 = vld [vmem:[#allocation2 + $0x2a8] sm:$0xff]  }
 0xbcc   : > { %v2099_v45 = vpop.f32.mrf.mxu0 }
 0xbcd   : > { %v2100_v46 = vadd.f32 %v6339_v9, %v2099_v45  ;;  %v7941_v9 = vld [vmem:[#allocation2 + $0x2b0] sm:$0xff]   ;;  %v7943_v45 = vld [vmem:[#allocation2 + $0x2a0] sm:$0xff]  }
 0xbce   : > { %v7167_v12 = vpop.f32.mrf.mxu0 }
 0xbcf   : > { %v2205_v13 = vpack.c.bf16 %v2100_v46, %v2097_v11  ;;  %v7944_v11 = vld [vmem:[#allocation2 + $0x298] sm:$0xff]   ;;  %v7945_v46 = vld [vmem:[#allocation2 + $0x290] sm:$0xff]   ;;  %v7946_v12 = vld [vmem:[#allocation2 + $0x288] sm:$0xff]  }
 0xbd1   : > { %7174 = vmatprep.subr.bf16.mxu0 %v2205_v13 }
 0xbd2   : > { %7175 = vmatpush3.bf16.msra.mxu0 %v2205_v13 }
 0xbd3   : > { %7191 = vmatprep.subr.bf16.mxu0 %v8533_v0 }
 0xc79   : > { %v7172_v14 = vpop.f32.mrf.mxu1 }
 0xc7a   : > { %v2153_v21 = vadd.f32 %v7172_v14, %v6317_v2 }
 0xc7b   : > { %v2144_v16 = vpop.f32.mrf.mxu1 }
 0xc7c   : > { %v2145_v17 = vadd.f32 %v6315_v15, %v2144_v16  ;;  %v2165_v29 = vsel %vm1111_vm1, %v2153_v21, -inf }
 0xc7d   : > { %v7173_v19 = vpop.f32.mrf.mxu1 }
 0xc7e   : > { %v2159_v22 = vsel %vm1111_vm1, %v2145_v17, -inf  ;;  %v2156_v26 = vadd.f32 %v7173_v19, %v6318_v23  ;;  %v8228_v19 = vld [vmem:[#allocation7 + $0x8] sm:$0xff] }
 0xc7f   : > { %v2147_v24 = vpop.f32.mrf.mxu1  ;;  %2160 = vmax.xlane.f32.xlu0 %v2159_v22 }
 0xc80   : > { %v2148_v25 = vadd.f32 %v6316_v20, %v2147_v24  ;;  %v2168_v30 = vsel %vm1111_vm1, %v2156_v26, -inf }
 0xc82   : > { %v2162_v28 = vsel %vm1111_vm1, %v2148_v25, -inf }
 0xc83   : > { %2163 = vmax.xlane.f32.xlu1 %v2162_v28  ;;  %2166 = vmax.xlane.f32.xlu0 %v2165_v29 }
 0xc87   : > { %2169 = vmax.xlane.f32.xlu1 %v2168_v30 }
 0xd08   : > { %v2161_v32 = vpop.xlane.xlu0 %2160 }
 0xd09   : > { %v2171_v43 = vsub.f32 %v2145_v17, %v2161_v32 }
 0xd0b   : > { %v2175_v33 = vmul.f32 1.442695, %v2171_v43 }
 0xd0c   : > { %v2164_v47 = vpop.xlane.xlu1 %2163  ;;  %v2167_v34 = vpop.xlane.xlu0 %2166 }
 0xd0d   : > { %8168 = vpow2.f32 %v2175_v33  ;;  %v2172_v35 = vsub.f32 %v2148_v25, %v2164_v47  ;;  %v2173_v36 = vsub.f32 %v2153_v21, %v2167_v34  ;;  %v8229_v21 = vld [vmem:[#allocation7] sm:$0xff] }
 0xd0e   : > { %v7948_v34 = vld [vmem:[#allocation2 + $0x2f8] sm:$0xff]  }
 0xd0f   : > { %v2177_v37 = vmul.f32 1.442695, %v2172_v35  ;;  %v2179_v38 = vmul.f32 1.442695, %v2173_v36  ;;  %v7950_v35 = vld [vmem:[#allocation2 + $0x2e8] sm:$0xff]   ;;  %v7951_v36 = vld [vmem:[#allocation2 + $0x2e0] sm:$0xff]  }
 0xd10   : > { %v2170_v39 = vpop.xlane.xlu1 %2169 }
 0xd11   : > { %8170 = vpow2.f32 %v2177_v37  ;;  %v2174_v40 = vsub.f32 %v2156_v26, %v2170_v39  ;;  %v6360_v26 = vld [vmem:[#allocation5 + $0x12] ss:$0 sm:$0xff]  ;;  %v7952_v37 = vld [vmem:[#allocation2 + $0x2d8] sm:$0xff]   ;;  %v7954_v39 = vld [vmem:[#allocation2 + $0x2c8] sm:$0xff]  }
 0xd12   : > { %8172 = vpow2.f32 %v2179_v38  ;;  %v7953_v38 = vld [vmem:[#allocation2 + $0x2d0] sm:$0xff]  }
 0xd13   : > { %v2181_v41 = vmul.f32 1.442695, %v2174_v40  ;;  %v7955_v40 = vld [vmem:[#allocation2 + $0x2c0] sm:$0xff]  }
 0xd15   : > { %8174 = vpow2.f32 %v2181_v41  ;;  %v7956_v41 = vld [vmem:[#allocation2 + $0x338] sm:$0xff]  }
 0xd1a   : > { %v8169_v44 = vpop.eup %8168 }
 0xd1b   : > { %v2183_v48 = vsel %vm1111_vm1, %v8169_v44, 0.0 }
 0xd1c   : > { %2184 = vadd.xlane.f32.xlu0 %v2183_v48 }
 0xd1e   : > { %v8171_v49 = vpop.eup %8170 }
 0xd1f   : > { %v8173_v51 = vpop.eup %8172  ;;  %v2186_v27 = vsel %vm1111_vm1, %v8171_v49, 0.0 }
 0xd20   : > { %2187 = vadd.xlane.f32.xlu1 %v2186_v27  ;;  %v2189_v52 = vsel %vm1111_vm1, %v8173_v51, 0.0 }
 0xd21   : > { %2190 = vadd.xlane.f32.xlu0 %v2189_v52 }
 0xd22   : > { %v8175_v53 = vpop.eup %8174 }
 0xd23   : > { %v2192_v31 = vsel %vm1111_vm1, %v8175_v53, 0.0 }
 0xd24   : > { %2193 = vadd.xlane.f32.xlu1 %v2192_v31 }
 0xda5   : > { %v2185_v54 = vpop.xlane.xlu0 %2184 }
 0xda6   : > { %8176 = vrcp.f32 %v2185_v54 }
 0xda9   : > { %v2188_v55 = vpop.xlane.xlu1 %2187 }
 0xdaa   : > { %8178 = vrcp.f32 %v2188_v55  ;;  %v2191_v56 = vpop.xlane.xlu0 %2190 }
 0xdab   : > { %8180 = vrcp.f32 %v2191_v56 }
 0xdad   : > { %v2194_v57 = vpop.xlane.xlu1 %2193 }
 0xdae   : > { %8182 = vrcp.f32 %v2194_v57 }
 0xdb3   : > { %v8177_v59 = vpop.eup %8176 }
 0xdb4   : > { %v2199_v62 = vmul.f32 %v8177_v59, %v8169_v44 }
 0xdb7   : > { %v8179_v61 = vpop.eup %8178 }
 0xdb8   : > { %v2200_v63 = vmul.f32 %v8179_v61, %v8171_v49  ;;  %v8181_v1 = vpop.eup %8180 }
 0xdb9   : > { %v2201_v5 = vmul.f32 %v8181_v1, %v8173_v51 }
 0xdba   : > { %v2203_v3 = vpack.c.bf16 %v2200_v63, %v2199_v62 }
 0xdbb   : > { %v8183_v4 = vpop.eup %8182 }
 0xdbc   : > { %7176 = vmatprep.mubr.msk.bf16.mxu0 %vm1111_vm1, %v2203_v3  ;;  %v2202_v6 = vmul.f32 %v8183_v4, %v8175_v53  ;;  %v6361_v3 = vld [vmem:[#allocation5 + $0x13] ss:$0 sm:$0xff] }
 0xdbe   : > { %v2204_v7 = vpack.c.bf16 %v2202_v6, %v2201_v5 }
 0xdc0   : > { %7177 = vmatmul.mubr.msk.bf16.vlgmr.msra.gmra.mxu0 %vm1111_vm1, %v2204_v7 }
 0xdc1   : > { %7207 = vmatprep.mubr.msk.bf16.mxu0 %vm8534_vm0, %v8533_v0  ;;  %7192 = vmatpush3.bf16.msra.mxu0 %v7940_v8  ;;  %v6362_v8 = vld [vmem:[#allocation5 + $0x14] ss:$0 sm:$0xff] }
 0xdc2   : > { %7193 = vmatprep.subr.bf16.mxu0 %v8533_v0 }
 0xdc5   : > { %7194 = vmatpush3.bf16.msra.mxu0 %v7941_v9 }
 0xdc6   : > { %7195 = vmatprep.subr.bf16.mxu0 %v8533_v0 }
 0xdc9   : > { %7196 = vmatpush3.bf16.msra.mxu0 %v7942_v10 }
 0xdca   : > { %7197 = vmatprep.subr.bf16.mxu0 %v8533_v0 }
 0xdcd   : > { %7198 = vmatpush3.bf16.msra.mxu0 %v7943_v45 }
 0xdce   : > { %7199 = vmatprep.subr.bf16.mxu0 %v8533_v0 }
 0xdd1   : > { %7200 = vmatpush3.bf16.msra.mxu0 %v7944_v11 }
 0xdd2   : > { %7201 = vmatprep.subr.bf16.mxu0 %v8533_v0 }
 0xdd5   : > { %7202 = vmatpush3.bf16.msra.mxu0 %v7945_v46  ;;  %v7957_v46 = vld [vmem:[#allocation2 + $0x330] sm:$0xff]  }
 0xdd6   : > { %7203 = vmatprep.subr.bf16.mxu0 %v8533_v0 }
 0xdd9   : > { %7204 = vmatpush3.bf16.msra.mxu0 %v7946_v12  ;;  %v7958_v12 = vld [vmem:[#allocation2 + $0x328] sm:$0xff]  }
 0xdda   : > { %7205 = vmatprep.subr.bf16.mxu0 %v8533_v0 }
 0xe80   : > { %v7178_v13 = vpop.f32.mrf.mxu0 }
 0xe81   : > { %v2263_v17 = vmul.f32 %v7178_v13, %v8811_v60  ;;  %v7959_v13 = vld [vmem:[#allocation2 + $0x320] sm:$0xff]  }
 0xe82   : > { %v2246_v14 = vpop.f32.mrf.mxu0 }
 0xe83   : > { %v2261_v22 = vmul.f32 %v8229_v21, %v2246_v14  ;;  %v7960_v14 = vld [vmem:[#allocation2 + $0x318] sm:$0xff]  }
 0xe84   : > { %v7179_v15 = vpop.f32.mrf.mxu0 }
 0xe85   : > { %v2264_v2 = vmul.f32 %v7179_v15, %v8809_v58  ;;  %v7947_v58 = vld [vmem:[#allocation2 + $0x280] sm:$0xff]   ;;  %v7961_v15 = vld [vmem:[#allocation2 + $0x310] sm:$0xff]  }
 0xe86   : > { %v2249_v16 = vpop.f32.mrf.mxu0  ;;  %7206 = vmatpush3.bf16.msra.mxu0 %v7947_v58 }
 0xe87   : > { %7180 = vmatprep.subr.mxu1 %v2264_v2  ;;  %v2262_v20 = vmul.f32 %v8228_v19, %v2249_v16  ;;  %7231 = vmatprep.subr.bf16.mxu0 %v8533_v0  ;;  %v7963_v16 = vld [vmem:[#allocation2 + $0x300] sm:$0xff]  }
 0xe88   : > { %7181 = vmatpush3.msra.mxu1 %v2264_v2  ;;  %v7962_v2 = vld [vmem:[#allocation2 + $0x308] sm:$0xff]  }
 0xe89   : > { %7182 = vmatprep.subr.mxu1 %v2263_v17 }
 0xe8a   : > { %7183 = vmatpush3.msra.mxu1 %v2263_v17  ;;  %v6363_v17 = vld [vmem:[#allocation5 + $0x15] ss:$0 sm:$0xff] }
 0xe8b   : > { %7184 = vmatprep.subr.mxu1 %v2262_v20 }
 0xe8c   : > { %7185 = vmatpush3.msra.mxu1 %v2262_v20 }
 0xe8d   : > { %7186 = vmatprep.subr.mxu1 %v2261_v22 }
 0xe8e   : > { %7187 = vmatpush3.msra.mxu1 %v2261_v22 }
 0xe8f   : > { %7189 = vmatmul.mubr.msk.f32.vlgmr.msra.gmra.mxu1 %vm1218_vm2, %v8855_v18  ;;  %7211 = vmatprep.subr.bf16.mxu1 %v8533_v0 }
 0xe90   : > { %7227 = vmatprep.mubr.msk.bf16.mxu1 %vm8534_vm0, %v8533_v0  ;;  %7212 = vmatpush3.bf16.msra.mxu1 %v7948_v34 }
 0xe91   : > { %7213 = vmatprep.subr.bf16.mxu1 %v8533_v0 }
 0xf4f   : > { %v7190_v60 = vpop.f32.mrf.mxu1 }
 0xf51   : > { %v2331_v23 = vpop.f32.mrf.mxu1 }
 0xf52   : > { %v2340_v24 = vpack.c.bf16 %v7190_v60, %v2331_v23 }
 0xf54   : > { %7208 = vmatmul.mubr.bf16.vlgmr.msra.gmra.mxu0 %v2340_v24 }
 0xf55   : > { %7247 = vmatprep.mubr.msk.bf16.mxu0 %vm8534_vm0, %v8533_v0  ;;  %7232 = vmatpush3.bf16.msra.mxu0 %v7956_v41 }
 0xf56   : > { %7233 = vmatprep.subr.bf16.mxu0 %v8533_v0 }
 0xf59   : > { %7234 = vmatpush3.bf16.msra.mxu0 %v7957_v46  ;;  %v7973_v46 = vld [vmem:[#allocation2 + $0x358] sm:$0xff]  }
 0xf5a   : > { %7235 = vmatprep.subr.bf16.mxu0 %v8533_v0 }
 0xf5d   : > { %7236 = vmatpush3.bf16.msra.mxu0 %v7958_v12 }
 0xf5e   : > { %7237 = vmatprep.subr.bf16.mxu0 %v8533_v0 }
 0xf61   : > { %7238 = vmatpush3.bf16.msra.mxu0 %v7959_v13 }
 0xf62   : > { %7239 = vmatprep.subr.bf16.mxu0 %v8533_v0 }
 0xf65   : > { %7240 = vmatpush3.bf16.msra.mxu0 %v7960_v14 }
 0xf66   : > { %7241 = vmatprep.subr.bf16.mxu0 %v8533_v0 }
 0xf69   : > { %7242 = vmatpush3.bf16.msra.mxu0 %v7961_v15  ;;  %v7974_v15 = vld [vmem:[#allocation2 + $0x390] sm:$0xff]  }
 0xf6a   : > { %7243 = vmatprep.subr.bf16.mxu0 %v8533_v0 }
 0xf6d   : > { %7244 = vmatpush3.bf16.msra.mxu0 %v7962_v2  ;;  %v7975_v2 = vld [vmem:[#allocation2 + $0x350] sm:$0xff]  }
 0xf6e   : > { %7245 = vmatprep.subr.bf16.mxu0 %v8533_v0 }
 0xf71   : > { %7246 = vmatpush3.bf16.msra.mxu0 %v7963_v16 }
 0xf72   : > { %7299 = vmatprep.subr.bf16.mxu0 %v8533_v0 }
0x1014   : > { %v2440_v25 = vpop.f32.mrf.mxu0 }
0x1015   : > { %v2447_v18 = vadd.f32 %v2440_v25, %v8900_v42 }
0x1016   : > { %v7209_v28 = vpop.f32.mrf.mxu0 }
0x1017   : > { %v8986_v29 = vadd.f32 %v6360_v26, %v2447_v18 }
0x1018   : > { %v2443_v30 = vpop.f32.mrf.mxu0 }
0x1019   : > { %v2448_v32 = vadd.f32 %v2443_v30, %v8904_v50  ;;  %2463 = vadd.xlane.f32.xlu0 %v8986_v29  ;;  %v2469_v47 = vmul.f32 %v8986_v29, %v8986_v29  ;;  %v7949_v50 = vld [vmem:[#allocation2 + $0x2f0] sm:$0xff]  }
0x101a   : > { %v7210_v43 = vpop.f32.mrf.mxu0  ;;  %7214 = vmatpush3.bf16.msra.mxu1 %v7949_v50 }
0x101b   : > { %v8990_v33 = vadd.f32 %v6360_v26, %v2448_v32  ;;  %7215 = vmatprep.subr.bf16.mxu1 %v8533_v0 }
0x101d   : > { %2471 = vadd.xlane.f32.xlu0 %v2469_v47  ;;  %2465 = vadd.xlane.f32.xlu1 %v8990_v33  ;;  %v2470_v42 = vmul.f32 %v8990_v33, %v8990_v33 }
0x101e   : > { %7216 = vmatpush3.bf16.msra.mxu1 %v7950_v35 }
0x101f   : > { %7217 = vmatprep.subr.bf16.mxu1 %v8533_v0 }
0x1021   : > { %2473 = vadd.xlane.f32.xlu1 %v2470_v42 }
0x1022   : > { %7218 = vmatpush3.bf16.msra.mxu1 %v7951_v36 }
0x1023   : > { %7219 = vmatprep.subr.bf16.mxu1 %v8533_v0 }
0x1026   : > { %7220 = vmatpush3.bf16.msra.mxu1 %v7952_v37 }
0x1027   : > { %7221 = vmatprep.subr.bf16.mxu1 %v8533_v0 }
0x102a   : > { %7222 = vmatpush3.bf16.msra.mxu1 %v7953_v38  ;;  %v6380_v38 = vld [vmem:[#allocation5 + $0x16] ss:$0 sm:$0xff] }
0x102b   : > { %7223 = vmatprep.subr.bf16.mxu1 %v8533_v0 }
0x102e   : > { %7224 = vmatpush3.bf16.msra.mxu1 %v7954_v39 }
0x102f   : > { %7225 = vmatprep.subr.bf16.mxu1 %v8533_v0 }
0x1032   : > { %7226 = vmatpush3.bf16.msra.mxu1 %v7955_v40 }
0x1033   : > { %7251 = vmatprep.subr.mxu1 %v8533_v0 }
0x10a2   : > { %v2464_v44 = vpop.xlane.xlu0 %2463 }
0x10a3   : > { %v2467_v48 = vmul.f32 0.03125, %v2464_v44  ;;  %v2749_v44 = vld [vmem:[#allocation13] sm:$0xf] }
0x10a5   : > { %v2477_v27 = vmul.f32 %v2467_v48, %v2467_v48  ;;  %v2481_v62 = vsub.f32 %v8986_v29, %v2467_v48  ;;  %v2974_v48 = vld [vmem:[#allocation13 + $0xc] sm:$0xf] }
0x10a6   : > { %v2472_v49 = vpop.xlane.xlu0 %2471  ;;  %v2466_v51 = vpop.xlane.xlu1 %2465 }
0x10a7   : > { %v2475_v52 = vmul.f32 0.03125, %v2472_v49  ;;  %v2468_v53 = vmul.f32 0.03125, %v2466_v51  ;;  %v7964_v49 = vld [vmem:[#allocation2 + $0x3b8] sm:$0xff]  }
0x10a8   : > { %v7965_v51 = vld [vmem:[#allocation2 + $0x378] sm:$0xff]  }
0x10a9   : > { %v2479_v31 = vsub.f32 %v2475_v52, %v2477_v27  ;;  %v2478_v56 = vmul.f32 %v2468_v53, %v2468_v53  ;;  %v2482_v4 = vsub.f32 %v8990_v33, %v2468_v53  ;;  %v7966_v27 = vld [vmem:[#allocation2 + $0x3b0] sm:$0xff]   ;;  %v7968_v53 = vld [vmem:[#allocation2 + $0x3a8] sm:$0xff]  }
0x10aa   : > { %v2474_v54 = vpop.xlane.xlu1 %2473  ;;  %v7967_v52 = vld [vmem:[#allocation2 + $0x370] sm:$0xff]  }
0x10ab   : > { %v2483_v55 = vadd.f32 1e-05, %v2479_v31  ;;  %v2476_v57 = vmul.f32 0.03125, %v2474_v54  ;;  %v7969_v31 = vld [vmem:[#allocation2 + $0x368] sm:$0xff]  }
0x10ad   : > { %8184 = vrsqrt.f32 %v2483_v55  ;;  %v2480_v59 = vsub.f32 %v2476_v57, %v2478_v56 }
0x10af   : > { %v2484_v61 = vadd.f32 1e-05, %v2480_v59 }
0x10b1   : > { %8186 = vrsqrt.f32 %v2484_v61 }
0x10ba   : > { %v8185_v63 = vpop.eup %8184 }
0x10bb   : > { %v2487_v1 = vmul.f32 %v8185_v63, %v2481_v62 }
0x10bd   : > { %v2495_v7 = vmul.f32 %v6361_v3, %v2487_v1 }
0x10be   : > { %v8187_v5 = vpop.eup %8186 }
0x10bf   : > { %v2488_v6 = vmul.f32 %v8187_v5, %v2482_v4  ;;  %v2503_v10 = vadd.f32 %v6362_v8, %v2495_v7  ;;  %v7970_v4 = vld [vmem:[#allocation2 + $0x3a0] sm:$0xff]  }
0x10c0   : > { %v7971_v5 = vld [vmem:[#allocation2 + $0x360] sm:$0xff]  }
0x10c1   : > { %v2496_v9 = vmul.f32 %v6361_v3, %v2488_v6 }
0x10c3   : > { %v2504_v45 = vadd.f32 %v6362_v8, %v2496_v9 }
0x10c5   : > { %v2505_v11 = vpack.c.bf16 %v2504_v45, %v2503_v10 }
0x10c7   : > { %7228 = vmatmul.mubr.bf16.vlgmr.msra.gmra.mxu1 %v2505_v11  ;;  %v7972_v11 = vld [vmem:[#allocation2 + $0x398] sm:$0xff]  }
0x10c8   : > { %7255 = vmatprep.mubr.msk.f32.mxu1 %vm8534_vm0, %v8533_v0 }
0x1187   : > { %v2613_v19 = vpop.f32.mrf.mxu1 }
0x1188   : > { %v2614_v20 = vadd.f32 %v6363_v17, %v2613_v19  ;;  %v7977_v19 = vld [vmem:[#allocation2 + $0x348] sm:$0xff]  }
0x1189   : > { %v7229_v21 = vpop.f32.mrf.mxu1 }
0x118a   : > { %v2622_v22 = vmul.f32 0.70710677, %v2614_v20  ;;  %v2620_v28 = vmul.f32 0.5, %v2614_v20  ;;  %v7978_v20 = vld [vmem:[#allocation2 + $0x380] sm:$0xff]  }
0x118b   : > { %v2616_v58 = vpop.f32.mrf.mxu1  ;;  %v7979_v21 = vld [vmem:[#allocation2 + $0x340] sm:$0xff]  }
0x118c   : > { %8188 = verf.f32 %v2622_v22  ;;  %v2617_v60 = vadd.f32 %v6363_v17, %v2616_v58  ;;  %v7976_v17 = vld [vmem:[#allocation2 + $0x388] sm:$0xff]  }
0x118d   : > { %v7230_v23 = vpop.f32.mrf.mxu1 }
0x118e   : > { %v2623_v24 = vmul.f32 0.70710677, %v2617_v60  ;;  %v2621_v30 = vmul.f32 0.5, %v2617_v60 }
0x1190   : > { %8190 = verf.f32 %v2623_v24 }
0x1199   : > { %v8189_v25 = vpop.eup %8188 }
0x119a   : > { %v2626_v26 = vadd.f32 1.0, %v8189_v25 }
0x119c   : > { %v2628_v43 = vmul.f32 %v2626_v26, %v2620_v28 }
0x119d   : > { %v8191_v18 = vpop.eup %8190 }
0x119e   : > { %v2627_v32 = vadd.f32 1.0, %v8191_v18 }
0x11a0   : > { %v2629_v47 = vmul.f32 %v2627_v32, %v2621_v30  ;;  %v7980_v32 = vld [vmem:[#allocation2 + $0x3f8] sm:$0xff]  }
0x11a2   : > { %v2630_v42 = vpack.c.bf16 %v2629_v47, %v2628_v43  ;;  %v7981_v43 = vld [vmem:[#allocation2 + $0x438] sm:$0xff]  }
0x11a4   : > { %7248 = vmatmul.mubr.bf16.vlgmr.msra.gmra.mxu0 %v2630_v42 }
0x11a5   : > { %7315 = vmatprep.mubr.msk.bf16.mxu0 %vm8534_vm0, %v8533_v0  ;;  %7300 = vmatpush3.bf16.msra.mxu0 %v7965_v51 }
0x11a6   : > { %7301 = vmatprep.subr.bf16.mxu0 %v8533_v0 }
0x11a9   : > { %7302 = vmatpush3.bf16.msra.mxu0 %v7967_v52 }
0x11aa   : > { %7303 = vmatprep.subr.bf16.mxu0 %v8533_v0 }
0x11ad   : > { %7304 = vmatpush3.bf16.msra.mxu0 %v7969_v31  ;;  %v7996_v31 = vld [vmem:[#allocation2 + $0x478] sm:$0xff]  }
0x11ae   : > { %7305 = vmatprep.subr.bf16.mxu0 %v8533_v0 }
0x11b1   : > { %7306 = vmatpush3.bf16.msra.mxu0 %v7971_v5 }
0x11b2   : > { %7307 = vmatprep.subr.bf16.mxu0 %v8533_v0 }
0x11b5   : > { %7308 = vmatpush3.bf16.msra.mxu0 %v7973_v46 }
0x11b6   : > { %7309 = vmatprep.subr.bf16.mxu0 %v8533_v0 }
0x11b9   : > { %7310 = vmatpush3.bf16.msra.mxu0 %v7975_v2 }
0x11ba   : > { %7311 = vmatprep.subr.bf16.mxu0 %v8533_v0 }
0x11bd   : > { %7312 = vmatpush3.bf16.msra.mxu0 %v7977_v19 }
0x11be   : > { %7313 = vmatprep.subr.bf16.mxu0 %v8533_v0 }
0x11c1   : > { %7314 = vmatpush3.bf16.msra.mxu0 %v7979_v21 }
0x11c2   : > { %7339 = vmatprep.subr.bf16.mxu0 %v8533_v0 }
0x1264   : > { %v2730_v34 = vpop.f32.mrf.mxu0 }
0x1265   : > { %v2737_v36 = vadd.f32 %v2730_v34, %v8986_v29  ;;  %v2824_v29 = vld [vmem:[#allocation13 + $0x4] sm:$0xf]  ;;  %v7982_v34 = vld [vmem:[#allocation2 + $0x3f0] sm:$0xff]  }
0x1266   : > { %v7249_v50 = vpop.f32.mrf.mxu0 }
0x1267   : > { %v2747_v41 = vadd.f32 %v6380_v38, %v2737_v36  ;;  %v7983_v50 = vld [vmem:[#allocation2 + $0x430] sm:$0xff]   ;;  %v7985_v36 = vld [vmem:[#allocation2 + $0x428] sm:$0xff]  }
0x1268   : > { %v2733_v35 = vpop.f32.mrf.mxu0 }
0x1269   : > { %v2738_v37 = vadd.f32 %v2733_v35, %v8990_v33  ;;  %v2899_v33 = vld [vmem:[#allocation13 + $0x8] sm:$0xf]  ;;  %v7984_v35 = vld [vmem:[#allocation2 + $0x3e8] sm:$0xff]  }
0x126a   : > { %v7250_v39 = vpop.f32.mrf.mxu0 }
0x126b   : > { %v2748_v40 = vadd.f32 %v6380_v38, %v2738_v37  ;;  %v7986_v37 = vld [vmem:[#allocation2 + $0x3e0] sm:$0xff]   ;;  %v7988_v39 = vld [vmem:[#allocation2 + $0x3d8] sm:$0xff]  }
0x126c   : > { %v7987_v38 = vld [vmem:[#allocation2 + $0x420] sm:$0xff]  }
0x126d   : > { %7252 = vmatpush3.msra.mxu1 %v2748_v40 }
0x126e   : > { %7253 = vmatprep.subr.mxu1 %v8533_v0 }
0x126f   : > { %7254 = vmatpush3.msra.mxu1 %v2747_v41 }
0x1270   : > { %7256 = vmatmul.mubr.msk.f32.vlgmr.msra.gmra.mxu1 %vm1111_vm1, %v2749_v44  ;;  %7258 = vmatprep.subr.mxu1 %v8533_v0  ;;  %v7991_v44 = vld [vmem:[#allocation2 + $0x410] sm:$0xff]  }
0x1271   : > { %7259 = vmatpush3.msra.mxu1 %v2748_v40  ;;  %7262 = vmatprep.mubr.msk.f32.mxu1 %vm8534_vm0, %v8533_v0 }
0x1272   : > { %7260 = vmatprep.subr.mxu1 %v8533_v0 }
0x1273   : > { %7261 = vmatpush3.msra.mxu1 %v2747_v41 }
0x1274   : > { %7263 = vmatmul.mubr.msk.f32.vlgmr.msra.gmra.mxu1 %vm1111_vm1, %v2824_v29  ;;  %7265 = vmatprep.subr.mxu1 %v8533_v0  ;;  %v7992_v29 = vld [vmem:[#allocation2 + $0x3c8] sm:$0xff]  }
0x1275   : > { %7266 = vmatpush3.msra.mxu1 %v2748_v40  ;;  %7269 = vmatprep.mubr.msk.f32.mxu1 %vm8534_vm0, %v8533_v0 }
0x1276   : > { %7267 = vmatprep.subr.mxu1 %v8533_v0 }
0x1277   : > { %7268 = vmatpush3.msra.mxu1 %v2747_v41 }
0x1278   : > { %7270 = vmatmul.mubr.msk.f32.vlgmr.msra.gmra.mxu1 %vm1111_vm1, %v2899_v33  ;;  %7272 = vmatprep.subr.mxu1 %v8533_v0  ;;  %v7993_v33 = vld [vmem:[#allocation2 + $0x408] sm:$0xff]  }
0x1279   : > { %7273 = vmatpush3.msra.mxu1 %v2748_v40  ;;  %7276 = vmatprep.mubr.msk.f32.mxu1 %vm8534_vm0, %v8533_v0  ;;  %v7989_v40 = vld [vmem:[#allocation2 + $0x418] sm:$0xff]  }
0x127a   : > { %7274 = vmatprep.subr.mxu1 %v8533_v0 }
0x127b   : > { %7275 = vmatpush3.msra.mxu1 %v2747_v41  ;;  %v7990_v41 = vld [vmem:[#allocation2 + $0x3d0] sm:$0xff]  }
0x127c   : > { %7277 = vmatmul.mubr.msk.f32.vlgmr.msra.gmra.mxu1 %vm1111_vm1, %v2974_v48  ;;  %7279 = vmatprep.subr.bf16.mxu1 %v8533_v0  ;;  %v7994_v48 = vld [vmem:[#allocation2 + $0x3c0] sm:$0xff]  }
0x127d   : > { %7295 = vmatprep.mubr.msk.bf16.mxu1 %vm8534_vm0, %v8533_v0  ;;  %7280 = vmatpush3.bf16.msra.mxu1 %v7964_v49  ;;  %v7995_v49 = vld [vmem:[#allocation2 + $0x400] sm:$0xff]  }
0x127e   : > { %7281 = vmatprep.subr.bf16.mxu1 %v8533_v0 }
0x1281   : > { %7282 = vmatpush3.bf16.msra.mxu1 %v7966_v27 }
0x1282   : > { %7283 = vmatprep.subr.bf16.mxu1 %v8533_v0 }
0x1285   : > { %7284 = vmatpush3.bf16.msra.mxu1 %v7968_v53 }
0x1286   : > { %7285 = vmatprep.subr.bf16.mxu1 %v8533_v0 }
0x1289   : > { %7286 = vmatpush3.bf16.msra.mxu1 %v7970_v4 }
0x128a   : > { %7287 = vmatprep.subr.bf16.mxu1 %v8533_v0 }
0x128d   : > { %7288 = vmatpush3.bf16.msra.mxu1 %v7972_v11 }
0x128e   : > { %7289 = vmatprep.subr.bf16.mxu1 %v8533_v0 }
0x1291   : > { %7290 = vmatpush3.bf16.msra.mxu1 %v7974_v15 }
0x1292   : > { %7291 = vmatprep.subr.bf16.mxu1 %v8533_v0 }
0x1295   : > { %7292 = vmatpush3.bf16.msra.mxu1 %v7976_v17 }
0x1296   : > { %7293 = vmatprep.subr.bf16.mxu1 %v8533_v0 }
0x1299   : > { %7294 = vmatpush3.bf16.msra.mxu1 %v7978_v20  ;;  %v6417_v20 = vld [vmem:[#allocation5 + $0x17] ss:$0 sm:$0xff] }
0x129a   : > { %7319 = vmatprep.subr.bf16.mxu1 %v8533_v0 }
0x1330   : > { %v9047_v54 = vpop.f32.mrf.mxu1 }
0x1331   : > { %v3049_v55 = vsel %vm3048_vm3, %v9047_v54, 0.0  ;;  %v3065_v1 = vmul.f32 %v9047_v54, %v9047_v54 }
0x1332   : > { %3050 = vadd.xlane.f32.xlu0 %v3049_v55  ;;  %v7257_v56 = vpop.f32.mrf.mxu1 }
0x1333   : > { %v3066_v7 = vsel %vm3048_vm3, %v3065_v1, 0.0 }
0x1334   : > { %v2894_v57 = vpop.f32.mrf.mxu1 }
0x1335   : > { %v3052_v59 = vsel %vm3048_vm3, %v2894_v57, 0.0  ;;  %v3069_v10 = vmul.f32 %v2894_v57, %v2894_v57 }
0x1336   : > { %3053 = vadd.xlane.f32.xlu1 %v3052_v59  ;;  %v7264_v61 = vpop.f32.mrf.mxu1 }
0x1337   : > { %v3070_v13 = vsel %vm3048_vm3, %v3069_v10, 0.0 }
0x1338   : > { %v9052_v62 = vpop.f32.mrf.mxu1 }
0x1339   : > { %v3056_v63 = vsel %vm3048_vm3, %v9052_v62, 0.0  ;;  %v3074_v9 = vmul.f32 %v9052_v62, %v9052_v62 }
0x133a   : > { %3057 = vadd.xlane.f32.xlu0 %v3056_v63  ;;  %v7271_v3 = vpop.f32.mrf.mxu1 }
0x133b   : > { %v3075_v12 = vsel %vm3048_vm3, %v3074_v9, 0.0 }
0x133c   : > { %v9058_v6 = vpop.f32.mrf.mxu1 }
0x133d   : > { %v3060_v8 = vsel %vm3048_vm3, %v9058_v6, 0.0  ;;  %v3079_v14 = vmul.f32 %v9058_v6, %v9058_v6 }
0x133e   : > { %3067 = vadd.xlane.f32.xlu0 %v3066_v7  ;;  %3061 = vadd.xlane.f32.xlu1 %v3060_v8  ;;  %v7278_v45 = vpop.f32.mrf.mxu1 }
0x133f   : > { %v3080_v16 = vsel %vm3048_vm3, %v3079_v14, 0.0 }
0x1342   : > { %3076 = vadd.xlane.f32.xlu0 %v3075_v12  ;;  %3071 = vadd.xlane.f32.xlu1 %v3070_v13 }
0x1346   : > { %3081 = vadd.xlane.f32.xlu1 %v3080_v16 }
0x13bb   : > { %v3051_v22 = vpop.xlane.xlu0 %3050 }
0x13bf   : > { %v3054_v58 = vpop.xlane.xlu1 %3053 }
0x13c0   : > { %v3055_v23 = vadd.f32 %v3054_v58, %v3051_v22 }
0x13c3   : > { %v3058_v60 = vpop.xlane.xlu0 %3057 }
0x13c4   : > { %v3059_v24 = vadd.f32 %v3058_v60, %v3055_v23 }
0x13c7   : > { %v3062_v25 = vpop.xlane.xlu1 %3061  ;;  %v3068_v55 = vpop.xlane.xlu0 %3067 }
0x13c8   : > { %v3063_v26 = vadd.f32 %v3062_v25, %v3059_v24 }
0x13ca   : > { %v9080_v18 = vmul.f32 0.0078125, %v3063_v26 }
0x13cb   : > { %v3072_v56 = vpop.xlane.xlu1 %3071 }
0x13cc   : > { %v3108_v28 = vsub.f32 %v2894_v57, %v9080_v18  ;;  %v3089_v30 = vsub.f32 %v9047_v54, %v9080_v18  ;;  %v3303_v51 = vsub.f32 %v9052_v62, %v9080_v18  ;;  %v3411_v27 = vsub.f32 %v9058_v6, %v9080_v18  ;;  %v7997_v54 = vld [vmem:[#allocation2 + $0x4b8] sm:$0xff]   ;;  %v3077_v62 = vpop.xlane.xlu0 %3076 }
0x13cd   : > { %v3073_v57 = vadd.f32 %v3072_v56, %v3068_v55  ;;  %v3085_v45 = vmul.f32 %v9080_v18, %v9080_v18 }
0x13ce   : > { %v3109_v47 = vpack.c.bf16 %v3108_v28, %v3108_v28  ;;  %v3090_v42 = vpack.c.bf16 %v3089_v30, %v3089_v30  ;;  %v3304_v52 = vpack.c.bf16 %v3303_v51, %v3303_v51  ;;  %v3412_v53 = vpack.c.bf16 %v3411_v27, %v3411_v27  ;;  %v7998_v28 = vld [vmem:[#allocation2 + $0x470] sm:$0xff]  }
0x13cf   : > { %v3078_v3 = vadd.f32 %v3077_v62, %v3073_v57  ;;  %v3082_v4 = vpop.xlane.xlu1 %3081  ;;  %v7999_v30 = vld [vmem:[#allocation2 + $0x4b0] sm:$0xff]   ;;  %v8012_v57 = vld [vmem:[#allocation2 + $0x4f8] sm:$0xff]   ;;  %v8014_v62 = vld [vmem:[#allocation2 + $0x4e8] sm:$0xff]  }
0x13d0   : > { %7296 = vmatmul.mubr.bf16.vlgmr.msra.gmra.mxu1 %v3109_v47  ;;  %7316 = vmatmul.mubr.bf16.vlgmr.msra.gmra.mxu0 %v3090_v42  ;;  %v8002_v47 = vld [vmem:[#allocation2 + $0x460] sm:$0xff]  }
0x13d1   : > { %7320 = vmatpush3.bf16.msra.mxu1 %v7980_v32  ;;  %7340 = vmatpush3.bf16.msra.mxu0 %v7981_v43  ;;  %v3083_v9 = vadd.f32 %v3082_v4, %v3078_v3  ;;  %v8000_v32 = vld [vmem:[#allocation2 + $0x468] sm:$0xff]   ;;  %v8003_v42 = vld [vmem:[#allocation2 + $0x4a0] sm:$0xff]   ;;  %v8017_v3 = vld [vmem:[#allocation2 + $0x4d0] sm:$0xff]  }
0x13d2   : > { %7321 = vmatprep.subr.bf16.mxu1 %v8533_v0  ;;  %7341 = vmatprep.subr.bf16.mxu0 %v8533_v0  ;;  %v8001_v43 = vld [vmem:[#allocation2 + $0x4a8] sm:$0xff]  }
0x13d3   : > { %7335 = vmatprep.mubr.msk.bf16.mxu1 %vm8534_vm0, %v8533_v0  ;;  %7355 = vmatprep.mubr.msk.bf16.mxu0 %vm8534_vm0, %v8533_v0  ;;  %v3084_v10 = vmul.f32 0.0078125, %v3083_v9  ;;  %v8018_v4 = vld [vmem:[#allocation2 + $0x4c8] sm:$0xff]  }
0x13d5   : > { %7322 = vmatpush3.bf16.msra.mxu1 %v7982_v34  ;;  %7342 = vmatpush3.bf16.msra.mxu0 %v7983_v50  ;;  %v3086_v11 = vsub.f32 %v3084_v10, %v3085_v45  ;;  %v8004_v34 = vld [vmem:[#allocation2 + $0x458] sm:$0xff]  }
0x13d6   : > { %7323 = vmatprep.subr.bf16.mxu1 %v8533_v0  ;;  %7343 = vmatprep.subr.bf16.mxu0 %v8533_v0  ;;  %v8005_v50 = vld [vmem:[#allocation2 + $0x498] sm:$0xff]  }
0x13d7   : > { %v3087_v46 = vadd.f32 1e-05, %v3086_v11 }
0x13d9   : > { %7324 = vmatpush3.bf16.msra.mxu1 %v7984_v35  ;;  %7344 = vmatpush3.bf16.msra.mxu0 %v7985_v36  ;;  %8192 = vrsqrt.f32 %v3087_v46  ;;  %v8006_v35 = vld [vmem:[#allocation2 + $0x450] sm:$0xff]  }
0x13da   : > { %7325 = vmatprep.subr.bf16.mxu1 %v8533_v0  ;;  %7345 = vmatprep.subr.bf16.mxu0 %v8533_v0  ;;  %v8007_v36 = vld [vmem:[#allocation2 + $0x490] sm:$0xff]  }
0x13dd   : > { %7326 = vmatpush3.bf16.msra.mxu1 %v7986_v37  ;;  %7346 = vmatpush3.bf16.msra.mxu0 %v7987_v38  ;;  %v8008_v37 = vld [vmem:[#allocation2 + $0x448] sm:$0xff]  }
0x13de   : > { %7327 = vmatprep.subr.bf16.mxu1 %v8533_v0  ;;  %7347 = vmatprep.subr.bf16.mxu0 %v8533_v0  ;;  %v8009_v38 = vld [vmem:[#allocation2 + $0x488] sm:$0xff]  }
0x13e1   : > { %7328 = vmatpush3.bf16.msra.mxu1 %v7988_v39  ;;  %7348 = vmatpush3.bf16.msra.mxu0 %v7989_v40  ;;  %v8010_v39 = vld [vmem:[#allocation2 + $0x440] sm:$0xff]  }
0x13e2   : > { %7329 = vmatprep.subr.bf16.mxu1 %v8533_v0  ;;  %7349 = vmatprep.subr.bf16.mxu0 %v8533_v0  ;;  %v8011_v40 = vld [vmem:[#allocation2 + $0x480] sm:$0xff]  }
0x13e5   : > { %7330 = vmatpush3.bf16.msra.mxu1 %v7990_v41  ;;  %7350 = vmatpush3.bf16.msra.mxu0 %v7991_v44 }
0x13e6   : > { %7331 = vmatprep.subr.bf16.mxu1 %v8533_v0  ;;  %7351 = vmatprep.subr.bf16.mxu0 %v8533_v0  ;;  %v8193_v19 = vpop.eup %8192 }
0x13e9   : > { %7332 = vmatpush3.bf16.msra.mxu1 %v7992_v29  ;;  %7352 = vmatpush3.bf16.msra.mxu0 %v7993_v33 }
0x13ea   : > { %7333 = vmatprep.subr.bf16.mxu1 %v8533_v0  ;;  %7353 = vmatprep.subr.bf16.mxu0 %v8533_v0 }
0x13ed   : > { %7334 = vmatpush3.bf16.msra.mxu1 %v7994_v48  ;;  %7354 = vmatpush3.bf16.msra.mxu0 %v7995_v49 }
0x13ee   : > { %7359 = vmatprep.subr.bf16.mxu1 %v8533_v0  ;;  %7379 = vmatprep.subr.bf16.mxu0 %v8533_v0 }
0x13f0   : > { %7336 = vmatmul.mubr.bf16.vlgmr.msra.gmra.mxu1 %v3304_v52  ;;  %7356 = vmatmul.mubr.bf16.vlgmr.msra.gmra.mxu0 %v3412_v53  ;;  %v6418_v53 = vld [vmem:[#allocation5 + $0x18] ss:$0 sm:$0xff] }
0x13f1   : > { %7375 = vmatprep.mubr.msk.bf16.mxu1 %vm8534_vm0, %v8533_v0  ;;  %7395 = vmatprep.mubr.msk.bf16.mxu0 %vm8534_vm0, %v8533_v0 }
0x13f2   : > { %7360 = vmatpush3.bf16.msra.mxu1 %v7996_v31  ;;  %7380 = vmatpush3.bf16.msra.mxu0 %v7997_v54  ;;  %v6419_v54 = vld [vmem:[#allocation5 + $0x19] ss:$0 sm:$0xff] }
0x13f3   : > { %7361 = vmatprep.subr.bf16.mxu1 %v8533_v0  ;;  %7381 = vmatprep.subr.bf16.mxu0 %v8533_v0 }
0x13f6   : > { %7362 = vmatpush3.bf16.msra.mxu1 %v7998_v28  ;;  %7382 = vmatpush3.bf16.msra.mxu0 %v7999_v30 }
0x13f7   : > { %7363 = vmatprep.subr.bf16.mxu1 %v8533_v0  ;;  %7383 = vmatprep.subr.bf16.mxu0 %v8533_v0 }
0x13fa   : > { %7364 = vmatpush3.bf16.msra.mxu1 %v8000_v32  ;;  %7384 = vmatpush3.bf16.msra.mxu0 %v8001_v43  ;;  %v3532_v43 = vld [vmem:[%s9457_s4] sm:$0xff] }
0x13fb   : > { %7365 = vmatprep.subr.bf16.mxu1 %v8533_v0  ;;  %7385 = vmatprep.subr.bf16.mxu0 %v8533_v0 }
0x13fe   : > { %7366 = vmatpush3.bf16.msra.mxu1 %v8002_v47  ;;  %7386 = vmatpush3.bf16.msra.mxu0 %v8003_v42 }
0x13ff   : > { %7367 = vmatprep.subr.bf16.mxu1 %v8533_v0  ;;  %7387 = vmatprep.subr.bf16.mxu0 %v8533_v0 }
0x1402   : > { %7368 = vmatpush3.bf16.msra.mxu1 %v8004_v34  ;;  %7388 = vmatpush3.bf16.msra.mxu0 %v8005_v50  ;;  %v3533_v50 = vld [vmem:[%s9457_s4 + $0x8] sm:$0xff] }
0x1403   : > { %7369 = vmatprep.subr.bf16.mxu1 %v8533_v0  ;;  %7389 = vmatprep.subr.bf16.mxu0 %v8533_v0 }
0x1406   : > { %7370 = vmatpush3.bf16.msra.mxu1 %v8006_v35  ;;  %7390 = vmatpush3.bf16.msra.mxu0 %v8007_v36 }
0x1407   : > { %7371 = vmatprep.subr.bf16.mxu1 %v8533_v0  ;;  %7391 = vmatprep.subr.bf16.mxu0 %v8533_v0 }
0x140a   : > { %7372 = vmatpush3.bf16.msra.mxu1 %v8008_v37  ;;  %7392 = vmatpush3.bf16.msra.mxu0 %v8009_v38 }
0x140b   : > { %7373 = vmatprep.subr.bf16.mxu1 %v8533_v0  ;;  %7393 = vmatprep.subr.bf16.mxu0 %v8533_v0 }
0x140e   : > { %7374 = vmatpush3.bf16.msra.mxu1 %v8010_v39  ;;  %7394 = vmatpush3.bf16.msra.mxu0 %v8011_v40 }
0x140f   : > { %7399 = vmatprep.subr.bf16.mxu1 %v8533_v0  ;;  %7419 = vmatprep.subr.bf16.mxu0 %v8533_v0 }
0x1490   : > { %v3209_v59 = vpop.f32.mrf.mxu1  ;;  %v3297_v61 = vpop.f32.mrf.mxu0 }
0x1491   : > { %v3298_v12 = vadd.f32 %v3297_v61, %v3209_v59  ;;  %v8013_v61 = vld [vmem:[#allocation2 + $0x4f0] sm:$0xff]  }
0x1492   : > { %v7297_v63 = vpop.f32.mrf.mxu1  ;;  %v7317_v1 = vpop.f32.mrf.mxu0 }
0x1493   : > { %v8015_v63 = vld [vmem:[#allocation2 + $0x4e0] sm:$0xff]   ;;  %v8016_v1 = vld [vmem:[#allocation2 + $0x4d8] sm:$0xff]  }
0x1494   : > { %v3212_v5 = vpop.f32.mrf.mxu1  ;;  %v3300_v6 = vpop.f32.mrf.mxu0 }
0x1495   : > { %v8019_v5 = vld [vmem:[#allocation2 + $0x4c0] sm:$0xff]   ;;  %v6420_v6 = vld [vmem:[#allocation5 + $0x1a] ss:$0 sm:$0xff] }
0x1496   : > { %v7298_v7 = vpop.f32.mrf.mxu1  ;;  %v7318_v8 = vpop.f32.mrf.mxu0 }
0x1497   : > { %v6429_v7 = vld [vmem:[#allocation5 + $0x1b] ss:$0 sm:$0xff] }
0x14b0   : > { %v3404_v13 = vpop.f32.mrf.mxu1  ;;  %v3512_v14 = vpop.f32.mrf.mxu0 }
0x14b1   : > { %v3410_v15 = vadd.f32 %v3404_v13, %v3298_v12  ;;  %v9153_v12 = vld [vmem:[#allocation8] sm:$0xff]  ;;  %v9155_v13 = vld [vmem:[#allocation8 + $0x8] sm:$0xff] }
0x14b2   : > { %v7337_v2 = vpop.f32.mrf.mxu1  ;;  %v7357_v16 = vpop.f32.mrf.mxu0 }
0x14b3   : > { %v3518_v17 = vadd.f32 %v3512_v14, %v3410_v15 }
0x14b4   : > { %v3407_v21 = vpop.f32.mrf.mxu1  ;;  %v3515_v22 = vpop.f32.mrf.mxu0 }
0x14b5   : > { %v3519_v58 = vmul.f32 %v8193_v19, %v3518_v17 }
0x14b6   : > { %v7338_v60 = vpop.f32.mrf.mxu1  ;;  %v7358_v23 = vpop.f32.mrf.mxu0 }
0x14b7   : > { %v9117_v24 = vadd.f32 %v6417_v20, %v3519_v58  ;;  %v6438_v60 = vld [vmem:[#allocation5 + $0x1c] ss:$0 sm:$0xff] }
0x14b9   : > { %v3538_v25 = vsel %vm3048_vm3, %v9117_v24, 0.0  ;;  %v3542_v26 = vmul.f32 %v9117_v24, %v9117_v24 }
0x14ba   : > { %3539 = vadd.xlane.f32.xlu0 %v3538_v25 }
0x14bb   : > { %v3543_v18 = vsel %vm3048_vm3, %v3542_v26, 0.0 }
0x14bc   : > { %3544 = vadd.xlane.f32.xlu1 %v3543_v18 }
0x1543   : > { %v3540_v41 = vpop.xlane.xlu0 %3539 }
0x1544   : > { %v3541_v44 = vmul.f32 0.015625, %v3540_v41 }
0x1545   : > { %v3545_v29 = vpop.xlane.xlu1 %3544 }
0x1546   : > { %v3547_v33 = vmul.f32 %v3541_v44, %v3541_v44  ;;  %v3546_v48 = vmul.f32 0.015625, %v3545_v29  ;;  %v3549_v27 = vsub.f32 %v9117_v24, %v3541_v44 }
0x1548   : > { %v3548_v49 = vsub.f32 %v3546_v48, %v3547_v33 }
0x154a   : > { %v3550_v51 = vadd.f32 1e-05, %v3548_v49 }
0x154c   : > { %8194 = vrsqrt.f32 %v3550_v51 }
0x1559   : > { %v8195_v52 = vpop.eup %8194 }
0x155a   : > { %v3552_v31 = vmul.f32 %v8195_v52, %v3549_v27 }
0x155c   : > { %v3559_v55 = vmul.f32 %v6418_v53, %v3552_v31 }
0x155e   : > { %v3566_v56 = vadd.f32 %v6419_v54, %v3559_v55 }
0x1560   : > { %v3567_v59 = vpack.c.bf16 %v3566_v56, %v3566_v56 }
0x1562   : > { %7376 = vmatmul.mubr.bf16.vlgmr.msra.gmra.mxu1 %v3567_v59  ;;  %7396 = vmatmul.mubr.bf16.vlgmr.msra.gmra.mxu0 %v3567_v59 }
0x1563   : > { %7400 = vmatpush3.bf16.msra.mxu1 %v8012_v57  ;;  %7415 = vmatprep.mubr.msk.bf16.mxu1 %vm8534_vm0, %v8533_v0 }
0x1564   : > { %7401 = vmatprep.subr.bf16.mxu1 %v8533_v0  ;;  %7421 = vmatprep.mubr.msk.bf16.mxu0 %vm8534_vm0, %v8533_v0 }
0x1567   : > { %7402 = vmatpush3.bf16.msra.mxu1 %v8013_v61  ;;  %v8020_v61 = vld [vmem:[#allocation2 + $0x538] sm:$0xff]  }
0x1568   : > { %7403 = vmatprep.subr.bf16.mxu1 %v8533_v0 }
0x156b   : > { %7404 = vmatpush3.bf16.msra.mxu1 %v8014_v62  ;;  %v8021_v62 = vld [vmem:[#allocation2 + $0x530] sm:$0xff]  }
0x156c   : > { %7405 = vmatprep.subr.bf16.mxu1 %v8533_v0 }
0x156f   : > { %7406 = vmatpush3.bf16.msra.mxu1 %v8015_v63  ;;  %v8022_v63 = vld [vmem:[#allocation2 + $0x528] sm:$0xff]  }
0x1570   : > { %7407 = vmatprep.subr.bf16.mxu1 %v8533_v0 }
0x1573   : > { %7408 = vmatpush3.bf16.msra.mxu1 %v8016_v1  ;;  %v8023_v1 = vld [vmem:[#allocation2 + $0x520] sm:$0xff]  }
0x1574   : > { %7409 = vmatprep.subr.bf16.mxu1 %v8533_v0 }
0x1577   : > { %7410 = vmatpush3.bf16.msra.mxu1 %v8017_v3  ;;  %v8024_v3 = vld [vmem:[#allocation2 + $0x518] sm:$0xff]  }
0x1578   : > { %7411 = vmatprep.subr.bf16.mxu1 %v8533_v0 }
0x157b   : > { %7412 = vmatpush3.bf16.msra.mxu1 %v8018_v4  ;;  %v8025_v4 = vld [vmem:[#allocation2 + $0x510] sm:$0xff]  }
0x157c   : > { %7413 = vmatprep.subr.bf16.mxu1 %v8533_v0 }
0x157f   : > { %7414 = vmatpush3.bf16.msra.mxu1 %v8019_v5  ;;  %v8026_v5 = vld [vmem:[#allocation2 + $0x508] sm:$0xff]  }
0x1580   : > { %7438 = vmatprep.subr.bf16.mxu1 %v8533_v0 }
0x1582   : > { %7416 = vmatmul.mubr.bf16.vlgmr.msra.gmra.mxu1 %v3567_v59 }
0x1583   : > { %7454 = vmatprep.mubr.msk.bf16.mxu1 %vm8534_vm0, %v8533_v0  ;;  %7439 = vmatpush3.bf16.msra.mxu1 %v8020_v61  ;;  %v8046_v61 = vld [vmem:[#allocation2 + $0x630] sm:$0xff]  }
0x1584   : > { %7440 = vmatprep.subr.bf16.mxu1 %v8533_v0 }
0x1587   : > { %7441 = vmatpush3.bf16.msra.mxu1 %v8021_v62  ;;  %v8047_v62 = vld [vmem:[#allocation2 + $0x5f0] sm:$0xff]  }
0x1588   : > { %7442 = vmatprep.subr.bf16.mxu1 %v8533_v0 }
0x158b   : > { %7443 = vmatpush3.bf16.msra.mxu1 %v8022_v63  ;;  %v8048_v63 = vld [vmem:[#allocation2 + $0x628] sm:$0xff]  }
0x158c   : > { %7444 = vmatprep.subr.bf16.mxu1 %v8533_v0 }
0x158f   : > { %7445 = vmatpush3.bf16.msra.mxu1 %v8023_v1  ;;  %v8049_v1 = vld [vmem:[#allocation2 + $0x5e8] sm:$0xff]  }
0x1590   : > { %7446 = vmatprep.subr.bf16.mxu1 %v8533_v0 }
0x1593   : > { %7447 = vmatpush3.bf16.msra.mxu1 %v8024_v3  ;;  %v8050_v3 = vld [vmem:[#allocation2 + $0x620] sm:$0xff]  }
0x1594   : > { %7448 = vmatprep.subr.bf16.mxu1 %v8533_v0 }
0x1597   : > { %7449 = vmatpush3.bf16.msra.mxu1 %v8025_v4  ;;  %v8051_v4 = vld [vmem:[#allocation2 + $0x5e0] sm:$0xff]  }
0x1598   : > { %7450 = vmatprep.subr.bf16.mxu1 %v8533_v0 }
0x159b   : > { %7451 = vmatpush3.bf16.msra.mxu1 %v8026_v5  ;;  %v8052_v5 = vld [vmem:[#allocation2 + $0x618] sm:$0xff]  }
0x159c   : > { %7452 = vmatprep.subr.bf16.mxu1 %v8533_v0 }
0x1622   : > { %v3675_v8 = vpop.f32.mrf.mxu1  ;;  %v3788_v9 = vpop.f32.mrf.mxu0 }
0x1623   : > { %v3676_v10 = vadd.f32 %v6420_v6, %v3675_v8  ;;  %v3789_v45 = vadd.f32 %v6429_v7, %v3788_v9 }
0x1624   : > { %v7377_v11 = vpop.f32.mrf.mxu1  ;;  %v7397_v46 = vpop.f32.mrf.mxu0 }
0x1625   : > { %v3908_v14 = vrot.slane %v3676_v10, 4  ;;  %v3914_v15 = vpack.c.bf16 %v3789_v45, %v3789_v45  ;;  %v9187_v11 = vld [vmem:[#allocation11] sm:$0xf]  ;;  %v8027_v46 = vld [vmem:[#allocation2 + $0x500] sm:$0xff]  }
0x1626   : > { %v3678_v2 = vpop.f32.mrf.mxu1  ;;  %v3791_v16 = vpop.f32.mrf.mxu0  ;;  %7453 = vmatpush3.bf16.msra.mxu1 %v8027_v46  ;;  %v8059_v46 = vld [vmem:[#allocation2 + $0x5c0] sm:$0xff]  }
0x1627   : > { %v3910_v17 = vsel %vm3048_vm3, %v3676_v10, %v3908_v14  ;;  %7420 = vmatpush3.bf16.xpose.msra.mxu0 %v3914_v15  ;;  %7478 = vmatprep.subr.bf16.mxu1 %v8533_v0  ;;  %v8028_v16 = vld [vmem:[#allocation2 + $0x578] sm:$0xff]  }
0x1628   : > { %v3911_v19 = vmul.f32 %v3910_v17, %v9153_v12  ;;  %v3912_v20 = vmul.f32 %v3910_v17, %v9155_v13  ;;  %v7378_v21 = vpop.f32.mrf.mxu1  ;;  %v7398_v22 = vpop.f32.mrf.mxu0  ;;  %7425 = vmatprep.subr.bf16.mxu0 %v8533_v0  ;;  %v8029_v17 = vld [vmem:[#allocation2 + $0x5b8] sm:$0xff]  }
0x162a   : > { %v3913_v58 = vpack.c.bf16 %v3912_v20, %v3911_v19  ;;  %v6457_v20 = vld [vmem:[#allocation5 + $0x1d] ss:$0 sm:$0xff] }
0x162e   : > { %7422 = vmatmul.mubr.bf16.vlgmr.msra.gmra.mxu0 %v3913_v58 }
0x162f   : > { %7427 = vmatprep.mubr.msk.bf16.mxu0 %vm8534_vm0, %v8533_v0 }
0x1642   : > { %v3901_v23 = vpop.f32.mrf.mxu1 }
0x1643   : > { %v3902_v25 = vadd.f32 %v6438_v60, %v3901_v23 }
0x1644   : > { %v7417_v26 = vpop.f32.mrf.mxu1 }
0x1645   : > { %v3980_v18 = vpack.c.bf16 %v3902_v25, %v3902_v25 }
0x1646   : > { %v3904_v28 = vpop.f32.mrf.mxu1 }
0x1647   : > { %v3986_v30 = vsel %vm3984_vm4, %v3980_v18, 0  ;;  %v8030_v28 = vld [vmem:[#allocation2 + $0x570] sm:$0xff]  }
0x1648   : > { %v7418_v32 = vpop.f32.mrf.mxu1  ;;  %7426 = vmatpush3.bf16.msra.mxu0 %v3986_v30  ;;  %v8031_v30 = vld [vmem:[#allocation2 + $0x5b0] sm:$0xff]  }
0x1649   : > { %7431 = vmatprep.subr.mxu0 %v8533_v0  ;;  %v8033_v32 = vld [vmem:[#allocation2 + $0x5a8] sm:$0xff]  }
0x16ee   : > { %v3949_v47 = vpop.f32.mrf.mxu0 }
0x16ef   : > { %v3950_v42 = vadd.f32 %v3949_v47, %v3532_v43  ;;  %v8034_v43 = vld [vmem:[#allocation2 + $0x560] sm:$0xff]  }
0x16f0   : > { %v7423_v34 = vpop.f32.mrf.mxu0  ;;  %v8035_v47 = vld [vmem:[#allocation2 + $0x5a0] sm:$0xff]  }
0x16f1   : > { %v3957_v35 = vsel %vm3956_vm5, %v3950_v42, -inf  ;;  %v8037_v34 = vld [vmem:[#allocation2 + $0x598] sm:$0xff]  }
0x16f2   : > { %3958 = vmax.xlane.f32.xlu0 %v3957_v35  ;;  %v3952_v36 = vpop.f32.mrf.mxu0  ;;  %v8039_v35 = vld [vmem:[#allocation2 + $0x590] sm:$0xff]  }
0x16f3   : > { %v3953_v37 = vadd.f32 %v3952_v36, %v3533_v50  ;;  %v8038_v50 = vld [vmem:[#allocation2 + $0x550] sm:$0xff]   ;;  %v8040_v36 = vld [vmem:[#allocation2 + $0x548] sm:$0xff]  }
0x16f4   : > { %v7424_v38 = vpop.f32.mrf.mxu0 }
0x16f5   : > { %v3960_v39 = vsel %vm3956_vm5, %v3953_v37, -inf  ;;  %v8042_v38 = vld [vmem:[#allocation2 + $0x540] sm:$0xff]  }
0x16f6   : > { %3961 = vmax.xlane.f32.xlu1 %v3960_v39  ;;  %v8043_v39 = vld [vmem:[#allocation2 + $0x580] sm:$0xff]  }
0x177b   : > { %v3959_v40 = vpop.xlane.xlu0 %3958 }
0x177c   : > { %v3963_v41 = vsub.f32 %v3950_v42, %v3959_v40  ;;  %v8036_v42 = vld [vmem:[#allocation2 + $0x558] sm:$0xff]  }
0x177e   : > { %v3965_v44 = vmul.f32 1.442695, %v3963_v41 }
0x177f   : > { %v3962_v29 = vpop.xlane.xlu1 %3961 }
0x1780   : > { %8196 = vpow2.f32 %v3965_v44  ;;  %v3964_v33 = vsub.f32 %v3953_v37, %v3962_v29  ;;  %v8041_v37 = vld [vmem:[#allocation2 + $0x588] sm:$0xff]  }
0x1782   : > { %v3967_v48 = vmul.f32 1.442695, %v3964_v33 }
0x1784   : > { %8198 = vpow2.f32 %v3967_v48 }
0x178d   : > { %v8197_v49 = vpop.eup %8196 }
0x178e   : > { %v3969_v51 = vsel %vm3956_vm5, %v8197_v49, 0.0 }
0x178f   : > { %3970 = vadd.xlane.f32.xlu0 %v3969_v51 }
0x1791   : > { %v8199_v27 = vpop.eup %8198 }
0x1792   : > { %v3972_v52 = vsel %vm3956_vm5, %v8199_v27, 0.0 }
0x1793   : > { %3973 = vadd.xlane.f32.xlu1 %v3972_v52  ;;  %v6458_v52 = vld [vmem:[#allocation5 + $0x1e] ss:$0 sm:$0xff] }
0x1818   : > { %v3971_v53 = vpop.xlane.xlu0 %3970 }
0x1819   : > { %8200 = vrcp.f32 %v3971_v53 }
0x181c   : > { %v3974_v31 = vpop.xlane.xlu1 %3973 }
0x181d   : > { %8202 = vrcp.f32 %v3974_v31  ;;  %v6459_v31 = vld [vmem:[#allocation5 + $0x1f] ss:$0 sm:$0xff] }
0x1826   : > { %v8201_v54 = vpop.eup %8200 }
0x1827   : > { %v3977_v56 = vmul.f32 %v8201_v54, %v8197_v49 }
0x182a   : > { %v8203_v55 = vpop.eup %8202 }
0x182b   : > { %v3978_v57 = vmul.f32 %v8203_v55, %v8199_v27 }
0x182d   : > { %v3979_v59 = vpack.c.bf16 %v3978_v57, %v3977_v56  ;;  %v8044_v56 = vld [vmem:[#allocation2 + $0x638] sm:$0xff]  }
0x182e   : > { %v8045_v57 = vld [vmem:[#allocation2 + $0x5f8] sm:$0xff]  }
0x182f   : > { %7428 = vmatmul.mubr.msk.bf16.vlgmr.msra.gmra.mxu0 %vm3956_vm5, %v3979_v59 }
0x1830   : > { %7435 = vmatprep.mubr.msk.f32.mxu0 %vm8534_vm0, %v8533_v0 }
0x18ef   : > { %v4022_v6 = vpop.f32.mrf.mxu0 }
0x18f0   : > { %v4029_v45 = vmul.f32 %v4022_v6, %v9153_v12  ;;  %v8053_v6 = vld [vmem:[#allocation2 + $0x5d8] sm:$0xff]  }
0x18f1   : > { %v7429_v7 = vpop.f32.mrf.mxu0 }
0x18f2   : > { %v8054_v7 = vld [vmem:[#allocation2 + $0x610] sm:$0xff]  }
0x18f3   : > { %v4025_v8 = vpop.f32.mrf.mxu0 }
0x18f4   : > { %v4030_v9 = vmul.f32 %v4025_v8, %v9155_v13  ;;  %v8055_v8 = vld [vmem:[#allocation2 + $0x5d0] sm:$0xff]  }
0x18f5   : > { %v7430_v10 = vpop.f32.mrf.mxu0 }
0x18f6   : > { %7432 = vmatpush3.msra.mxu0 %v4030_v9  ;;  %v8056_v9 = vld [vmem:[#allocation2 + $0x608] sm:$0xff]  }
0x18f7   : > { %7433 = vmatprep.subr.mxu0 %v8533_v0  ;;  %v8057_v10 = vld [vmem:[#allocation2 + $0x5c8] sm:$0xff]  }
0x18f8   : > { %7434 = vmatpush3.msra.mxu0 %v4029_v45  ;;  %v8058_v45 = vld [vmem:[#allocation2 + $0x600] sm:$0xff]  }
0x18f9   : > { %7436 = vmatmul.mubr.msk.f32.vlgmr.msra.gmra.mxu0 %vm1111_vm1, %v9187_v11  ;;  %7458 = vmatprep.subr.bf16.mxu0 %v8533_v0 }
0x18fa   : > { %7474 = vmatprep.mubr.msk.bf16.mxu0 %vm8534_vm0, %v8533_v0  ;;  %7459 = vmatpush3.bf16.msra.mxu0 %v8028_v16 }
0x18fb   : > { %7460 = vmatprep.subr.bf16.mxu0 %v8533_v0 }
0x18fe   : > { %7461 = vmatpush3.bf16.msra.mxu0 %v8030_v28 }
0x18ff   : > { %7462 = vmatprep.subr.bf16.mxu0 %v8533_v0 }
0x19b9   : > { %v4100_v14 = vpop.f32.mrf.mxu0 }
0x19ba   : > { %v4104_v15 = vpack.c.bf16 %v4100_v14, %v4100_v14  ;;  %v6460_v14 = vld [vmem:[#allocation5 + $0x20] ss:$0 sm:$0xff] }
0x19bb   : > { %v7437_v2 = vpop.f32.mrf.mxu0 }
0x19bc   : > { %7455 = vmatmul.mubr.bf16.vlgmr.msra.gmra.mxu1 %v4104_v15  ;;  %v6469_v15 = vld [vmem:[#allocation5 + $0x21] ss:$0 sm:$0xff] }
0x19bd   : > { %7494 = vmatprep.mubr.msk.bf16.mxu1 %vm8534_vm0, %v8533_v0  ;;  %7479 = vmatpush3.bf16.msra.mxu1 %v8029_v17 }
0x19be   : > { %7480 = vmatprep.subr.bf16.mxu1 %v8533_v0 }
0x19c1   : > { %7481 = vmatpush3.bf16.msra.mxu1 %v8031_v30 }
0x19c2   : > { %7482 = vmatprep.subr.bf16.mxu1 %v8533_v0 }
0x19c5   : > { %7483 = vmatpush3.bf16.msra.mxu1 %v8033_v32 }
0x19c6   : > { %7484 = vmatprep.subr.bf16.mxu1 %v8533_v0 }
0x19c9   : > { %7485 = vmatpush3.bf16.msra.mxu1 %v8035_v47 }
0x19ca   : > { %7486 = vmatprep.subr.bf16.mxu1 %v8533_v0 }
0x19cd   : > { %7487 = vmatpush3.bf16.msra.mxu1 %v8037_v34 }
0x19ce   : > { %7488 = vmatprep.subr.bf16.mxu1 %v8533_v0 }
0x19d1   : > { %7489 = vmatpush3.bf16.msra.mxu1 %v8039_v35 }
0x19d2   : > { %7490 = vmatprep.subr.bf16.mxu1 %v8533_v0 }
0x19d5   : > { %7491 = vmatpush3.bf16.msra.mxu1 %v8041_v37  ;;  %v8061_v37 = vld [vmem:[#allocation2 + $0x6b8] sm:$0xff]  }
0x19d6   : > { %7492 = vmatprep.subr.bf16.mxu1 %v8533_v0 }
0x19d9   : > { %7493 = vmatpush3.bf16.msra.mxu1 %v8043_v39 }
0x19da   : > { %7518 = vmatprep.subr.bf16.mxu1 %v8533_v0 }
0x1a7c   : > { %v4204_v19 = vpop.f32.mrf.mxu1 }
0x1a7d   : > { %v4210_v21 = vadd.f32 %v4204_v19, %v9117_v24  ;;  %v8032_v24 = vld [vmem:[#allocation2 + $0x568] sm:$0xff]  }
0x1a7e   : > { %v7456_v22 = vpop.f32.mrf.mxu1  ;;  %7463 = vmatpush3.bf16.msra.mxu0 %v8032_v24 }
0x1a7f   : > { %v9201_v58 = vadd.f32 %v6457_v20, %v4210_v21  ;;  %7464 = vmatprep.subr.bf16.mxu0 %v8533_v0 }
0x1a80   : > { %v4207_v60 = vpop.f32.mrf.mxu1 }
0x1a81   : > { %v4224_v23 = vsel %vm3048_vm3, %v9201_v58, 0.0  ;;  %v4228_v25 = vmul.f32 %v9201_v58, %v9201_v58 }
0x1a82   : > { %4225 = vadd.xlane.f32.xlu0 %v4224_v23  ;;  %v7457_v26 = vpop.f32.mrf.mxu1  ;;  %7465 = vmatpush3.bf16.msra.mxu0 %v8034_v43 }
0x1a83   : > { %v4229_v18 = vsel %vm3048_vm3, %v4228_v25, 0.0  ;;  %7466 = vmatprep.subr.bf16.mxu0 %v8533_v0 }
0x1a84   : > { %4230 = vadd.xlane.f32.xlu1 %v4229_v18 }
0x1a86   : > { %7467 = vmatpush3.bf16.msra.mxu0 %v8036_v42 }
0x1a87   : > { %7468 = vmatprep.subr.bf16.mxu0 %v8533_v0 }
0x1a8a   : > { %7469 = vmatpush3.bf16.msra.mxu0 %v8038_v50 }
0x1a8b   : > { %7470 = vmatprep.subr.bf16.mxu0 %v8533_v0 }
0x1a8e   : > { %7471 = vmatpush3.bf16.msra.mxu0 %v8040_v36  ;;  %v8060_v36 = vld [vmem:[#allocation2 + $0x678] sm:$0xff]  }
0x1a8f   : > { %7472 = vmatprep.subr.bf16.mxu0 %v8533_v0 }
0x1a92   : > { %7473 = vmatpush3.bf16.msra.mxu0 %v8042_v38 }
0x1a93   : > { %7498 = vmatprep.subr.bf16.mxu0 %v8533_v0 }
0x1b0b   : > { %v4226_v40 = vpop.xlane.xlu0 %4225 }
0x1b0c   : > { %v4227_v41 = vmul.f32 0.015625, %v4226_v40 }
0x1b0d   : > { %v4231_v44 = vpop.xlane.xlu1 %4230 }
0x1b0e   : > { %v4233_v29 = vmul.f32 %v4227_v41, %v4227_v41  ;;  %v4232_v33 = vmul.f32 0.015625, %v4231_v44  ;;  %v4235_v51 = vsub.f32 %v9201_v58, %v4227_v41  ;;  %v6494_v44 = vld [vmem:[#allocation5 + $0x22] ss:$0 sm:$0xff] }
0x1b10   : > { %v4234_v48 = vsub.f32 %v4232_v33, %v4233_v29 }
0x1b12   : > { %v4236_v49 = vadd.f32 1e-05, %v4234_v48 }
0x1b14   : > { %8204 = vrsqrt.f32 %v4236_v49 }
0x1b21   : > { %v8205_v27 = vpop.eup %8204 }
0x1b22   : > { %v4238_v53 = vmul.f32 %v8205_v27, %v4235_v51 }
0x1b24   : > { %v4245_v54 = vmul.f32 %v6458_v52, %v4238_v53 }
0x1b26   : > { %v4252_v55 = vadd.f32 %v6459_v31, %v4245_v54 }
0x1b28   : > { %v4253_v59 = vpack.c.bf16 %v4252_v55, %v4252_v55  ;;  %v8062_v55 = vld [vmem:[#allocation2 + $0x670] sm:$0xff]  }
0x1b2a   : > { %7475 = vmatmul.mubr.bf16.vlgmr.msra.gmra.mxu0 %v4253_v59  ;;  %7495 = vmatmul.mubr.bf16.vlgmr.msra.gmra.mxu1 %v4253_v59  ;;  %v8066_v59 = vld [vmem:[#allocation2 + $0x660] sm:$0xff]  }
0x1b2b   : > { %7499 = vmatpush3.bf16.msra.mxu0 %v8044_v56  ;;  %7519 = vmatpush3.bf16.msra.mxu1 %v8045_v57  ;;  %v8063_v56 = vld [vmem:[#allocation2 + $0x6b0] sm:$0xff]   ;;  %v8065_v57 = vld [vmem:[#allocation2 + $0x6a8] sm:$0xff]  }
0x1b2c   : > { %7500 = vmatprep.subr.bf16.mxu0 %v8533_v0  ;;  %7520 = vmatprep.subr.bf16.mxu1 %v8533_v0 }
0x1b2d   : > { %7514 = vmatprep.mubr.msk.bf16.mxu0 %vm8534_vm0, %v8533_v0  ;;  %7534 = vmatprep.mubr.msk.bf16.mxu1 %vm8534_vm0, %v8533_v0 }
0x1b2f   : > { %7501 = vmatpush3.bf16.msra.mxu0 %v8046_v61  ;;  %7521 = vmatpush3.bf16.msra.mxu1 %v8047_v62  ;;  %v8067_v61 = vld [vmem:[#allocation2 + $0x6a0] sm:$0xff]   ;;  %v8068_v62 = vld [vmem:[#allocation2 + $0x658] sm:$0xff]  }
0x1b30   : > { %7502 = vmatprep.subr.bf16.mxu0 %v8533_v0  ;;  %7522 = vmatprep.subr.bf16.mxu1 %v8533_v0 }
0x1b33   : > { %7503 = vmatpush3.bf16.msra.mxu0 %v8048_v63  ;;  %7523 = vmatpush3.bf16.msra.mxu1 %v8049_v1  ;;  %v8069_v63 = vld [vmem:[#allocation2 + $0x698] sm:$0xff]   ;;  %v8070_v1 = vld [vmem:[#allocation2 + $0x650] sm:$0xff]  }
0x1b34   : > { %7504 = vmatprep.subr.bf16.mxu0 %v8533_v0  ;;  %7524 = vmatprep.subr.bf16.mxu1 %v8533_v0 }
0x1b37   : > { %7505 = vmatpush3.bf16.msra.mxu0 %v8050_v3  ;;  %7525 = vmatpush3.bf16.msra.mxu1 %v8051_v4  ;;  %v8071_v3 = vld [vmem:[#allocation2 + $0x690] sm:$0xff]   ;;  %v8072_v4 = vld [vmem:[#allocation2 + $0x648] sm:$0xff]  }
0x1b38   : > { %7506 = vmatprep.subr.bf16.mxu0 %v8533_v0  ;;  %7526 = vmatprep.subr.bf16.mxu1 %v8533_v0 }
0x1b3b   : > { %7507 = vmatpush3.bf16.msra.mxu0 %v8052_v5  ;;  %7527 = vmatpush3.bf16.msra.mxu1 %v8053_v6  ;;  %v8073_v5 = vld [vmem:[#allocation2 + $0x688] sm:$0xff]   ;;  %v8074_v6 = vld [vmem:[#allocation2 + $0x640] sm:$0xff]  }
0x1b3c   : > { %7508 = vmatprep.subr.bf16.mxu0 %v8533_v0  ;;  %7528 = vmatprep.subr.bf16.mxu1 %v8533_v0 }
0x1b3f   : > { %7509 = vmatpush3.bf16.msra.mxu0 %v8054_v7  ;;  %7529 = vmatpush3.bf16.msra.mxu1 %v8055_v8  ;;  %v8075_v7 = vld [vmem:[#allocation2 + $0x680] sm:$0xff]  }
0x1b40   : > { %7510 = vmatprep.subr.bf16.mxu0 %v8533_v0  ;;  %7530 = vmatprep.subr.bf16.mxu1 %v8533_v0 }
0x1b43   : > { %7511 = vmatpush3.bf16.msra.mxu0 %v8056_v9  ;;  %7531 = vmatpush3.bf16.msra.mxu1 %v8057_v10 }
0x1b44   : > { %7512 = vmatprep.subr.bf16.mxu0 %v8533_v0  ;;  %7532 = vmatprep.subr.bf16.mxu1 %v8533_v0 }
0x1b47   : > { %7513 = vmatpush3.bf16.msra.mxu0 %v8058_v45  ;;  %7533 = vmatpush3.bf16.msra.mxu1 %v8059_v46 }
0x1b48   : > { %7538 = vmatprep.subr.bf16.mxu0 %v8533_v0  ;;  %7558 = vmatprep.subr.bf16.mxu1 %v8533_v0 }
0x1bea   : > { %v4361_v2 = vpop.f32.mrf.mxu0  ;;  %v4479_v16 = vpop.f32.mrf.mxu1 }
0x1beb   : > { %v4362_v17 = vadd.f32 %v6460_v14, %v4361_v2  ;;  %v4480_v19 = vadd.f32 %v6469_v15, %v4479_v16 }
0x1bec   : > { %v7476_v20 = vpop.f32.mrf.mxu0  ;;  %v7496_v21 = vpop.f32.mrf.mxu1 }
0x1bed   : > { %v4368_v22 = vmul.f32 0.70710677, %v4362_v17  ;;  %v4486_v60 = vmul.f32 0.70710677, %v4480_v19  ;;  %v4367_v24 = vmul.f32 0.5, %v4362_v17  ;;  %v4485_v43 = vmul.f32 0.5, %v4480_v19 }
0x1bee   : > { %v4364_v23 = vpop.f32.mrf.mxu0  ;;  %v4482_v25 = vpop.f32.mrf.mxu1  ;;  %v6497_v17 = vld [vmem:[#allocation5 + $0x23] ss:$0 sm:$0xff]  ;;  %v6498_v20 = vld [vmem:[#allocation5 + $0x24] ss:$0 sm:$0xff] }
0x1bef   : > { %8206 = verf.f32 %v4368_v22  ;;  %v8077_v25 = vld [vmem:[#allocation2 + $0x6f0] sm:$0xff]  }
0x1bf0   : > { %8208 = verf.f32 %v4486_v60  ;;  %v7477_v26 = vpop.f32.mrf.mxu0  ;;  %v7497_v18 = vpop.f32.mrf.mxu1  ;;  %v8076_v60 = vld [vmem:[#allocation2 + $0x6f8] sm:$0xff]  }
0x1bf1   : > { %v8078_v26 = vld [vmem:[#allocation2 + $0x6e8] sm:$0xff]   ;;  %v8079_v18 = vld [vmem:[#allocation2 + $0x6e0] sm:$0xff]  }
0x1bfc   : > { %v8207_v28 = vpop.eup %8206 }
0x1bfd   : > { %v8209_v30 = vpop.eup %8208  ;;  %v4370_v32 = vadd.f32 1.0, %v8207_v28  ;;  %v8080_v28 = vld [vmem:[#allocation2 + $0x6d8] sm:$0xff]  }
0x1bfe   : > { %v4488_v47 = vadd.f32 1.0, %v8209_v30  ;;  %v8081_v30 = vld [vmem:[#allocation2 + $0x6d0] sm:$0xff]  }
0x1bff   : > { %v4371_v42 = vmul.f32 %v4370_v32, %v4367_v24  ;;  %v8082_v24 = vld [vmem:[#allocation2 + $0x6c8] sm:$0xff]   ;;  %v8083_v32 = vld [vmem:[#allocation2 + $0x6c0] sm:$0xff]  }
0x1c00   : > { %v4489_v34 = vmul.f32 %v4488_v47, %v4485_v43  ;;  %v6499_v43 = vld [vmem:[#allocation5 + $0x25] ss:$0 sm:$0xff]  ;;  %v6508_v47 = vld [vmem:[#allocation5 + $0x26] ss:$0 sm:$0xff] }
0x1c01   : > { %v4490_v50 = vpack.c.bf16 %v4371_v42, %v4371_v42 }
0x1c02   : > { %v4508_v35 = vpack.c.bf16 %v4489_v34, %v4489_v34 }
0x1c03   : > { %7535 = vmatmul.mubr.bf16.vlgmr.msra.gmra.mxu1 %v4490_v50 }
0x1c04   : > { %7515 = vmatmul.mubr.bf16.vlgmr.msra.gmra.mxu0 %v4508_v35  ;;  %7574 = vmatprep.mubr.msk.bf16.mxu1 %vm8534_vm0, %v8533_v0 }
0x1c05   : > { %7554 = vmatprep.mubr.msk.bf16.mxu0 %vm8534_vm0, %v8533_v0  ;;  %7539 = vmatpush3.bf16.msra.mxu0 %v8060_v36 }
0x1c06   : > { %7559 = vmatpush3.bf16.msra.mxu1 %v8061_v37  ;;  %7540 = vmatprep.subr.bf16.mxu0 %v8533_v0 }
0x1c07   : > { %7560 = vmatprep.subr.bf16.mxu1 %v8533_v0 }
0x1c09   : > { %7541 = vmatpush3.bf16.msra.mxu0 %v8062_v55 }
0x1c0a   : > { %7561 = vmatpush3.bf16.msra.mxu1 %v8063_v56  ;;  %7542 = vmatprep.subr.bf16.mxu0 %v8533_v0 }
0x1c0b   : > { %7562 = vmatprep.subr.bf16.mxu1 %v8533_v0 }
0x1c0e   : > { %7563 = vmatpush3.bf16.msra.mxu1 %v8065_v57 }
0x1c0f   : > { %7564 = vmatprep.subr.bf16.mxu1 %v8533_v0 }
0x1c12   : > { %7565 = vmatpush3.bf16.msra.mxu1 %v8067_v61 }
0x1c13   : > { %7566 = vmatprep.subr.bf16.mxu1 %v8533_v0 }
0x1c16   : > { %7567 = vmatpush3.bf16.msra.mxu1 %v8069_v63 }
0x1c17   : > { %7568 = vmatprep.subr.bf16.mxu1 %v8533_v0 }
0x1c1a   : > { %7569 = vmatpush3.bf16.msra.mxu1 %v8071_v3 }
0x1c1b   : > { %7570 = vmatprep.subr.bf16.mxu1 %v8533_v0 }
0x1c1e   : > { %7571 = vmatpush3.bf16.msra.mxu1 %v8073_v5 }
0x1c1f   : > { %7572 = vmatprep.subr.bf16.mxu1 %v8533_v0 }
0x1c22   : > { %7573 = vmatpush3.bf16.msra.mxu1 %v8075_v7 }
0x1c23   : > { %7598 = vmatprep.subr.bf16.mxu1 %v8533_v0 }
0x1cc3   : > { %v4696_v38 = vpop.f32.mrf.mxu1 }
0x1cc4   : > { %v4608_v39 = vpop.f32.mrf.mxu0 }
0x1cc5   : > { %v4697_v40 = vadd.f32 %v4696_v38, %v4608_v39  ;;  %v7536_v41 = vpop.f32.mrf.mxu1 }
0x1cc6   : > { %v7516_v29 = vpop.f32.mrf.mxu0 }
0x1cc7   : > { %v4702_v33 = vadd.f32 %v4697_v40, %v9201_v58  ;;  %v4699_v48 = vpop.f32.mrf.mxu1  ;;  %v8064_v58 = vld [vmem:[#allocation2 + $0x668] sm:$0xff]  }
0x1cc8   : > { %v4611_v49 = vpop.f32.mrf.mxu0  ;;  %7543 = vmatpush3.bf16.msra.mxu0 %v8064_v58 }
0x1cc9   : > { %v9250_v51 = vadd.f32 %v6494_v44, %v4702_v33  ;;  %v7537_v27 = vpop.f32.mrf.mxu1  ;;  %7544 = vmatprep.subr.bf16.mxu0 %v8533_v0 }
0x1cca   : > { %v7517_v52 = vpop.f32.mrf.mxu0 }
0x1ccb   : > { %v4719_v53 = vsel %vm3048_vm3, %v9250_v51, 0.0  ;;  %v4723_v31 = vmul.f32 %v9250_v51, %v9250_v51  ;;  %v6517_v52 = vld [vmem:[#allocation5 + $0x27] ss:$0 sm:$0xff] }
0x1ccc   : > { %4720 = vadd.xlane.f32.xlu0 %v4719_v53  ;;  %7545 = vmatpush3.bf16.msra.mxu0 %v8066_v59  ;;  %v6495_v59 = vld [vmem:[%s9457_s4 + $0x10] sm:$0xff] }
0x1ccd   : > { %v4724_v54 = vsel %vm3048_vm3, %v4723_v31, 0.0  ;;  %7546 = vmatprep.subr.bf16.mxu0 %v8533_v0 }
0x1cce   : > { %4725 = vadd.xlane.f32.xlu1 %v4724_v54 }
0x1cd0   : > { %7547 = vmatpush3.bf16.msra.mxu0 %v8068_v62 }
0x1cd1   : > { %7548 = vmatprep.subr.bf16.mxu0 %v8533_v0 }
0x1cd4   : > { %7549 = vmatpush3.bf16.msra.mxu0 %v8070_v1  ;;  %v6496_v1 = vld [vmem:[%s9457_s4 + $0x18] sm:$0xff] }
0x1cd5   : > { %7550 = vmatprep.subr.bf16.mxu0 %v8533_v0 }
0x1cd8   : > { %7551 = vmatpush3.bf16.msra.mxu0 %v8072_v4 }
0x1cd9   : > { %7552 = vmatprep.subr.bf16.mxu0 %v8533_v0 }
0x1cdc   : > { %7553 = vmatpush3.bf16.msra.mxu0 %v8074_v6 }
0x1cdd   : > { %7578 = vmatprep.subr.bf16.mxu0 %v8533_v0 }
0x1d55   : > { %v4721_v8 = vpop.xlane.xlu0 %4720 }
0x1d56   : > { %v4722_v9 = vmul.f32 0.015625, %v4721_v8 }
0x1d57   : > { %v4726_v10 = vpop.xlane.xlu1 %4725 }
0x1d58   : > { %v4728_v45 = vmul.f32 %v4722_v9, %v4722_v9  ;;  %v4727_v46 = vmul.f32 0.015625, %v4726_v10  ;;  %v4730_v2 = vsub.f32 %v9250_v51, %v4722_v9 }
0x1d5a   : > { %v4729_v14 = vsub.f32 %v4727_v46, %v4728_v45 }
0x1d5c   : > { %v4731_v15 = vadd.f32 1e-05, %v4729_v14 }
0x1d5e   : > { %8210 = vrsqrt.f32 %v4731_v15 }
0x1d6b   : > { %v8211_v16 = vpop.eup %8210 }
0x1d6c   : > { %v4733_v19 = vmul.f32 %v8211_v16, %v4730_v2 }
0x1d6e   : > { %v4740_v21 = vmul.f32 %v6497_v17, %v4733_v19 }
0x1d70   : > { %v4747_v22 = vadd.f32 %v6498_v20, %v4740_v21 }
0x1d72   : > { %v4748_v23 = vpack.c.bf16 %v4747_v22, %v4747_v22 }
0x1d74   : > { %7555 = vmatmul.mubr.bf16.vlgmr.msra.gmra.mxu0 %v4748_v23  ;;  %7575 = vmatmul.mubr.bf16.vlgmr.msra.gmra.mxu1 %v4748_v23 }
0x1d75   : > { %7579 = vmatpush3.bf16.msra.mxu0 %v8076_v60  ;;  %7594 = vmatprep.mubr.msk.bf16.mxu0 %vm8534_vm0, %v8533_v0 }
0x1d76   : > { %7580 = vmatprep.subr.bf16.mxu0 %v8533_v0  ;;  %7600 = vmatprep.mubr.msk.bf16.mxu1 %vm8534_vm0, %v8533_v0 }
0x1d79   : > { %7581 = vmatpush3.bf16.msra.mxu0 %v8077_v25 }
0x1d7a   : > { %7582 = vmatprep.subr.bf16.mxu0 %v8533_v0 }
0x1d7d   : > { %7583 = vmatpush3.bf16.msra.mxu0 %v8078_v26  ;;  %v8084_v26 = vld [vmem:[#allocation2 + $0x738] sm:$0xff]  }
0x1d7e   : > { %7584 = vmatprep.subr.bf16.mxu0 %v8533_v0 }
0x1d81   : > { %7585 = vmatpush3.bf16.msra.mxu0 %v8079_v18  ;;  %v8085_v18 = vld [vmem:[#allocation2 + $0x730] sm:$0xff]  }
0x1d82   : > { %7586 = vmatprep.subr.bf16.mxu0 %v8533_v0 }
0x1d85   : > { %7587 = vmatpush3.bf16.msra.mxu0 %v8080_v28  ;;  %v8086_v28 = vld [vmem:[#allocation2 + $0x728] sm:$0xff]  }
0x1d86   : > { %7588 = vmatprep.subr.bf16.mxu0 %v8533_v0 }
0x1d89   : > { %7589 = vmatpush3.bf16.msra.mxu0 %v8081_v30  ;;  %v8087_v30 = vld [vmem:[#allocation2 + $0x720] sm:$0xff]  }
0x1d8a   : > { %7590 = vmatprep.subr.bf16.mxu0 %v8533_v0 }
0x1d8d   : > { %7591 = vmatpush3.bf16.msra.mxu0 %v8082_v24  ;;  %v8088_v24 = vld [vmem:[#allocation2 + $0x718] sm:$0xff]  }
0x1d8e   : > { %7592 = vmatprep.subr.bf16.mxu0 %v8533_v0 }
0x1d91   : > { %7593 = vmatpush3.bf16.msra.mxu0 %v8083_v32  ;;  %v8089_v32 = vld [vmem:[#allocation2 + $0x710] sm:$0xff]  }
0x1d92   : > { %7604 = vmatprep.subr.bf16.mxu0 %v8533_v0 }
0x1d94   : > { %7595 = vmatmul.mubr.bf16.vlgmr.msra.gmra.mxu0 %v4748_v23 }
0x1d95   : > { %7606 = vmatprep.mubr.msk.bf16.mxu0 %vm8534_vm0, %v8533_v0 }
0x1e34   : > { %v4856_v42 = vpop.f32.mrf.mxu0  ;;  %v4969_v34 = vpop.f32.mrf.mxu1 }
0x1e35   : > { %v4857_v50 = vadd.f32 %v6499_v43, %v4856_v42  ;;  %v4970_v35 = vadd.f32 %v6508_v47, %v4969_v34  ;;  %v8090_v43 = vld [vmem:[#allocation2 + $0x708] sm:$0xff]  }
0x1e36   : > { %v7556_v36 = vpop.f32.mrf.mxu0  ;;  %v7576_v37 = vpop.f32.mrf.mxu1 }
0x1e37   : > { %v5089_v38 = vrot.slane %v4857_v50, 4  ;;  %v5095_v39 = vpack.c.bf16 %v4970_v35, %v4970_v35  ;;  %v8091_v37 = vld [vmem:[#allocation2 + $0x700] sm:$0xff]  }
0x1e38   : > { %v4859_v40 = vpop.f32.mrf.mxu0  ;;  %v4972_v41 = vpop.f32.mrf.mxu1 }
0x1e39   : > { %v5091_v44 = vsel %vm3048_vm3, %v4857_v50, %v5089_v38  ;;  %7599 = vmatpush3.bf16.xpose.msra.mxu1 %v5095_v39  ;;  %v8093_v40 = vld [vmem:[#allocation2 + $0x7b8] sm:$0xff]   ;;  %v6536_v41 = vld [vmem:[#allocation5 + $0x28] ss:$0 sm:$0xff] }
0x1e3a   : > { %v5092_v29 = vmul.f32 %v5091_v44, %v9153_v12  ;;  %v5093_v33 = vmul.f32 %v5091_v44, %v9155_v13  ;;  %v7557_v48 = vpop.f32.mrf.mxu0  ;;  %v7577_v49 = vpop.f32.mrf.mxu1  ;;  %7610 = vmatprep.subr.mxu1 %v8533_v0 }
0x1e3c   : > { %v5094_v27 = vpack.c.bf16 %v5093_v33, %v5092_v29 }
0x1e40   : > { %7601 = vmatmul.mubr.bf16.vlgmr.msra.gmra.mxu1 %v5094_v27 }
0x1e41   : > { %7614 = vmatprep.mubr.msk.f32.mxu1 %vm8534_vm0, %v8533_v0 }
0x1e54   : > { %v5082_v53 = vpop.f32.mrf.mxu0 }
0x1e55   : > { %v5083_v31 = vadd.f32 %v6517_v52, %v5082_v53 }
0x1e56   : > { %v7596_v54 = vpop.f32.mrf.mxu0 }
0x1e57   : > { %v5160_v55 = vpack.c.bf16 %v5083_v31, %v5083_v31  ;;  %v8094_v31 = vld [vmem:[#allocation2 + $0x770] sm:$0xff]  }
0x1e58   : > { %v5085_v56 = vpop.f32.mrf.mxu0  ;;  %v8095_v54 = vld [vmem:[#allocation2 + $0x7b0] sm:$0xff]  }
0x1e59   : > { %v5165_v58 = vsel %vm3984_vm4, %v5160_v55, 0  ;;  %v8097_v55 = vld [vmem:[#allocation2 + $0x7a8] sm:$0xff]   ;;  %v8098_v56 = vld [vmem:[#allocation2 + $0x760] sm:$0xff]  }
0x1e5a   : > { %v7597_v57 = vpop.f32.mrf.mxu0  ;;  %7605 = vmatpush3.bf16.msra.mxu0 %v5165_v58  ;;  %v8099_v58 = vld [vmem:[#allocation2 + $0x7a0] sm:$0xff]  }
0x1e5b   : > { %7617 = vmatprep.subr.bf16.mxu0 %v8533_v0  ;;  %v8100_v57 = vld [vmem:[#allocation2 + $0x758] sm:$0xff]  }
0x1f00   : > { %v5130_v61 = vpop.f32.mrf.mxu1 }
0x1f01   : > { %v5131_v62 = vadd.f32 %v6495_v59, %v5130_v61  ;;  %v8101_v59 = vld [vmem:[#allocation2 + $0x798] sm:$0xff]   ;;  %v8102_v61 = vld [vmem:[#allocation2 + $0x750] sm:$0xff]  }
0x1f02   : > { %v7602_v63 = vpop.f32.mrf.mxu1 }
0x1f03   : > { %v5137_v3 = vsel %vm3956_vm5, %v5131_v62, -inf  ;;  %v8104_v63 = vld [vmem:[#allocation2 + $0x748] sm:$0xff]  }
0x1f04   : > { %5138 = vmax.xlane.f32.xlu0 %v5137_v3  ;;  %v5133_v4 = vpop.f32.mrf.mxu1  ;;  %v8106_v3 = vld [vmem:[#allocation2 + $0x740] sm:$0xff]  }
0x1f05   : > { %v5134_v5 = vadd.f32 %v6496_v1, %v5133_v4  ;;  %v8105_v1 = vld [vmem:[#allocation2 + $0x788] sm:$0xff]   ;;  %v8107_v4 = vld [vmem:[#allocation2 + $0x780] sm:$0xff]  }
0x1f06   : > { %v7603_v6 = vpop.f32.mrf.mxu1 }
0x1f07   : > { %v5140_v7 = vsel %vm3956_vm5, %v5134_v5, -inf }
0x1f08   : > { %5141 = vmax.xlane.f32.xlu1 %v5140_v7 }
0x1f8d   : > { %v5139_v8 = vpop.xlane.xlu0 %5138 }
0x1f8e   : > { %v5143_v9 = vsub.f32 %v5131_v62, %v5139_v8  ;;  %v8103_v62 = vld [vmem:[#allocation2 + $0x790] sm:$0xff]  }
0x1f90   : > { %v5145_v10 = vmul.f32 1.442695, %v5143_v9 }
0x1f91   : > { %v5142_v45 = vpop.xlane.xlu1 %5141 }
0x1f92   : > { %8212 = vpow2.f32 %v5145_v10  ;;  %v5144_v46 = vsub.f32 %v5134_v5, %v5142_v45 }
0x1f94   : > { %v5147_v14 = vmul.f32 1.442695, %v5144_v46 }
0x1f96   : > { %8214 = vpow2.f32 %v5147_v14 }
0x1f9f   : > { %v8213_v15 = vpop.eup %8212 }
0x1fa0   : > { %v5149_v2 = vsel %vm3956_vm5, %v8213_v15, 0.0 }
0x1fa1   : > { %5150 = vadd.xlane.f32.xlu0 %v5149_v2 }
0x1fa3   : > { %v8215_v16 = vpop.eup %8214 }
0x1fa4   : > { %v5152_v17 = vsel %vm3956_vm5, %v8215_v16, 0.0 }
0x1fa5   : > { %5153 = vadd.xlane.f32.xlu1 %v5152_v17 }
0x202a   : > { %v5151_v19 = vpop.xlane.xlu0 %5150 }
0x202b   : > { %8216 = vrcp.f32 %v5151_v19 }
0x202e   : > { %v5154_v20 = vpop.xlane.xlu1 %5153 }
0x202f   : > { %8218 = vrcp.f32 %v5154_v20  ;;  %v8108_v20 = vld [vmem:[#allocation2 + $0x838] sm:$0xff]  }
0x2038   : > { %v8217_v21 = vpop.eup %8216 }
0x2039   : > { %v5157_v60 = vmul.f32 %v8217_v21, %v8213_v15  ;;  %v6537_v15 = vld [vmem:[#allocation5 + $0x29] ss:$0 sm:$0xff]  ;;  %v8109_v21 = vld [vmem:[#allocation2 + $0x7f8] sm:$0xff]  }
0x203c   : > { %v8219_v22 = vpop.eup %8218 }
0x203d   : > { %v5158_v23 = vmul.f32 %v8219_v22, %v8215_v16  ;;  %v6538_v16 = vld [vmem:[#allocation5 + $0x2a] ss:$0 sm:$0xff] }
0x203f   : > { %v5159_v25 = vpack.c.bf16 %v5158_v23, %v5157_v60  ;;  %v8110_v60 = vld [vmem:[#allocation2 + $0x830] sm:$0xff]  }
0x2040   : > { %v8111_v23 = vld [vmem:[#allocation2 + $0x7f0] sm:$0xff]  }
0x2041   : > { %7607 = vmatmul.mubr.msk.bf16.vlgmr.msra.gmra.mxu0 %vm3956_vm5, %v5159_v25  ;;  %v8112_v25 = vld [vmem:[#allocation2 + $0x828] sm:$0xff]  }
0x2042   : > { %7633 = vmatprep.mubr.msk.bf16.mxu0 %vm8534_vm0, %v8533_v0  ;;  %7618 = vmatpush3.bf16.msra.mxu0 %v8084_v26  ;;  %v8113_v26 = vld [vmem:[#allocation2 + $0x7e8] sm:$0xff]  }
0x2043   : > { %7619 = vmatprep.subr.bf16.mxu0 %v8533_v0 }
0x2046   : > { %7620 = vmatpush3.bf16.msra.mxu0 %v8085_v18  ;;  %v8114_v18 = vld [vmem:[#allocation2 + $0x820] sm:$0xff]  }
0x2047   : > { %7621 = vmatprep.subr.bf16.mxu0 %v8533_v0 }
0x204a   : > { %7622 = vmatpush3.bf16.msra.mxu0 %v8086_v28  ;;  %v8115_v28 = vld [vmem:[#allocation2 + $0x7e0] sm:$0xff]  }
0x204b   : > { %7623 = vmatprep.subr.bf16.mxu0 %v8533_v0 }
0x204e   : > { %7624 = vmatpush3.bf16.msra.mxu0 %v8087_v30  ;;  %v8116_v30 = vld [vmem:[#allocation2 + $0x818] sm:$0xff]  }
0x204f   : > { %7625 = vmatprep.subr.bf16.mxu0 %v8533_v0 }
0x2052   : > { %7626 = vmatpush3.bf16.msra.mxu0 %v8088_v24  ;;  %v8117_v24 = vld [vmem:[#allocation2 + $0x7d8] sm:$0xff]  }
0x2053   : > { %7627 = vmatprep.subr.bf16.mxu0 %v8533_v0 }
0x2056   : > { %7628 = vmatpush3.bf16.msra.mxu0 %v8089_v32  ;;  %v8118_v32 = vld [vmem:[#allocation2 + $0x810] sm:$0xff]  }
0x2057   : > { %7629 = vmatprep.subr.bf16.mxu0 %v8533_v0 }
0x205a   : > { %7630 = vmatpush3.bf16.msra.mxu0 %v8090_v43  ;;  %v8119_v43 = vld [vmem:[#allocation2 + $0x7d0] sm:$0xff]  }
0x205b   : > { %7631 = vmatprep.subr.bf16.mxu0 %v8533_v0 }
0x205e   : > { %7632 = vmatpush3.bf16.msra.mxu0 %v8091_v37 }
0x205f   : > { %7657 = vmatprep.subr.bf16.mxu0 %v8533_v0 }
0x2101   : > { %v5201_v47 = vpop.f32.mrf.mxu0 }
0x2102   : > { %v5208_v36 = vmul.f32 %v5201_v47, %v9153_v12  ;;  %v8092_v12 = vld [vmem:[#allocation2 + $0x778] sm:$0xff]   ;;  %v8120_v47 = vld [vmem:[#allocation2 + $0x808] sm:$0xff]  }
0x2103   : > { %v7608_v42 = vpop.f32.mrf.mxu0 }
0x2104   : > { %v8121_v42 = vld [vmem:[#allocation2 + $0x7c8] sm:$0xff]  }
0x2105   : > { %v5204_v34 = vpop.f32.mrf.mxu0 }
0x2106   : > { %v5209_v50 = vmul.f32 %v5204_v34, %v9155_v13  ;;  %v8122_v34 = vld [vmem:[#allocation2 + $0x800] sm:$0xff]  }
0x2107   : > { %v7609_v35 = vpop.f32.mrf.mxu0 }
0x2108   : > { %7611 = vmatpush3.msra.mxu1 %v5209_v50  ;;  %v8123_v50 = vld [vmem:[#allocation2 + $0x7c0] sm:$0xff]   ;;  %v6539_v35 = vld [vmem:[#allocation5 + $0x2b] ss:$0 sm:$0xff] }
0x2109   : > { %7612 = vmatprep.subr.mxu1 %v8533_v0 }
0x210a   : > { %7613 = vmatpush3.msra.mxu1 %v5208_v36  ;;  %v6548_v36 = vld [vmem:[#allocation5 + $0x2c] ss:$0 sm:$0xff] }
0x210b   : > { %7615 = vmatmul.mubr.msk.f32.vlgmr.msra.gmra.mxu1 %vm1111_vm1, %v9187_v11  ;;  %7637 = vmatprep.subr.bf16.mxu1 %v8533_v0 }
0x210c   : > { %7653 = vmatprep.mubr.msk.bf16.mxu1 %vm8534_vm0, %v8533_v0  ;;  %7638 = vmatpush3.bf16.msra.mxu1 %v8092_v12 }
0x210d   : > { %7639 = vmatprep.subr.bf16.mxu1 %v8533_v0 }
0x2110   : > { %7640 = vmatpush3.bf16.msra.mxu1 %v8094_v31 }
0x2111   : > { %7641 = vmatprep.subr.bf16.mxu1 %v8533_v0 }
0x21cb   : > { %v5276_v13 = vpop.f32.mrf.mxu1 }
0x21cc   : > { %v5280_v38 = vpack.c.bf16 %v5276_v13, %v5276_v13 }
0x21cd   : > { %v7616_v39 = vpop.f32.mrf.mxu1 }
0x21ce   : > { %7634 = vmatmul.mubr.bf16.vlgmr.msra.gmra.mxu0 %v5280_v38 }
0x21cf   : > { %7673 = vmatprep.mubr.msk.bf16.mxu0 %vm8534_vm0, %v8533_v0  ;;  %7658 = vmatpush3.bf16.msra.mxu0 %v8093_v40 }
0x21d0   : > { %7659 = vmatprep.subr.bf16.mxu0 %v8533_v0 }
0x21d3   : > { %7660 = vmatpush3.bf16.msra.mxu0 %v8095_v54 }
0x21d4   : > { %7661 = vmatprep.subr.bf16.mxu0 %v8533_v0 }
0x21d7   : > { %7662 = vmatpush3.bf16.msra.mxu0 %v8097_v55 }
0x21d8   : > { %7663 = vmatprep.subr.bf16.mxu0 %v8533_v0 }
0x21db   : > { %7664 = vmatpush3.bf16.msra.mxu0 %v8099_v58 }
0x21dc   : > { %7665 = vmatprep.subr.bf16.mxu0 %v8533_v0 }
0x21df   : > { %7666 = vmatpush3.bf16.msra.mxu0 %v8101_v59 }
0x21e0   : > { %7667 = vmatprep.subr.bf16.mxu0 %v8533_v0 }
0x21e3   : > { %7668 = vmatpush3.bf16.msra.mxu0 %v8103_v62 }
0x21e4   : > { %7669 = vmatprep.subr.bf16.mxu0 %v8533_v0 }
0x21e7   : > { %7670 = vmatpush3.bf16.msra.mxu0 %v8105_v1  ;;  %v6573_v1 = vld [vmem:[#allocation5 + $0x2d] ss:$0 sm:$0xff] }
0x21e8   : > { %7671 = vmatprep.subr.bf16.mxu0 %v8533_v0 }
0x21eb   : > { %7672 = vmatpush3.bf16.msra.mxu0 %v8107_v4 }
0x21ec   : > { %7697 = vmatprep.subr.bf16.mxu0 %v8533_v0 }
0x228e   : > { %v5380_v11 = vpop.f32.mrf.mxu0 }
0x228f   : > { %v5386_v44 = vadd.f32 %v5380_v11, %v9250_v51  ;;  %v8096_v51 = vld [vmem:[#allocation2 + $0x768] sm:$0xff]  }
0x2290   : > { %v7635_v29 = vpop.f32.mrf.mxu0  ;;  %7642 = vmatpush3.bf16.msra.mxu1 %v8096_v51 }
0x2291   : > { %v9328_v33 = vadd.f32 %v6536_v41, %v5386_v44  ;;  %7643 = vmatprep.subr.bf16.mxu1 %v8533_v0 }
0x2292   : > { %v5383_v48 = vpop.f32.mrf.mxu0 }
0x2293   : > { %v5400_v49 = vsel %vm3048_vm3, %v9328_v33, 0.0  ;;  %v5404_v27 = vmul.f32 %v9328_v33, %v9328_v33 }
0x2294   : > { %5401 = vadd.xlane.f32.xlu0 %v5400_v49  ;;  %v7636_v52 = vpop.f32.mrf.mxu0  ;;  %7644 = vmatpush3.bf16.msra.mxu1 %v8098_v56 }
0x2295   : > { %v5405_v53 = vsel %vm3048_vm3, %v5404_v27, 0.0  ;;  %7645 = vmatprep.subr.bf16.mxu1 %v8533_v0 }
0x2296   : > { %5406 = vadd.xlane.f32.xlu1 %v5405_v53 }
0x2298   : > { %7646 = vmatpush3.bf16.msra.mxu1 %v8100_v57 }
0x2299   : > { %7647 = vmatprep.subr.bf16.mxu1 %v8533_v0 }
0x229c   : > { %7648 = vmatpush3.bf16.msra.mxu1 %v8102_v61 }
0x229d   : > { %7649 = vmatprep.subr.bf16.mxu1 %v8533_v0 }
0x22a0   : > { %7650 = vmatpush3.bf16.msra.mxu1 %v8104_v63 }
0x22a1   : > { %7651 = vmatprep.subr.bf16.mxu1 %v8533_v0 }
0x22a4   : > { %7652 = vmatpush3.bf16.msra.mxu1 %v8106_v3 }
0x22a5   : > { %7677 = vmatprep.subr.bf16.mxu1 %v8533_v0 }
0x231d   : > { %v5402_v5 = vpop.xlane.xlu0 %5401 }
0x231e   : > { %v5403_v6 = vmul.f32 0.015625, %v5402_v5 }
0x231f   : > { %v5407_v7 = vpop.xlane.xlu1 %5406 }
0x2320   : > { %v5409_v8 = vmul.f32 %v5403_v6, %v5403_v6  ;;  %v5408_v9 = vmul.f32 0.015625, %v5407_v7  ;;  %v5411_v46 = vsub.f32 %v9328_v33, %v5403_v6 }
0x2322   : > { %v5410_v10 = vsub.f32 %v5408_v9, %v5409_v8 }
0x2324   : > { %v5412_v45 = vadd.f32 1e-05, %v5410_v10 }
0x2326   : > { %8220 = vrsqrt.f32 %v5412_v45 }
0x2333   : > { %v8221_v14 = vpop.eup %8220 }
0x2334   : > { %v5414_v2 = vmul.f32 %v8221_v14, %v5411_v46  ;;  %v8124_v14 = vld [vmem:[#allocation2 + $0x878] sm:$0xff]  }
0x2336   : > { %v5421_v17 = vmul.f32 %v6537_v15, %v5414_v2  ;;  %v8125_v15 = vld [vmem:[#allocation2 + $0x870] sm:$0xff]   ;;  %v8127_v2 = vld [vmem:[#allocation2 + $0x860] sm:$0xff]  }
0x2338   : > { %v5428_v19 = vadd.f32 %v6538_v16, %v5421_v17  ;;  %v8128_v16 = vld [vmem:[#allocation2 + $0x858] sm:$0xff]   ;;  %v8129_v17 = vld [vmem:[#allocation2 + $0x850] sm:$0xff]  }
0x233a   : > { %v5429_v22 = vpack.c.bf16 %v5428_v19, %v5428_v19  ;;  %v8130_v19 = vld [vmem:[#allocation2 + $0x848] sm:$0xff]  }
0x233c   : > { %7654 = vmatmul.mubr.bf16.vlgmr.msra.gmra.mxu1 %v5429_v22  ;;  %7674 = vmatmul.mubr.bf16.vlgmr.msra.gmra.mxu0 %v5429_v22 }
0x233d   : > { %7678 = vmatpush3.bf16.msra.mxu1 %v8108_v20  ;;  %7698 = vmatpush3.bf16.msra.mxu0 %v8109_v21  ;;  %v8131_v20 = vld [vmem:[#allocation2 + $0x840] sm:$0xff]  }
0x233e   : > { %7679 = vmatprep.subr.bf16.mxu1 %v8533_v0  ;;  %7699 = vmatprep.subr.bf16.mxu0 %v8533_v0 }
0x233f   : > { %7693 = vmatprep.mubr.msk.bf16.mxu1 %vm8534_vm0, %v8533_v0  ;;  %7713 = vmatprep.mubr.msk.bf16.mxu0 %vm8534_vm0, %v8533_v0 }
0x2341   : > { %7680 = vmatpush3.bf16.msra.mxu1 %v8110_v60  ;;  %7700 = vmatpush3.bf16.msra.mxu0 %v8111_v23 }
0x2342   : > { %7681 = vmatprep.subr.bf16.mxu1 %v8533_v0  ;;  %7701 = vmatprep.subr.bf16.mxu0 %v8533_v0 }
0x2345   : > { %7682 = vmatpush3.bf16.msra.mxu1 %v8112_v25  ;;  %7702 = vmatpush3.bf16.msra.mxu0 %v8113_v26 }
0x2346   : > { %7683 = vmatprep.subr.bf16.mxu1 %v8533_v0  ;;  %7703 = vmatprep.subr.bf16.mxu0 %v8533_v0 }
0x2349   : > { %7684 = vmatpush3.bf16.msra.mxu1 %v8114_v18  ;;  %7704 = vmatpush3.bf16.msra.mxu0 %v8115_v28 }
0x234a   : > { %7685 = vmatprep.subr.bf16.mxu1 %v8533_v0  ;;  %7705 = vmatprep.subr.bf16.mxu0 %v8533_v0 }
0x234d   : > { %7686 = vmatpush3.bf16.msra.mxu1 %v8116_v30  ;;  %7706 = vmatpush3.bf16.msra.mxu0 %v8117_v24  ;;  %v6574_v24 = vld [vmem:[#allocation5 + $0x2e] ss:$0 sm:$0xff] }
0x234e   : > { %7687 = vmatprep.subr.bf16.mxu1 %v8533_v0  ;;  %7707 = vmatprep.subr.bf16.mxu0 %v8533_v0 }
0x2351   : > { %7688 = vmatpush3.bf16.msra.mxu1 %v8118_v32  ;;  %7708 = vmatpush3.bf16.msra.mxu0 %v8119_v43  ;;  %v6575_v43 = vld [vmem:[#allocation5 + $0x2f] ss:$0 sm:$0xff] }
0x2352   : > { %7689 = vmatprep.subr.bf16.mxu1 %v8533_v0  ;;  %7709 = vmatprep.subr.bf16.mxu0 %v8533_v0 }
0x2355   : > { %7690 = vmatpush3.bf16.msra.mxu1 %v8120_v47  ;;  %7710 = vmatpush3.bf16.msra.mxu0 %v8121_v42 }
0x2356   : > { %7691 = vmatprep.subr.bf16.mxu1 %v8533_v0  ;;  %7711 = vmatprep.subr.bf16.mxu0 %v8533_v0 }
0x2359   : > { %7692 = vmatpush3.bf16.msra.mxu1 %v8122_v34  ;;  %7712 = vmatpush3.bf16.msra.mxu0 %v8123_v50 }
0x235a   : > { %7717 = vmatprep.subr.bf16.mxu1 %v8533_v0 }
0x23fc   : > { %v5537_v37 = vpop.f32.mrf.mxu1  ;;  %v5655_v13 = vpop.f32.mrf.mxu0 }
0x23fd   : > { %v5538_v38 = vadd.f32 %v6539_v35, %v5537_v37  ;;  %v5656_v39 = vadd.f32 %v6548_v36, %v5655_v13 }
0x23fe   : > { %v7655_v12 = vpop.f32.mrf.mxu1  ;;  %v7675_v40 = vpop.f32.mrf.mxu0 }
0x23ff   : > { %v5544_v11 = vmul.f32 0.70710677, %v5538_v38  ;;  %v5662_v41 = vmul.f32 0.70710677, %v5656_v39  ;;  %v5543_v53 = vmul.f32 0.5, %v5538_v38  ;;  %v5661_v54 = vmul.f32 0.5, %v5656_v39 }
0x2400   : > { %v5540_v44 = vpop.f32.mrf.mxu1  ;;  %v5658_v29 = vpop.f32.mrf.mxu0 }
0x2401   : > { %8222 = verf.f32 %v5544_v11 }
0x2402   : > { %8224 = verf.f32 %v5662_v41  ;;  %v7656_v48 = vpop.f32.mrf.mxu1  ;;  %v7676_v49 = vpop.f32.mrf.mxu0 }
0x240e   : > { %v8223_v27 = vpop.eup %8222 }
0x240f   : > { %v8225_v52 = vpop.eup %8224  ;;  %v5546_v31 = vadd.f32 1.0, %v8223_v27 }
0x2410   : > { %v5664_v51 = vadd.f32 1.0, %v8225_v52 }
0x2411   : > { %v5547_v55 = vmul.f32 %v5546_v31, %v5543_v53 }
0x2412   : > { %v5665_v56 = vmul.f32 %v5664_v51, %v5661_v54 }
0x2413   : > { %v5666_v58 = vpack.c.bf16 %v5547_v55, %v5547_v55 }
0x2414   : > { %v5684_v57 = vpack.c.bf16 %v5665_v56, %v5665_v56 }
0x2415   : > { %7714 = vmatmul.mubr.bf16.vlgmr.msra.gmra.mxu0 %v5666_v58 }
0x2416   : > { %7694 = vmatmul.mubr.bf16.vlgmr.msra.gmra.mxu1 %v5684_v57 }
0x2417   : > { %7733 = vmatprep.mubr.msk.bf16.mxu1 %vm8534_vm0, %v8533_v0  ;;  %7718 = vmatpush3.bf16.msra.mxu1 %v8124_v14 }
0x2418   : > { %7719 = vmatprep.subr.bf16.mxu1 %v8533_v0 }
0x241b   : > { %7720 = vmatpush3.bf16.msra.mxu1 %v8125_v15 }
0x241c   : > { %7721 = vmatprep.subr.bf16.mxu1 %v8533_v0 }
0x24d5   : > { %v5872_v59 = vpop.f32.mrf.mxu0 }
0x24d6   : > { %v5784_v61 = vpop.f32.mrf.mxu1 }
0x24d7   : > { %v5873_v62 = vadd.f32 %v5872_v59, %v5784_v61  ;;  %v7715_v63 = vpop.f32.mrf.mxu0 }
0x24d8   : > { %v7695_v3 = vpop.f32.mrf.mxu1 }
0x24d9   : > { %v5878_v4 = vadd.f32 %v5873_v62, %v9328_v33  ;;  %v5875_v5 = vpop.f32.mrf.mxu0  ;;  %v8126_v33 = vld [vmem:[#allocation2 + $0x868] sm:$0xff]  }
0x24da   : > { %v5787_v6 = vpop.f32.mrf.mxu1  ;;  %7722 = vmatpush3.bf16.msra.mxu1 %v8126_v33 }
0x24db   : > { %v5887_v7 = vadd.f32 %v6573_v1, %v5878_v4  ;;  %v7716_v8 = vpop.f32.mrf.mxu0  ;;  %7723 = vmatprep.subr.bf16.mxu1 %v8533_v0 }
0x24dc   : > { %v7696_v9 = vpop.f32.mrf.mxu1 }
0x24dd   : > { %v5892_v10 = vsel %vm3048_vm3, %v5887_v7, 0.0  ;;  %v5896_v45 = vmul.f32 %v5887_v7, %v5887_v7 }
0x24de   : > { %5893 = vadd.xlane.f32.xlu0 %v5892_v10  ;;  %7724 = vmatpush3.bf16.msra.mxu1 %v8127_v2 }
0x24df   : > { %v5897_v46 = vsel %vm3048_vm3, %v5896_v45, 0.0  ;;  %7725 = vmatprep.subr.bf16.mxu1 %v8533_v0 }
0x24e0   : > { %5898 = vadd.xlane.f32.xlu1 %v5897_v46 }
0x24e2   : > { %7726 = vmatpush3.bf16.msra.mxu1 %v8128_v16 }
0x24e3   : > { %7727 = vmatprep.subr.bf16.mxu1 %v8533_v0 }
0x24e6   : > { %7728 = vmatpush3.bf16.msra.mxu1 %v8129_v17 }
0x24e7   : > { %7729 = vmatprep.subr.bf16.mxu1 %v8533_v0 }
0x24ea   : > { %7730 = vmatpush3.bf16.msra.mxu1 %v8130_v19 }
0x24eb   : > { %7731 = vmatprep.subr.bf16.mxu1 %v8533_v0 }
0x24ee   : > { %7732 = vmatpush3.bf16.msra.mxu1 %v8131_v20 }
0x2567   : > { %v5894_v21 = vpop.xlane.xlu0 %5893 }
0x2568   : > { %v5895_v22 = vmul.f32 0.015625, %v5894_v21 }
0x2569   : > { %v5899_v60 = vpop.xlane.xlu1 %5898 }
0x256a   : > { %v5901_v23 = vmul.f32 %v5895_v22, %v5895_v22  ;;  %v5900_v25 = vmul.f32 0.015625, %v5899_v60  ;;  %v5903_v28 = vsub.f32 %v5887_v7, %v5895_v22 }
0x256c   : > { %v5902_v26 = vsub.f32 %v5900_v25, %v5901_v23 }
0x256e   : > { %v5904_v18 = vadd.f32 1e-05, %v5902_v26 }
0x2570   : > { %8226 = vrsqrt.f32 %v5904_v18 }
0x257d   : > { %v8227_v30 = vpop.eup %8226 }
0x257e   : > { %v5906_v32 = vmul.f32 %v8227_v30, %v5903_v28 }
0x2580   : > { %v5913_v47 = vmul.f32 %v6574_v24, %v5906_v32 }
0x2582   : > { %v5920_v42 = vadd.f32 %v6575_v43, %v5913_v47 }
0x2584   : > { %v5921_v0 = vsel %vm3048_vm3, %v5920_v42, 0.0 }
0x2585   : > { %v5922_v34 = vrot.slane %v5921_v0, 4 }
0x2587   : > { %v5923_v50 = vadd.f32 %v5922_v34, %v5921_v0 }
0x2589   : > { %v5924_v35 = vrot.slane %v5923_v50, 2 }
0x258b   : > { %v5925_v36 = vadd.f32 %v5924_v35, %v5923_v50 }
0x258d   : > { %v5926_v37 = vrot.slane %v5925_v36, 1 }
0x258f   : > { %v5927_v13 = vadd.f32 %v5926_v37, %v5925_v36 }
0x2591   : > { %v5929_v38 = vmul.f32 0.25, %v5927_v13 }
0x2593   : > { %v5931_v39 = vpack.c.bf16 %v5929_v38, %v5929_v38  ;;  %5930 = vst [vmem:[%s482_s16] sm:$0x1] %v5929_v38 }
0x2595   : > { %7734 = vmatmul.mubr.bf16.vlgmr.msra.gmra.mxu1 %v5931_v39 }
0x2596   : > { %8425 = shalt.err (!%p8422_p2)
}
0x2597   : > { %s8426_s22 = scalar_lea.hbm %s6055_s30, 16  ;;  %s8430_s19 = scalar_lea.hbm %s9463_s10, 32 }
0x2598   : > { %p8427_p3 = scmp.ne.s32.totalorder %s6055_s30, %s8426_s22  ;;  %p8431_p10 = scmp.lt.s32.totalorder %s6055_s30, %s9463_s10 }
0x2599   : > { %p8432_p7 = scmp.lt.s32.totalorder %s8430_s19, %s8426_s22 }
0x259a   : > { %p8428_p4 = pnand %p8427_p3, %p8635_p5 }
0x259b   : > { %p8433_p8 = por %p8432_p7, %p8431_p10 }
0x259c   : > { %p8429_p12 = pneg %p8428_p4 }
0x259e   : > { %p8434_p11 = pnand %p8433_p8, %p8429_p12 }
0x25a0   : > { %8437 = shalt.err (!%p8434_p11)
}
0x25a1   : > { %7765 = dma.vmem_to_hbm [thread:$0]  (%p8635_p5), %s6058_s26, 16, %s6055_s30, %s6041_s14   ;;  %v5950_v12 = vld [vmem:[#allocation5 + $0x30] sm:$0x1] }
0x25a2   : > { %s488_s25 = scalar_lea.vmem [#allocation15], %s9383_s13  ;;  %s9491_s12 = sshll.u32 %s8618_s21, 4 }
0x25a3   : > { %s6070_s23 = sshll.u32 %s488_s25, 4  ;;  %s9411_s22 = scalar_lea.hbm %s9464_s11, %s9491_s12  ;;  %s9413_s23 = int_to_ptr.vmem [resolvable:$true] %s6070_s23 }
0x25a4   : > { %s6045_s26 = scalar_lea.sflag [#allocation16], %s9383_s13  ;;  %s8438_s30 = scalar_lea.vmem %s9413_s23, 16 }
0x25a5   : > { %p8439_p1 = scmp.ne.s32.totalorder %s9413_s23, %s8438_s30  ;;  %s8536_s21 = smov [#allocation15]  }
0x25a6   : > { %s8442_s14 = sshll.u32 %s8536_s21, 4  ;;  %s8443_s14 = int_to_ptr.vmem [resolvable:$false] %s8442_s14 }
0x25a7   : > { %p8440_p0 = pnand %p8439_p1, %p8635_p5  ;;  %s8444_s29 = scalar_lea.vmem %s8443_s14, 32 }
0x25a8   : > { %p8445_p13 = scmp.lt.s32.totalorder %s9413_s23, %s8443_s14  ;;  %p8446_p9 = scmp.lt.s32.totalorder %s8444_s29, %s8438_s30 }
0x25a9   : > { %p8441_p6 = pneg %p8440_p0 }
0x25aa   : > { %p8447_p2 = por %p8446_p9, %p8445_p13 }
0x25ac   : > { %p8448_p3 = pnand %p8447_p2, %p8441_p6 }
0x2655   : > { %v6033_v40 = vpop.f32.mrf.mxu1 }
0x2656   : > { %v6034_v11 = vadd.f32 %v6033_v40, %v5950_v12 }
0x2657   : > { %v7735_v41 = vpop.f32.mrf.mxu1 }
0x2658   : > { %6039 = vst [vmem:[%s488_s25] sm:$0x1] %v6034_v11 }
0x2659   : > { %v6036_v44 = vpop.f32.mrf.mxu1 }
0x265a   : > { %8451 = shalt.err (!%p8448_p3)
}
0x265b   : > { %s8452_s16 = scalar_lea.hbm %s9411_s22, 16  ;;  %s8456_s15 = scalar_lea.hbm %s9464_s11, 32 }
0x265c   : > { %p8453_p4 = scmp.ne.s32.totalorder %s9411_s22, %s8452_s16  ;;  %p8457_p7 = scmp.lt.s32.totalorder %s9411_s22, %s9464_s11 }
0x265d   : > { %p8458_p8 = scmp.lt.s32.totalorder %s8456_s15, %s8452_s16 }
0x265e   : > { %p8454_p12 = pnand %p8453_p4, %p8635_p5 }
0x265f   : > { %p8459_p11 = por %p8458_p8, %p8457_p7 }
0x2660   : > { %p8455_p10 = pneg %p8454_p12 }
0x2662   : > { %p8460_p1 = pnand %p8459_p11, %p8455_p10 }
0x2664   : > { %8463 = shalt.err (!%p8460_p1)
}
0x2665   : > { %7766 = dma.vmem_to_hbm [thread:$0]  (%p8635_p5), %s9413_s23, 16, %s9411_s22, %s6045_s26   ;;  %v7736_v29 = vpop.f32.mrf.mxu1 }
0x2666 PF: > { %s9492_s28 = sld [smem:[#allocation26_spill]]  ;;  %p7812_p0 = scmp.ge.s32.totalorder %s8518_s20, 2 }
0x2667   : > { %s6082_s24 = sand.u32 1, %s8506_s17  }
0x2668   : > { %s6083_s30 = scalar_lea.sflag [#allocation4], %s6082_s24 }
0x266c   : > { %p9493_p6 = scmp.ne.s32.totalorder %s9492_s28, 0 }
0x266e   : > { %p7792_p13 = pnand %p7812_p0, %p9493_p6 }
0x2670   : > { %p7793_p9 = pneg %p7792_p13 }
0x2672   : > { %8497 = dma.done.wait (%p7793_p9), %s6083_s30, 16  }
0x2673   : > { %8499 = vsyncadd (%p7793_p9), %s6083_s30, 4294967280  ;;  %s6091_s21 = scalar_lea.sflag [#allocation16], %s6082_s24 }
0x2674   : > { %8501 = dma.done.wait (%p7793_p9), %s6091_s21, 16  }
0x2675   : > { %8503 = vsyncadd (%p7793_p9), %s6091_s21, 4294967280  ;;  %s9494_s20 = sld [smem:[#allocation24_spill]]  ;;  %s9497_s17 = smov %s8510_s18 }
0x2676   : > { %s9495_s27 = sld [smem:[#allocation23_spill]] }
0x2677   : > { %s9496_s19 = sld [smem:[#allocation25_spill]] }
0x267b   : > { %p29_p5 = scmp.ge.s32.totalorder %s9494_s20, 4  }
0x267c   : > { %s9498_s18 = smov %s9495_s27 }
0x267d   :  { %31 = sbr.rel (!%p29_p5) target bundleno = 9 (0x9), region = 227 }
0x2682   :  { %6095 = vsyncpa [#allocation3], 1 }
0x2683   :  { %6097 = vsyncpa [#allocation3 + $0x1], 1 }
0x2684   :  { %6098 = vsyncpa [#allocation6], 1 }
0x2685   :  { %6099 = vsyncpa [#allocation9], 1 }
0x2686   :  { %6100 = vsyncpa [#allocation12], 1 }
0x2687   :  { %6101 = vsyncpa [#allocation4], 1 }
0x2688   :  { %6103 = vsyncpa [#allocation4 + $0x1], 1 }
0x2689   :  { %6104 = vsyncpa [#allocation16], 1 }
0x268a   :  { %6106 = vsyncpa [#allocation16 + $0x1], 1 }

</bundles_post_ra>
